<compile_context>
chip_gen: v5e
topology: v5e:2x2
jax: 0.10.0
libtpu: 0.0.40
codegen_flags: <defaults>
</compile_context>

<pallas_src>
import functools

import jax
import jax.numpy as jnp
from jax.experimental import pallas as pl
from jax.experimental.pallas import tpu as pltpu


_VMEM = pl.BlockSpec(memory_space=pltpu.MemorySpace.VMEM)
_EPS = 1e-5
_SLOPE = 0.2


def _round_up(a, b):
    return (a + b - 1) // b * b


def _lrelu(x):
    return jnp.where(x > 0, x, _SLOPE * x)


def _stable_sigmoid(x):
    # exp(-|x|) never overflows; both where-branches are finite.
    z = jnp.exp(-jnp.abs(x))
    return jnp.where(x >= 0, 1.0 / (1.0 + z), z / (1.0 + z))


# ----------------------------------------------------------------------------
# Kernel 1: conv1 as a lane-dense matmul with fused bias + LeakyReLU
#   p:(K1, M1p) bf16   w:(8, K1) bf16   b:(8,1) f32   o:(8, M1p) f32
# ----------------------------------------------------------------------------
def _conv1_kernel(p_ref, w_ref, b_ref, o_ref):
    y = jnp.dot(w_ref[...], p_ref[...], preferred_element_type=jnp.float32)
    y = y + b_ref[...]
    o_ref[...] = _lrelu(y).astype(o_ref.dtype)


# ----------------------------------------------------------------------------
# Kernel 2: fused conv2 + BN2 + LReLU + conv3 + BN3 + LReLU + conv4 + sigmoid
#   p2 :(K2, M2p) bf16        w2 :(16, K2) bf16     b2/g2/be2:(16,1) f32
#   w3w:(16, 32, M2p) f32     b3/g3/be3:(32,1) f32
#   w4 :(32, 1) f32           b4 :(1,1) f32         o:(1, N) f32
# w3w holds the conv3 taps "spread" onto the exact lane positions of the
# conv2 output they read (per batch element), zeros elsewhere, so conv3 is a
# per-input-channel multiply-accumulate plus a masked lane reduction.
# ----------------------------------------------------------------------------
def _tail_kernel(p2_ref, w2_ref, b2_ref, g2_ref, be2_ref,
                 w3w_ref, b3_ref, g3_ref, be3_ref, w4_ref, b4_ref,
                 o_ref, *, m2, seg, n_batch, c3_in):
    # ---- conv2 : lane-dense matmul + bias (f32 accumulation) ----
    y2 = jnp.dot(w2_ref[...], p2_ref[...], preferred_element_type=jnp.float32)
    y2 = y2 + b2_ref[...]                                    # (16, M2p)

    # ---- BatchNorm2d(16) over the m2 valid columns + LeakyReLU ----
    lanes = jax.lax.broadcasted_iota(jnp.int32, y2.shape, 1)
    valid = (lanes < m2).astype(jnp.float32)
    inv_m2 = 1.0 / float(m2)
    mean2 = jnp.sum(y2 * valid, axis=1, keepdims=True) * inv_m2
    d2 = (y2 - mean2) * valid
    var2 = jnp.sum(d2 * d2, axis=1, keepdims=True) * inv_m2
    h2 = _lrelu(g2_ref[...] * (y2 - mean2) * jax.lax.rsqrt(var2 + _EPS)
                + be2_ref[...])                              # (16, M2p)

    # ---- conv3 (1x1 output spatial): VPU multiply-accumulate ----
    acc = jnp.zeros(w3w_ref.shape[1:], dtype=jnp.float32)    # (32, M2p)
    for c in range(c3_in):                                   # 16 unrolled adds
        acc = acc + w3w_ref[c] * h2[c:c + 1, :]
    lanes3 = jax.lax.broadcasted_iota(jnp.int32, acc.shape, 1)
    cols = []
    for n in range(n_batch):                                 # masked lane sums
        m_n = ((lanes3 >= n * seg) & (lanes3 < (n + 1) * seg)).astype(jnp.float32)
        cols.append(jnp.sum(acc * m_n, axis=1, keepdims=True))   # (32, 1)
    y3 = jnp.concatenate(cols, axis=1) + b3_ref[...]         # (32, N)

    # ---- BatchNorm2d(32) over the N columns + LeakyReLU ----
    mean3 = jnp.mean(y3, axis=1, keepdims=True)
    d3 = y3 - mean3
    var3 = jnp.mean(d3 * d3, axis=1, keepdims=True)
    h3 = _lrelu(g3_ref[...] * d3 * jax.lax.rsqrt(var3 + _EPS) + be3_ref[...])

    # ---- conv4 (1x1, Cout=1) + Sigmoid ----
    y4 = jnp.sum(h3 * w4_ref[...], axis=0, keepdims=True) + b4_ref[...]  # (1, N)
    o_ref[...] = _stable_sigmoid(y4).astype(o_ref.dtype)


# ----------------------------------------------------------------------------
# Wrapper glue (plain JAX): channel-major im2col (no transposes in the chain)
# ----------------------------------------------------------------------------
def _im2col_cm(f, kh_sz, kw_sz, stride):
    """f:(C, N, H, W) channel-major -> patches^T (C*KH*KW, N*OH*OW)."""
    C, N, H, W = f.shape
    OH = (H - kh_sz) // stride + 1
    OW = (W - kw_sz) // stride + 1
    cols = []
    for kh in range(kh_sz):
        for kw in range(kw_sz):
            cols.append(f[:, :,
                          kh:kh + stride * (OH - 1) + 1:stride,
                          kw:kw + stride * (OW - 1) + 1:stride])   # (C,N,OH,OW)
    p = jnp.stack(cols, axis=1)                       # (C, KH*KW, N, OH, OW)
    return p.reshape(C * kh_sz * kw_sz, N * OH * OW), (OH, OW)


def init_params(key, image_nc):
    ks = jax.random.split(key, 12)
    p = {}
    p["w1"] = jax.random.normal(ks[0], (8, image_nc, 4, 20), jnp.float32) * 0.05
    p["b1"] = jax.random.normal(ks[1], (8,), jnp.float32) * 0.05
    p["w2"] = jax.random.normal(ks[2], (16, 8, 4, 20), jnp.float32) * 0.05
    p["b2"] = jax.random.normal(ks[3], (16,), jnp.float32) * 0.05
    p["g2"] = 1.0 + jax.random.normal(ks[4], (16,), jnp.float32) * 0.05
    p["be2"] = jax.random.normal(ks[5], (16,), jnp.float32) * 0.05
    p["w3"] = jax.random.normal(ks[6], (32, 16, 5, 10), jnp.float32) * 0.05
    p["b3"] = jax.random.normal(ks[7], (32,), jnp.float32) * 0.05
    p["g3"] = 1.0 + jax.random.normal(ks[8], (32,), jnp.float32) * 0.05
    p["be3"] = jax.random.normal(ks[9], (32,), jnp.float32) * 0.05
    p["w4"] = jax.random.normal(ks[10], (1, 32, 1, 1), jnp.float32) * 0.05
    p["b4"] = jax.random.normal(ks[11], (1,), jnp.float32) * 0.05
    return p


def discriminator_forward(params, x):
    f32, bf16 = jnp.float32, jnp.bfloat16
    N, Cin, H, W = x.shape

    # ------------------ conv1 + LeakyReLU : pallas call #1 ------------------
    x_cm = jnp.transpose(x, (1, 0, 2, 3))                 # (C, N, H, W)
    p1, (OH1, OW1) = _im2col_cm(x_cm, 4, 20, 2)           # (Cin*80, M1)
    M1 = N * OH1 * OW1
    M1p = _round_up(M1, 128)
    p1 = jnp.pad(p1, ((0, 0), (0, M1p - M1))).astype(bf16)
    w1m = params["w1"].reshape(8, -1).astype(bf16)        # (8, Cin*80)
    b1 = params["b1"].reshape(8, 1).astype(f32)

    h1 = pl.pallas_call(
        _conv1_kernel,
        out_shape=jax.ShapeDtypeStruct((8, M1p), f32),
        in_specs=[_VMEM, _VMEM, _VMEM],
        out_specs=_VMEM,
    )(p1, w1m, b1)                                        # lane-dense (8, M1p)

    # ----- conv2+BN2+LReLU+conv3+BN3+LReLU+conv4+sigmoid : pallas call #2 ---
    h1v = h1[:, :M1].reshape(8, N, OH1, OW1)              # already channel-major
    p2, (OH2, OW2) = _im2col_cm(h1v, 4, 20, 2)            # (640, M2)
    M2 = N * OH2 * OW2
    M2p = _round_up(M2, 128)
    p2 = jnp.pad(p2, ((0, 0), (0, M2p - M2))).astype(bf16)
    w2m = params["w2"].reshape(16, -1).astype(bf16)       # (16, 640)

    # Fused tail requires conv3's spatial output to be 1x1 (true for 28x100).
    assert (OH2 - 5) // 2 + 1 == 1 and (OW2 - 10) // 2 + 1 == 1
    # TODO(synk): larger spatial inputs (conv3 output > 1x1) would need the
    # generic per-layer path instead of the fused tail kernel.

    seg = OH2 * OW2                                       # per-batch lane segment
    w3 = params["w3"].astype(f32)                         # (32, 16, 5, 10)
    w3p = jnp.pad(w3, ((0, 0), (0, 0), (0, 0), (0, OW2 - 10)))   # (32,16,5,OW2)
    w3p = w3p.reshape(32, 16, seg)
    w3w = jnp.tile(w3p, (1, 1, N))                        # same taps per batch n
    w3w = jnp.pad(w3w, ((0, 0), (0, 0), (0, M2p - N * seg)))
    w3w = jnp.transpose(w3w, (1, 0, 2))                   # (16, 32, M2p)

    b2 = params["b2"].reshape(16, 1).astype(f32)
    g2 = params["g2"].reshape(16, 1).astype(f32)
    be2 = params["be2"].reshape(16, 1).astype(f32)
    b3 = params["b3"].reshape(32, 1).astype(f32)
    g3 = params["g3"].reshape(32, 1).astype(f32)
    be3 = params["be3"].reshape(32, 1).astype(f32)
    w4 = params["w4"].reshape(32, 1).astype(f32)
    b4 = params["b4"].reshape(1, 1).astype(f32)

    out = pl.pallas_call(
        functools.partial(_tail_kernel, m2=M2, seg=seg, n_batch=N, c3_in=16),
        out_shape=jax.ShapeDtypeStruct((1, N), f32),
        in_specs=[_VMEM] * 11,
        out_specs=_VMEM,
    )(p2, w2m, b2, g2, be2, w3w, b3, g3, be3, w4, b4)

    return jnp.squeeze(out)       # matches torch output.squeeze()


# ----------------------------------------------------------------------------
if __name__ == "__main__":
    key = jax.random.PRNGKey(0)
    k_param, k_x = jax.random.split(key)

    image_nc = 2
    N, H, W = 2, 28, 100          # spatial size that survives all three convs
    params = init_params(k_param, image_nc)
    x = jax.random.normal(k_x, (N, image_nc, H, W), jnp.float32)

    out = jax.jit(discriminator_forward)(params, x)
    out = jax.block_until_ready(out)

    assert out.shape == (N,), out.shape
    assert bool(jnp.all(jnp.isfinite(out)))
    assert bool(jnp.all((out >= 0.0) & (out <= 1.0)))
    print("KERNEL_OK")
</pallas_src>

<mosaic_0001>
module attributes {stable_mosaic.version = 11 : i64} {
  func.func @_conv1_kernel(%arg0: memref<160x1152xbf16, #tpu.memory_space<vmem>>, %arg1: memref<8x160xbf16, #tpu.memory_space<vmem>>, %arg2: memref<8x1xf32, #tpu.memory_space<vmem>>, %arg3: memref<8x1152xf32, #tpu.memory_space<vmem>>) attributes {dimension_semantics = [], scalar_prefetch = 0 : i64, scratch_operands = 0 : i64, tpu.core_type = #tpu.core_type<tc>} {
    %c0 = arith.constant 0 : index
    %c0_0 = arith.constant 0 : index
    %0 = vector.load %arg1[%c0, %c0_0] : memref<8x160xbf16, #tpu.memory_space<vmem>>, vector<8x160xbf16>
    %c0_1 = arith.constant 0 : index
    %c0_2 = arith.constant 0 : index
    %1 = vector.load %arg0[%c0_1, %c0_2] : memref<160x1152xbf16, #tpu.memory_space<vmem>>, vector<160x1152xbf16>
    %cst = arith.constant dense<0.000000e+00> : vector<8x1152xf32>
    %2 = tpu.matmul %0, %1, %cst {dimension_numbers = #tpu.dot_dimension_numbers<[1], [0], [0], [1], [0, 0, 1, 1], [], []>} : vector<8x160xbf16>, vector<160x1152xbf16>, vector<8x1152xf32> -> vector<8x1152xf32>
    %c0_3 = arith.constant 0 : index
    %c0_4 = arith.constant 0 : index
    %3 = vector.load %arg2[%c0_3, %c0_4] : memref<8x1xf32, #tpu.memory_space<vmem>>, vector<8x1xf32>
    %4 = vector.broadcast %3 : vector<8x1xf32> to vector<8x1152xf32>
    %5 = arith.addf %2, %4 : vector<8x1152xf32>
    %cst_5 = arith.constant 0.000000e+00 : f32
    %6 = vector.broadcast %cst_5 : f32 to vector<8x1152xf32>
    %7 = arith.cmpf ogt, %5, %6 : vector<8x1152xf32>
    %cst_6 = arith.constant 2.000000e-01 : f32
    %8 = vector.broadcast %cst_6 : f32 to vector<8x1152xf32>
    %9 = arith.mulf %8, %5 : vector<8x1152xf32>
    %10 = arith.select %7, %5, %9 : vector<8x1152xi1>, vector<8x1152xf32>
    %c0_7 = arith.constant 0 : index
    %c0_8 = arith.constant 0 : index
    %11 = vector.load %arg3[%c0_7, %c0_8] : memref<8x1152xf32, #tpu.memory_space<vmem>>, vector<8x1152xf32>
    tpu.vector_store %arg3[%c0_7, %c0_8], %10 {strides = array<i32>} : memref<8x1152xf32, #tpu.memory_space<vmem>>, vector<8x1152xf32>,
    return
  }
}

module attributes {stable_mosaic.version = 11 : i64} {
  func.func @_tail_kernel(%arg0: memref<640x128xbf16, #tpu.memory_space<vmem>>, %arg1: memref<16x640xbf16, #tpu.memory_space<vmem>>, %arg2: memref<16x1xf32, #tpu.memory_space<vmem>>, %arg3: memref<16x1xf32, #tpu.memory_space<vmem>>, %arg4: memref<16x1xf32, #tpu.memory_space<vmem>>, %arg5: memref<16x32x128xf32, #tpu.memory_space<vmem>>, %arg6: memref<32x1xf32, #tpu.memory_space<vmem>>, %arg7: memref<32x1xf32, #tpu.memory_space<vmem>>, %arg8: memref<32x1xf32, #tpu.memory_space<vmem>>, %arg9: memref<32x1xf32, #tpu.memory_space<vmem>>, %arg10: memref<1x1xf32, #tpu.memory_space<vmem>>, %arg11: memref<1x2xf32, #tpu.memory_space<vmem>>) attributes {dimension_semantics = [], scalar_prefetch = 0 : i64, scratch_operands = 0 : i64, tpu.core_type = #tpu.core_type<tc>} {
    %c0 = arith.constant 0 : index
    %c0_0 = arith.constant 0 : index
    %0 = vector.load %arg1[%c0, %c0_0] : memref<16x640xbf16, #tpu.memory_space<vmem>>, vector<16x640xbf16>
    %c0_1 = arith.constant 0 : index
    %c0_2 = arith.constant 0 : index
    %1 = vector.load %arg0[%c0_1, %c0_2] : memref<640x128xbf16, #tpu.memory_space<vmem>>, vector<640x128xbf16>
    %cst = arith.constant dense<0.000000e+00> : vector<16x128xf32>
    %2 = tpu.matmul %0, %1, %cst {dimension_numbers = #tpu.dot_dimension_numbers<[1], [0], [0], [1], [0, 0, 1, 1], [], []>} : vector<16x640xbf16>, vector<640x128xbf16>, vector<16x128xf32> -> vector<16x128xf32>
    %c0_3 = arith.constant 0 : index
    %c0_4 = arith.constant 0 : index
    %3 = vector.load %arg2[%c0_3, %c0_4] : memref<16x1xf32, #tpu.memory_space<vmem>>, vector<16x1xf32>
    %4 = vector.broadcast %3 : vector<16x1xf32> to vector<16x128xf32>
    %5 = arith.addf %2, %4 : vector<16x128xf32>
    %6 = tpu.iota {dimensions = array<i32: 1>} : vector<16x128xi32>
    %c110_i32 = arith.constant 110 : i32
    %7 = vector.broadcast %c110_i32 : i32 to vector<16x128xi32>
    %8 = arith.cmpi slt, %6, %7 : vector<16x128xi32>
    %9 = arith.extui %8 : vector<16x128xi1> to vector<16x128xi32>
    %10 = arith.sitofp %9 : vector<16x128xi32> to vector<16x128xf32>
    %11 = arith.mulf %5, %10 : vector<16x128xf32>
    %cst_5 = arith.constant dense<0.000000e+00> : vector<16xf32>
    %12 = vector.multi_reduction <add>, %11, %cst_5 [1] : vector<16x128xf32> to vector<16xf32>
    %13 = vector.shape_cast %12 : vector<16xf32> to vector<16x1xf32>
    %cst_6 = arith.constant 0.0090909088 : f32
    %14 = vector.broadcast %cst_6 : f32 to vector<16x1xf32>
    %15 = arith.mulf %13, %14 : vector<16x1xf32>
    %16 = vector.broadcast %15 : vector<16x1xf32> to vector<16x128xf32>
    %17 = arith.subf %5, %16 : vector<16x128xf32>
    %18 = arith.mulf %17, %10 : vector<16x128xf32>
    %19 = arith.mulf %18, %18 : vector<16x128xf32>
    %cst_7 = arith.constant dense<0.000000e+00> : vector<16xf32>
    %20 = vector.multi_reduction <add>, %19, %cst_7 [1] : vector<16x128xf32> to vector<16xf32>
    %21 = vector.shape_cast %20 : vector<16xf32> to vector<16x1xf32>
    %cst_8 = arith.constant 0.0090909088 : f32
    %22 = vector.broadcast %cst_8 : f32 to vector<16x1xf32>
    %23 = arith.mulf %21, %22 : vector<16x1xf32>
    %c0_9 = arith.constant 0 : index
    %c0_10 = arith.constant 0 : index
    %24 = vector.load %arg3[%c0_9, %c0_10] : memref<16x1xf32, #tpu.memory_space<vmem>>, vector<16x1xf32>
    %25 = vector.broadcast %15 : vector<16x1xf32> to vector<16x128xf32>
    %26 = arith.subf %5, %25 : vector<16x128xf32>
    %27 = vector.broadcast %24 : vector<16x1xf32> to vector<16x128xf32>
    %28 = arith.mulf %27, %26 : vector<16x128xf32>
    %cst_11 = arith.constant 9.99999974E-6 : f32
    %29 = vector.broadcast %cst_11 : f32 to vector<16x1xf32>
    %30 = arith.addf %23, %29 : vector<16x1xf32>
    %31 = math.rsqrt %30 : vector<16x1xf32>
    %32 = vector.broadcast %31 : vector<16x1xf32> to vector<16x128xf32>
    %33 = arith.mulf %28, %32 : vector<16x128xf32>
    %c0_12 = arith.constant 0 : index
    %c0_13 = arith.constant 0 : index
    %34 = vector.load %arg4[%c0_12, %c0_13] : memref<16x1xf32, #tpu.memory_space<vmem>>, vector<16x1xf32>
    %35 = vector.broadcast %34 : vector<16x1xf32> to vector<16x128xf32>
    %36 = arith.addf %33, %35 : vector<16x128xf32>
    %cst_14 = arith.constant 0.000000e+00 : f32
    %37 = vector.broadcast %cst_14 : f32 to vector<16x128xf32>
    %38 = arith.cmpf ogt, %36, %37 : vector<16x128xf32>
    %cst_15 = arith.constant 2.000000e-01 : f32
    %39 = vector.broadcast %cst_15 : f32 to vector<16x128xf32>
    %40 = arith.mulf %39, %36 : vector<16x128xf32>
    %41 = arith.select %38, %36, %40 : vector<16x128xi1>, vector<16x128xf32>
    %cst_16 = arith.constant 0.000000e+00 : f32
    %42 = vector.broadcast %cst_16 : f32 to vector<32x128xf32>
    %c0_17 = arith.constant 0 : index
    %c0_18 = arith.constant 0 : index
    %c0_19 = arith.constant 0 : index
    %43 = vector.load %arg5[%c0_17, %c0_18, %c0_19] : memref<16x32x128xf32, #tpu.memory_space<vmem>>, vector<1x32x128xf32>
    %44 = vector.shape_cast %43 : vector<1x32x128xf32> to vector<32x128xf32>
    %45 = vector.extract_strided_slice %41 {offsets = [0, 0], sizes = [1, 128], strides = [1, 1]} : vector<16x128xf32> to vector<1x128xf32>
    %46 = vector.broadcast %45 : vector<1x128xf32> to vector<32x128xf32>
    %47 = arith.mulf %44, %46 : vector<32x128xf32>
    %48 = arith.addf %42, %47 : vector<32x128xf32>
    %c1 = arith.constant 1 : index
    %c0_20 = arith.constant 0 : index
    %c0_21 = arith.constant 0 : index
    %49 = vector.load %arg5[%c1, %c0_20, %c0_21] : memref<16x32x128xf32, #tpu.memory_space<vmem>>, vector<1x32x128xf32>
    %50 = vector.shape_cast %49 : vector<1x32x128xf32> to vector<32x128xf32>
    %51 = vector.extract_strided_slice %41 {offsets = [1, 0], sizes = [1, 128], strides = [1, 1]} : vector<16x128xf32> to vector<1x128xf32>
    %52 = vector.broadcast %51 : vector<1x128xf32> to vector<32x128xf32>
    %53 = arith.mulf %50, %52 : vector<32x128xf32>
    %54 = arith.addf %48, %53 : vector<32x128xf32>
    %c2 = arith.constant 2 : index
    %c0_22 = arith.constant 0 : index
    %c0_23 = arith.constant 0 : index
    %55 = vector.load %arg5[%c2, %c0_22, %c0_23] : memref<16x32x128xf32, #tpu.memory_space<vmem>>, vector<1x32x128xf32>
    %56 = vector.shape_cast %55 : vector<1x32x128xf32> to vector<32x128xf32>
    %57 = vector.extract_strided_slice %41 {offsets = [2, 0], sizes = [1, 128], strides = [1, 1]} : vector<16x128xf32> to vector<1x128xf32>
    %58 = vector.broadcast %57 : vector<1x128xf32> to vector<32x128xf32>
    %59 = arith.mulf %56, %58 : vector<32x128xf32>
    %60 = arith.addf %54, %59 : vector<32x128xf32>
    %c3 = arith.constant 3 : index
    %c0_24 = arith.constant 0 : index
    %c0_25 = arith.constant 0 : index
    %61 = vector.load %arg5[%c3, %c0_24, %c0_25] : memref<16x32x128xf32, #tpu.memory_space<vmem>>, vector<1x32x128xf32>
    %62 = vector.shape_cast %61 : vector<1x32x128xf32> to vector<32x128xf32>
    %63 = vector.extract_strided_slice %41 {offsets = [3, 0], sizes = [1, 128], strides = [1, 1]} : vector<16x128xf32> to vector<1x128xf32>
    %64 = vector.broadcast %63 : vector<1x128xf32> to vector<32x128xf32>
    %65 = arith.mulf %62, %64 : vector<32x128xf32>
    %66 = arith.addf %60, %65 : vector<32x128xf32>
    %c4 = arith.constant 4 : index
    %c0_26 = arith.constant 0 : index
    %c0_27 = arith.constant 0 : index
    %67 = vector.load %arg5[%c4, %c0_26, %c0_27] : memref<16x32x128xf32, #tpu.memory_space<vmem>>, vector<1x32x128xf32>
    %68 = vector.shape_cast %67 : vector<1x32x128xf32> to vector<32x128xf32>
    %69 = vector.extract_strided_slice %41 {offsets = [4, 0], sizes = [1, 128], strides = [1, 1]} : vector<16x128xf32> to vector<1x128xf32>
    %70 = vector.broadcast %69 : vector<1x128xf32> to vector<32x128xf32>
    %71 = arith.mulf %68, %70 : vector<32x128xf32>
    %72 = arith.addf %66, %71 : vector<32x128xf32>
    %c5 = arith.constant 5 : index
    %c0_28 = arith.constant 0 : index
    %c0_29 = arith.constant 0 : index
    %73 = vector.load %arg5[%c5, %c0_28, %c0_29] : memref<16x32x128xf32, #tpu.memory_space<vmem>>, vector<1x32x128xf32>
    %74 = vector.shape_cast %73 : vector<1x32x128xf32> to vector<32x128xf32>
    %75 = vector.extract_strided_slice %41 {offsets = [5, 0], sizes = [1, 128], strides = [1, 1]} : vector<16x128xf32> to vector<1x128xf32>
    %76 = vector.broadcast %75 : vector<1x128xf32> to vector<32x128xf32>
    %77 = arith.mulf %74, %76 : vector<32x128xf32>
    %78 = arith.addf %72, %77 : vector<32x128xf32>
    %c6 = arith.constant 6 : index
    %c0_30 = arith.constant 0 : index
    %c0_31 = arith.constant 0 : index
    %79 = vector.load %arg5[%c6, %c0_30, %c0_31] : memref<16x32x128xf32, #tpu.memory_space<vmem>>, vector<1x32x128xf32>
    %80 = vector.shape_cast %79 : vector<1x32x128xf32> to vector<32x128xf32>
    %81 = vector.extract_strided_slice %41 {offsets = [6, 0], sizes = [1, 128], strides = [1, 1]} : vector<16x128xf32> to vector<1x128xf32>
    %82 = vector.broadcast %81 : vector<1x128xf32> to vector<32x128xf32>
    %83 = arith.mulf %80, %82 : vector<32x128xf32>
    %84 = arith.addf %78, %83 : vector<32x128xf32>
    %c7 = arith.constant 7 : index
    %c0_32 = arith.constant 0 : index
    %c0_33 = arith.constant 0 : index
    %85 = vector.load %arg5[%c7, %c0_32, %c0_33] : memref<16x32x128xf32, #tpu.memory_space<vmem>>, vector<1x32x128xf32>
    %86 = vector.shape_cast %85 : vector<1x32x128xf32> to vector<32x128xf32>
    %87 = vector.extract_strided_slice %41 {offsets = [7, 0], sizes = [1, 128], strides = [1, 1]} : vector<16x128xf32> to vector<1x128xf32>
    %88 = vector.broadcast %87 : vector<1x128xf32> to vector<32x128xf32>
    %89 = arith.mulf %86, %88 : vector<32x128xf32>
    %90 = arith.addf %84, %89 : vector<32x128xf32>
    %c8 = arith.constant 8 : index
    %c0_34 = arith.constant 0 : index
    %c0_35 = arith.constant 0 : index
    %91 = vector.load %arg5[%c8, %c0_34, %c0_35] : memref<16x32x128xf32, #tpu.memory_space<vmem>>, vector<1x32x128xf32>
    %92 = vector.shape_cast %91 : vector<1x32x128xf32> to vector<32x128xf32>
    %93 = vector.extract_strided_slice %41 {offsets = [8, 0], sizes = [1, 128], strides = [1, 1]} : vector<16x128xf32> to vector<1x128xf32>
    %94 = vector.broadcast %93 : vector<1x128xf32> to vector<32x128xf32>
    %95 = arith.mulf %92, %94 : vector<32x128xf32>
    %96 = arith.addf %90, %95 : vector<32x128xf32>
    %c9 = arith.constant 9 : index
    %c0_36 = arith.constant 0 : index
    %c0_37 = arith.constant 0 : index
    %97 = vector.load %arg5[%c9, %c0_36, %c0_37] : memref<16x32x128xf32, #tpu.memory_space<vmem>>, vector<1x32x128xf32>
    %98 = vector.shape_cast %97 : vector<1x32x128xf32> to vector<32x128xf32>
    %99 = vector.extract_strided_slice %41 {offsets = [9, 0], sizes = [1, 128], strides = [1, 1]} : vector<16x128xf32> to vector<1x128xf32>
    %100 = vector.broadcast %99 : vector<1x128xf32> to vector<32x128xf32>
    %101 = arith.mulf %98, %100 : vector<32x128xf32>
    %102 = arith.addf %96, %101 : vector<32x128xf32>
    %c10 = arith.constant 10 : index
    %c0_38 = arith.constant 0 : index
    %c0_39 = arith.constant 0 : index
    %103 = vector.load %arg5[%c10, %c0_38, %c0_39] : memref<16x32x128xf32, #tpu.memory_space<vmem>>, vector<1x32x128xf32>
    %104 = vector.shape_cast %103 : vector<1x32x128xf32> to vector<32x128xf32>
    %105 = vector.extract_strided_slice %41 {offsets = [10, 0], sizes = [1, 128], strides = [1, 1]} : vector<16x128xf32> to vector<1x128xf32>
    %106 = vector.broadcast %105 : vector<1x128xf32> to vector<32x128xf32>
    %107 = arith.mulf %104, %106 : vector<32x128xf32>
    %108 = arith.addf %102, %107 : vector<32x128xf32>
    %c11 = arith.constant 11 : index
    %c0_40 = arith.constant 0 : index
    %c0_41 = arith.constant 0 : index
    %109 = vector.load %arg5[%c11, %c0_40, %c0_41] : memref<16x32x128xf32, #tpu.memory_space<vmem>>, vector<1x32x128xf32>
    %110 = vector.shape_cast %109 : vector<1x32x128xf32> to vector<32x128xf32>
    %111 = vector.extract_strided_slice %41 {offsets = [11, 0], sizes = [1, 128], strides = [1, 1]} : vector<16x128xf32> to vector<1x128xf32>
    %112 = vector.broadcast %111 : vector<1x128xf32> to vector<32x128xf32>
    %113 = arith.mulf %110, %112 : vector<32x128xf32>
    %114 = arith.addf %108, %113 : vector<32x128xf32>
    %c12 = arith.constant 12 : index
    %c0_42 = arith.constant 0 : index
    %c0_43 = arith.constant 0 : index
    %115 = vector.load %arg5[%c12, %c0_42, %c0_43] : memref<16x32x128xf32, #tpu.memory_space<vmem>>, vector<1x32x128xf32>
    %116 = vector.shape_cast %115 : vector<1x32x128xf32> to vector<32x128xf32>
    %117 = vector.extract_strided_slice %41 {offsets = [12, 0], sizes = [1, 128], strides = [1, 1]} : vector<16x128xf32> to vector<1x128xf32>
    %118 = vector.broadcast %117 : vector<1x128xf32> to vector<32x128xf32>
    %119 = arith.mulf %116, %118 : vector<32x128xf32>
    %120 = arith.addf %114, %119 : vector<32x128xf32>
    %c13 = arith.constant 13 : index
    %c0_44 = arith.constant 0 : index
    %c0_45 = arith.constant 0 : index
    %121 = vector.load %arg5[%c13, %c0_44, %c0_45] : memref<16x32x128xf32, #tpu.memory_space<vmem>>, vector<1x32x128xf32>
    %122 = vector.shape_cast %121 : vector<1x32x128xf32> to vector<32x128xf32>
    %123 = vector.extract_strided_slice %41 {offsets = [13, 0], sizes = [1, 128], strides = [1, 1]} : vector<16x128xf32> to vector<1x128xf32>
    %124 = vector.broadcast %123 : vector<1x128xf32> to vector<32x128xf32>
    %125 = arith.mulf %122, %124 : vector<32x128xf32>
    %126 = arith.addf %120, %125 : vector<32x128xf32>
    %c14 = arith.constant 14 : index
    %c0_46 = arith.constant 0 : index
    %c0_47 = arith.constant 0 : index
    %127 = vector.load %arg5[%c14, %c0_46, %c0_47] : memref<16x32x128xf32, #tpu.memory_space<vmem>>, vector<1x32x128xf32>
    %128 = vector.shape_cast %127 : vector<1x32x128xf32> to vector<32x128xf32>
    %129 = vector.extract_strided_slice %41 {offsets = [14, 0], sizes = [1, 128], strides = [1, 1]} : vector<16x128xf32> to vector<1x128xf32>
    %130 = vector.broadcast %129 : vector<1x128xf32> to vector<32x128xf32>
    %131 = arith.mulf %128, %130 : vector<32x128xf32>
    %132 = arith.addf %126, %131 : vector<32x128xf32>
    %c15 = arith.constant 15 : index
    %c0_48 = arith.constant 0 : index
    %c0_49 = arith.constant 0 : index
    %133 = vector.load %arg5[%c15, %c0_48, %c0_49] : memref<16x32x128xf32, #tpu.memory_space<vmem>>, vector<1x32x128xf32>
    %134 = vector.shape_cast %133 : vector<1x32x128xf32> to vector<32x128xf32>
    %135 = vector.extract_strided_slice %41 {offsets = [15, 0], sizes = [1, 128], strides = [1, 1]} : vector<16x128xf32> to vector<1x128xf32>
    %136 = vector.broadcast %135 : vector<1x128xf32> to vector<32x128xf32>
    %137 = arith.mulf %134, %136 : vector<32x128xf32>
    %138 = arith.addf %132, %137 : vector<32x128xf32>
    %139 = tpu.iota {dimensions = array<i32: 1>} : vector<32x128xi32>
    %c0_i32 = arith.constant 0 : i32
    %140 = vector.broadcast %c0_i32 : i32 to vector<32x128xi32>
    %141 = arith.cmpi sge, %139, %140 : vector<32x128xi32>
    %c55_i32 = arith.constant 55 : i32
    %142 = vector.broadcast %c55_i32 : i32 to vector<32x128xi32>
    %143 = arith.cmpi slt, %139, %142 : vector<32x128xi32>
    %144 = arith.andi %141, %143 : vector<32x128xi1>
    %145 = arith.extui %144 : vector<32x128xi1> to vector<32x128xi32>
    %146 = arith.sitofp %145 : vector<32x128xi32> to vector<32x128xf32>
    %147 = arith.mulf %138, %146 : vector<32x128xf32>
    %cst_50 = arith.constant dense<0.000000e+00> : vector<32xf32>
    %148 = vector.multi_reduction <add>, %147, %cst_50 [1] : vector<32x128xf32> to vector<32xf32>
    %149 = vector.shape_cast %148 : vector<32xf32> to vector<32x1xf32>
    %c55_i32_51 = arith.constant 55 : i32
    %150 = vector.broadcast %c55_i32_51 : i32 to vector<32x128xi32>
    %151 = arith.cmpi sge, %139, %150 : vector<32x128xi32>
    %c110_i32_52 = arith.constant 110 : i32
    %152 = vector.broadcast %c110_i32_52 : i32 to vector<32x128xi32>
    %153 = arith.cmpi slt, %139, %152 : vector<32x128xi32>
    %154 = arith.andi %151, %153 : vector<32x128xi1>
    %155 = arith.extui %154 : vector<32x128xi1> to vector<32x128xi32>
    %156 = arith.sitofp %155 : vector<32x128xi32> to vector<32x128xf32>
    %157 = arith.mulf %138, %156 : vector<32x128xf32>
    %cst_53 = arith.constant dense<0.000000e+00> : vector<32xf32>
    %158 = vector.multi_reduction <add>, %157, %cst_53 [1] : vector<32x128xf32> to vector<32xf32>
    %159 = vector.shape_cast %158 : vector<32xf32> to vector<32x1xf32>
    %160 = tpu.concatenate %149, %159 in 1 : vector<32x1xf32>, vector<32x1xf32> -> vector<32x2xf32>
    %c0_54 = arith.constant 0 : index
    %c0_55 = arith.constant 0 : index
    %161 = vector.load %arg6[%c0_54, %c0_55] : memref<32x1xf32, #tpu.memory_space<vmem>>, vector<32x1xf32>
    %162 = vector.broadcast %161 : vector<32x1xf32> to vector<32x2xf32>
    %163 = arith.addf %160, %162 : vector<32x2xf32>
    %cst_56 = arith.constant dense<0.000000e+00> : vector<32xf32>
    %164 = vector.multi_reduction <add>, %163, %cst_56 [1] : vector<32x2xf32> to vector<32xf32>
    %165 = vector.shape_cast %164 : vector<32xf32> to vector<32x1xf32>
    %cst_57 = arith.constant 2.000000e+00 : f32
    %166 = vector.broadcast %cst_57 : f32 to vector<32x1xf32>
    %167 = arith.divf %165, %166 : vector<32x1xf32>
    %168 = vector.broadcast %167 : vector<32x1xf32> to vector<32x2xf32>
    %169 = arith.subf %163, %168 : vector<32x2xf32>
    %170 = arith.mulf %169, %169 : vector<32x2xf32>
    %cst_58 = arith.constant dense<0.000000e+00> : vector<32xf32>
    %171 = vector.multi_reduction <add>, %170, %cst_58 [1] : vector<32x2xf32> to vector<32xf32>
    %172 = vector.shape_cast %171 : vector<32xf32> to vector<32x1xf32>
    %cst_59 = arith.constant 2.000000e+00 : f32
    %173 = vector.broadcast %cst_59 : f32 to vector<32x1xf32>
    %174 = arith.divf %172, %173 : vector<32x1xf32>
    %c0_60 = arith.constant 0 : index
    %c0_61 = arith.constant 0 : index
    %175 = vector.load %arg7[%c0_60, %c0_61] : memref<32x1xf32, #tpu.memory_space<vmem>>, vector<32x1xf32>
    %176 = vector.broadcast %175 : vector<32x1xf32> to vector<32x2xf32>
    %177 = arith.mulf %176, %169 : vector<32x2xf32>
    %cst_62 = arith.constant 9.99999974E-6 : f32
    %178 = vector.broadcast %cst_62 : f32 to vector<32x1xf32>
    %179 = arith.addf %174, %178 : vector<32x1xf32>
    %180 = math.rsqrt %179 : vector<32x1xf32>
    %181 = vector.broadcast %180 : vector<32x1xf32> to vector<32x2xf32>
    %182 = arith.mulf %177, %181 : vector<32x2xf32>
    %c0_63 = arith.constant 0 : index
    %c0_64 = arith.constant 0 : index
    %183 = vector.load %arg8[%c0_63, %c0_64] : memref<32x1xf32, #tpu.memory_space<vmem>>, vector<32x1xf32>
    %184 = vector.broadcast %183 : vector<32x1xf32> to vector<32x2xf32>
    %185 = arith.addf %182, %184 : vector<32x2xf32>
    %cst_65 = arith.constant 0.000000e+00 : f32
    %186 = vector.broadcast %cst_65 : f32 to vector<32x2xf32>
    %187 = arith.cmpf ogt, %185, %186 : vector<32x2xf32>
    %cst_66 = arith.constant 2.000000e-01 : f32
    %188 = vector.broadcast %cst_66 : f32 to vector<32x2xf32>
    %189 = arith.mulf %188, %185 : vector<32x2xf32>
    %190 = arith.select %187, %185, %189 : vector<32x2xi1>, vector<32x2xf32>
    %c0_67 = arith.constant 0 : index
    %c0_68 = arith.constant 0 : index
    %191 = vector.load %arg9[%c0_67, %c0_68] : memref<32x1xf32, #tpu.memory_space<vmem>>, vector<32x1xf32>
    %192 = vector.broadcast %191 : vector<32x1xf32> to vector<32x2xf32>
    %193 = arith.mulf %190, %192 : vector<32x2xf32>
    %cst_69 = arith.constant dense<0.000000e+00> : vector<2xf32>
    %194 = vector.multi_reduction <add>, %193, %cst_69 [0] : vector<32x2xf32> to vector<2xf32>
    %195 = vector.shape_cast %194 : vector<2xf32> to vector<1x2xf32>
    %c0_70 = arith.constant 0 : index
    %c0_71 = arith.constant 0 : index
    %196 = vector.load %arg10[%c0_70, %c0_71] : memref<1x1xf32, #tpu.memory_space<vmem>>, vector<1x1xf32>
    %197 = vector.broadcast %196 : vector<1x1xf32> to vector<1x2xf32>
    %198 = arith.addf %195, %197 : vector<1x2xf32>
    %199 = math.absf %198 : vector<1x2xf32>
    %cst_72 = arith.constant 0.000000e+00 : f32
    %200 = vector.broadcast %cst_72 : f32 to vector<1x2xf32>
    %201 = arith.subf %200, %199 : vector<1x2xf32>
    %202 = math.exp %201 : vector<1x2xf32>
    %cst_73 = arith.constant 0.000000e+00 : f32
    %203 = vector.broadcast %cst_73 : f32 to vector<1x2xf32>
    %204 = arith.cmpf oge, %198, %203 : vector<1x2xf32>
    %cst_74 = arith.constant 1.000000e+00 : f32
    %205 = vector.broadcast %cst_74 : f32 to vector<1x2xf32>
    %206 = arith.addf %205, %202 : vector<1x2xf32>
    %cst_75 = arith.constant 1.000000e+00 : f32
    %207 = vector.broadcast %cst_75 : f32 to vector<1x2xf32>
    %208 = arith.divf %207, %206 : vector<1x2xf32>
    %cst_76 = arith.constant 1.000000e+00 : f32
    %209 = vector.broadcast %cst_76 : f32 to vector<1x2xf32>
    %210 = arith.addf %209, %202 : vector<1x2xf32>
    %211 = arith.divf %202, %210 : vector<1x2xf32>
    %212 = arith.select %204, %208, %211 : vector<1x2xi1>, vector<1x2xf32>
    %c0_77 = arith.constant 0 : index
    %c0_78 = arith.constant 0 : index
    %213 = vector.load %arg11[%c0_77, %c0_78] : memref<1x2xf32, #tpu.memory_space<vmem>>, vector<1x2xf32>
    tpu.vector_store %arg11[%c0_77, %c0_78], %212 {strides = array<i32>} : memref<1x2xf32, #tpu.memory_space<vmem>>, vector<1x2xf32>,
    return
  }
}

</mosaic_0001>

<bundles_post_ra>
// kernel: discriminator_forward.2
= control target key start
LH: loop header
LB: loop body
LE: loop exit
PB: predicated region body
PF: predicated region fallthrough
CT: control target
= control target key end

     0   :  { %vm588_vm0 = vcmask 261120   ;;  %s1967_s0 = inlined_call_operand.vmem [shape: bf16[160,1152], index: 0, kind: input, shape index: {}]   ;;  %s1968_s1 = inlined_call_operand.vmem [shape: bf16[8,160], index: 1, kind: input, shape index: {}]   ;;  %s1969_s2 = inlined_call_operand.vmem [shape: f32[8,1], index: 2, kind: input, shape index: {}]   ;;  %s1970_s3 = inlined_call_operand.vmem [shape: f32[8,1152], index: 3, kind: output, shape index: {}]  }
   0x1   :  { %v1298_v0 = vld [vmem:[%s1967_s0 + $0x1fc] sm:$0xf]  ;;  %v1122_v1 = vld [vmem:[%s1967_s0 + $0x21c] sm:$0xf0]  ;;  %v1316_v2 = vld [vmem:[%s1967_s0 + $0x28c] sm:$0xf] }
   0x2   :  { %v1125_v3 = vor.u32 %v1298_v0, %v1122_v1  ;;  %v1194_v4 = vld [vmem:[%s1967_s0 + $0x2ac] sm:$0xf0]  ;;  %v1120_v5 = vld [vmem:[%s1967_s0 + $0x1f8] sm:$0xf]  ;;  %v1302_v6 = vld [vmem:[%s1967_s0 + $0x218] sm:$0xf0] }
   0x3   :  { %v1197_v7 = vor.u32 %v1316_v2, %v1194_v4  ;;  %v1121_v8 = vor.u32 %v1302_v6, %v1120_v5  ;;  %v1289_v9 = vld [vmem:[%s1967_s0 + $0x1b4] sm:$0xf]  ;;  %v1086_v10 = vld [vmem:[%s1967_s0 + $0x1d4] sm:$0xf0]  ;;  %v1307_v11 = vld [vmem:[%s1967_s0 + $0x244] sm:$0xf] }
   0x4   :  { %618 = vmatpush.bf16.msra.mxu2 %v1125_v3  ;;  %v1089_v12 = vor.u32 %v1289_v9, %v1086_v10  ;;  %v1158_v13 = vld [vmem:[%s1967_s0 + $0x264] sm:$0xf0]  ;;  %v1084_v14 = vld [vmem:[%s1967_s0 + $0x1b0] sm:$0xf]  ;;  %v1293_v15 = vld [vmem:[%s1967_s0 + $0x1d0] sm:$0xf0] }
   0x5   :  { %637 = vmatpush.bf16.msra.mxu3 %v1197_v7  ;;  %592 = vmatpush.bf16.msra.mxu0 %v1121_v8  ;;  %v1161_v16 = vor.u32 %v1307_v11, %v1158_v13  ;;  %v1085_v17 = vor.u32 %v1293_v15, %v1084_v14  ;;  %v1200_v18 = vld [vmem:[%s1967_s0 + $0x290] sm:$0xf]  ;;  %v1321_v19 = vld [vmem:[%s1967_s0 + $0x2b0] sm:$0xf0]  ;;  %v1192_v20 = vld [vmem:[%s1967_s0 + $0x288] sm:$0xf] }
   0x6   :  { %v1201_v21 = vor.u32 %v1321_v19, %v1200_v18  ;;  %v1320_v22 = vld [vmem:[%s1967_s0 + $0x2a8] sm:$0xf0]  ;;  %v1050_v24 = vld [vmem:[%s1967_s0 + $0x18c] sm:$0xf0]  ;;  %v1048_v26 = vld [vmem:[%s1967_s0 + $0x168] sm:$0xf] }
   0x7   :  { %v1280_v23 = vld [vmem:[%s1967_s0 + $0x16c] sm:$0xf]  ;;  %v1193_v25 = vor.u32 %v1320_v22, %v1192_v20  ;;  %v1164_v28 = vld [vmem:[%s1967_s0 + $0x248] sm:$0xf]  ;;  %v1417_v31 = vld [vmem:[%s1968_s1] sm:$0xff] }
   0x8   :  { %v1284_v27 = vld [vmem:[%s1967_s0 + $0x188] sm:$0xf0]  ;;  %619 = vmatpush.bf16.msra.mxu2 %v1089_v12  ;;  %v1053_v29 = vor.u32 %v1280_v23, %v1050_v24  ;;  %v1299_v32 = vld [vmem:[%s1967_s0 + $0x204] sm:$0xf]  ;;  %v124_v34 = vunpack.c.h.b16 %v1417_v31  ;;  %v1130_v35 = vld [vmem:[%s1967_s0 + $0x224] sm:$0xf0] }
   0x9   :  { %v1312_v30 = vld [vmem:[%s1967_s0 + $0x268] sm:$0xf0]  ;;  %638 = vmatpush.bf16.msra.mxu3 %v1161_v16  ;;  %593 = vmatpush.bf16.msra.mxu0 %v1085_v17  ;;  %v1049_v33 = vor.u32 %v1284_v27, %v1048_v26  ;;  %v1156_v36 = vld [vmem:[%s1967_s0 + $0x240] sm:$0xf]  ;;  %v1311_v37 = vld [vmem:[%s1967_s0 + $0x260] sm:$0xf0]  ;;  %v1133_v44 = vor.u32 %v1299_v32, %v1130_v35 }
   0xa   :  { %611 = vmatpush.bf16.msra.mxu1 %v1193_v25  ;;  %v1165_v38 = vor.u32 %v1312_v30, %v1164_v28  ;;  %v1157_v39 = vor.u32 %v1311_v37, %v1156_v36  ;;  %v1271_v40 = vld [vmem:[%s1967_s0 + $0x124] sm:$0xf]  ;;  %v1014_v41 = vld [vmem:[%s1967_s0 + $0x144] sm:$0xf0]  ;;  %v1012_v42 = vld [vmem:[%s1967_s0 + $0x120] sm:$0xf]  ;;  %v1441_v43 = vpack.c.b16 %v124_v34, %v124_v34  ;;  %v123_v36 = vunpack.c.l.b16 %v1417_v31 }
   0xb   :  { %v1275_v45 = vld [vmem:[%s1967_s0 + $0x140] sm:$0xf0]  ;;  %v1128_v46 = vld [vmem:[%s1967_s0 + $0x200] sm:$0xf]  ;;  %v1017_v48 = vor.u32 %v1271_v40, %v1014_v41  ;;  %v1290_v50 = vld [vmem:[%s1967_s0 + $0x1bc] sm:$0xf] }
   0xc   :  { %v1303_v47 = vld [vmem:[%s1967_s0 + $0x220] sm:$0xf0]  ;;  %620 = vmatpush.bf16.msra.mxu2 %v1053_v29  ;;  %v1094_v51 = vld [vmem:[%s1967_s0 + $0x1dc] sm:$0xf0]  ;;  %1227 = vmatmul.msk.bf16.vlgmr.msra.gmra.mxu3 %vm588_vm0, %v1441_v43  ;;  %v1013_v52 = vor.u32 %v1275_v45, %v1012_v42  ;;  %v1262_v53 = vld [vmem:[%s1967_s0 + $0xdc] sm:$0xf] }
   0xd   :  { %663 = vmatpush.bf16.msrb.mxu3 %v1201_v21  ;;  %v1129_v49 = vor.u32 %v1303_v47, %v1128_v46  ;;  %594 = vmatpush.bf16.msra.mxu0 %v1049_v33  ;;  %v978_v54 = vld [vmem:[%s1967_s0 + $0xfc] sm:$0xf0]  ;;  %v976_v55 = vld [vmem:[%s1967_s0 + $0xd8] sm:$0xf]  ;;  %v1266_v56 = vld [vmem:[%s1967_s0 + $0xf8] sm:$0xf0]  ;;  %v1097_v59 = vor.u32 %v1290_v50, %v1094_v51  ;;  %v1585_v50 = vpack.c.b16 %v123_v36, %v123_v36 }
   0xe   :  { %612 = vmatpush.bf16.msra.mxu1 %v1157_v39  ;;  %v1092_v57 = vld [vmem:[%s1967_s0 + $0x1b8] sm:$0xf]  ;;  %v1294_v58 = vld [vmem:[%s1967_s0 + $0x1d8] sm:$0xf0]  ;;  %v981_v61 = vor.u32 %v1262_v53, %v978_v54  ;;  %v1281_v62 = vld [vmem:[%s1967_s0 + $0x174] sm:$0xf]  ;;  %v977_v1 = vor.u32 %v1266_v56, %v976_v55 }
   0xf   :  { %v1093_v60 = vor.u32 %v1294_v58, %v1092_v57  ;;  %v1058_v63 = vld [vmem:[%s1967_s0 + $0x194] sm:$0xf0]  ;;  %v1056_v0 = vld [vmem:[%s1967_s0 + $0x170] sm:$0xf]  ;;  %v1253_v2 = vld [vmem:[%s1967_s0 + $0x94] sm:$0xf] }
  0x10   :  { %621 = vmatpush.bf16.msra.mxu2 %v1017_v48  ;;  %v942_v3 = vld [vmem:[%s1967_s0 + $0xb4] sm:$0xf0]  ;;  %v1285_v4 = vld [vmem:[%s1967_s0 + $0x190] sm:$0xf0]  ;;  %v940_v5 = vld [vmem:[%s1967_s0 + $0x90] sm:$0xf]  ;;  %v1061_v7 = vor.u32 %v1281_v62, %v1058_v63 }
  0x11   :  { %664 = vmatpush.bf16.msrb.mxu3 %v1165_v38  ;;  %595 = vmatpush.bf16.msra.mxu0 %v1013_v52  ;;  %v1257_v6 = vld [vmem:[%s1967_s0 + $0xb0] sm:$0xf0]  ;;  %v1057_v8 = vor.u32 %v1285_v4, %v1056_v0  ;;  %v1272_v9 = vld [vmem:[%s1967_s0 + $0x12c] sm:$0xf]  ;;  %v945_v10 = vor.u32 %v1253_v2, %v942_v3  ;;  %v1022_v11 = vld [vmem:[%s1967_s0 + $0x14c] sm:$0xf0] }
  0x12   :  { %644 = vmatpush.bf16.msrb.mxu1 %v1129_v49  ;;  %v1020_v12 = vld [vmem:[%s1967_s0 + $0x128] sm:$0xf]  ;;  %v1276_v13 = vld [vmem:[%s1967_s0 + $0x148] sm:$0xf0]  ;;  %v941_v14 = vor.u32 %v1257_v6, %v940_v5  ;;  %v906_v16 = vld [vmem:[%s1967_s0 + $0x6c] sm:$0xf0]  ;;  %v1025_v19 = vor.u32 %v1272_v9, %v1022_v11 }
  0x13   :  { %1226 = vmatmul.msk.bf16.vlgmr.msra.gmra.mxu1 %vm588_vm0, %v1441_v43  ;;  %v1244_v15 = vld [vmem:[%s1967_s0 + $0x4c] sm:$0xf]  ;;  %v904_v17 = vld [vmem:[%s1967_s0 + $0x48] sm:$0xf]  ;;  %v1021_v20 = vor.u32 %v1276_v13, %v1020_v12  ;;  %v1263_v21 = vld [vmem:[%s1967_s0 + $0xe4] sm:$0xf] }
  0x14   :  { %622 = vmatpush.bf16.msra.mxu2 %v981_v61  ;;  %v1248_v18 = vld [vmem:[%s1967_s0 + $0x68] sm:$0xf0]  ;;  %v909_v22 = vor.u32 %v1244_v15, %v906_v16  ;;  %v986_v23 = vld [vmem:[%s1967_s0 + $0x104] sm:$0xf0]  ;;  %v984_v24 = vld [vmem:[%s1967_s0 + $0xe0] sm:$0xf] }
  0x15   :  { %670 = vmatpush.bf16.msra.mxu3 %v1133_v44  ;;  %596 = vmatpush.bf16.msra.mxu0 %v977_v1  ;;  %v1267_v25 = vld [vmem:[%s1967_s0 + $0x100] sm:$0xf0]  ;;  %v905_v26 = vor.u32 %v1248_v18, %v904_v17  ;;  %v870_v28 = vld [vmem:[%s1967_s0 + $0x24] sm:$0xf0]  ;;  %v868_v29 = vld [vmem:[%s1967_s0] sm:$0xf]  ;;  %v989_v34 = vor.u32 %v1263_v21, %v986_v23 }
  0x16   :  { %645 = vmatpush.bf16.msrb.mxu1 %v1093_v60  ;;  %v1235_v27 = vld [vmem:[%s1967_s0 + $0x4] sm:$0xf]  ;;  %v1136_v32 = vld [vmem:[%s1967_s0 + $0x208] sm:$0xf]  ;;  %v1304_v33 = vld [vmem:[%s1967_s0 + $0x228] sm:$0xf0]  ;;  %v985_v35 = vor.u32 %v1267_v25, %v984_v24 }
  0x17   :  { %v1239_v30 = vld [vmem:[%s1967_s0 + $0x20] sm:$0xf0]  ;;  %v873_v37 = vor.u32 %v1235_v27, %v870_v28  ;;  %v1254_v38 = vld [vmem:[%s1967_s0 + $0x9c] sm:$0xf]  ;;  %v950_v39 = vld [vmem:[%s1967_s0 + $0xbc] sm:$0xf0]  ;;  %v1137_v42 = vor.u32 %v1304_v33, %v1136_v32 }
  0x18   :  { %623 = vmatpush.bf16.msra.mxu2 %v945_v10  ;;  %v1317_v40 = vld [vmem:[%s1967_s0 + $0x294] sm:$0xf]  ;;  %v869_v41 = vor.u32 %v1239_v30, %v868_v29  ;;  %v948_v31 = vld [vmem:[%s1967_s0 + $0x98] sm:$0xf]  ;;  %v1258_v44 = vld [vmem:[%s1967_s0 + $0xb8] sm:$0xf0]  ;;  %v953_v49 = vor.u32 %v1254_v38, %v950_v39 }
  0x19   :  { %671 = vmatpush.bf16.msra.mxu3 %v1097_v59  ;;  %597 = vmatpush.bf16.msra.mxu0 %v941_v14  ;;  %v1202_v45 = vld [vmem:[%s1967_s0 + $0x2b4] sm:$0xf0]  ;;  %v1100_v46 = vld [vmem:[%s1967_s0 + $0x1c0] sm:$0xf]  ;;  %v1295_v47 = vld [vmem:[%s1967_s0 + $0x1e0] sm:$0xf0]  ;;  %v949_v54 = vor.u32 %v1258_v44, %v948_v31 }
  0x1a   :  { %646 = vmatpush.bf16.msrb.mxu1 %v1057_v8  ;;  %v1205_v48 = vor.u32 %v1317_v40, %v1202_v45  ;;  %v1245_v51 = vld [vmem:[%s1967_s0 + $0x54] sm:$0xf]  ;;  %v116_v52 = vld [vmem:[%s1969_s2] sm:$0xff]  ;;  %v1308_v53 = vld [vmem:[%s1967_s0 + $0x24c] sm:$0xf]  ;;  %v1327_v57 = vmov 0   ;;  %v1101_v59 = vor.u32 %v1295_v47, %v1100_v46 }
  0x1b   :  { %v914_v55 = vld [vmem:[%s1967_s0 + $0x74] sm:$0xf0]  ;;  %v912_v56 = vld [vmem:[%s1967_s0 + $0x50] sm:$0xf]  ;;  %1326 = vset.pattern.permute.xlu0 %v1327_v57  ;;  %v1249_v60 = vld [vmem:[%s1967_s0 + $0x70] sm:$0xf0] }
  0x1c   :  { %624 = vmatpush.bf16.msra.mxu2 %v909_v22  ;;  %1228 = vmatmul.msk.bf16.vlgmr.msrb.gmra.mxu3 %vm588_vm0, %v1441_v43  ;;  %v1166_v58 = vld [vmem:[%s1967_s0 + $0x26c] sm:$0xf0]  ;;  %v1300_v61 = vld [vmem:[%s1967_s0 + $0x20c] sm:$0xf]  ;;  %v1064_v63 = vld [vmem:[%s1967_s0 + $0x178] sm:$0xf]  ;;  %v917_v2 = vor.u32 %v1245_v51, %v914_v55 }
  0x1d   :  { %672 = vmatpush.bf16.msra.mxu3 %v1061_v7  ;;  %598 = vmatpush.bf16.msra.mxu0 %v905_v26  ;;  %v1138_v62 = vld [vmem:[%s1967_s0 + $0x22c] sm:$0xf0]  ;;  %v1286_v0 = vld [vmem:[%s1967_s0 + $0x198] sm:$0xf0]  ;;  %v1169_v1 = vor.u32 %v1308_v53, %v1166_v58  ;;  %v1236_v3 = vld [vmem:[%s1967_s0 + $0xc] sm:$0xf]  ;;  %v913_v7 = vor.u32 %v1249_v60, %v912_v56 }
  0x1e   :  { %647 = vmatpush.bf16.msrb.mxu1 %v1021_v20  ;;  %119 = vperm.xlu0 %1326, %v116_v52   ;;  %v878_v4 = vld [vmem:[%s1967_s0 + $0x2c] sm:$0xf0]  ;;  %v1141_v6 = vor.u32 %v1300_v61, %v1138_v62  ;;  %v1305_v8 = vld [vmem:[%s1967_s0 + $0x230] sm:$0xf0]  ;;  %v1291_v9 = vld [vmem:[%s1967_s0 + $0x1c4] sm:$0xf]  ;;  %v1065_v11 = vor.u32 %v1286_v0, %v1064_v63 }
  0x1f   :  { %v1144_v5 = vld [vmem:[%s1967_s0 + $0x210] sm:$0xf]  ;;  %v1102_v10 = vld [vmem:[%s1967_s0 + $0x1e4] sm:$0xf0]  ;;  %v1240_v13 = vld [vmem:[%s1967_s0 + $0x28] sm:$0xf0]  ;;  %v881_v18 = vor.u32 %v1236_v3, %v878_v4 }
  0x20   :  { %625 = vmatpush.bf16.msra.mxu2 %v873_v37  ;;  %v876_v12 = vld [vmem:[%s1967_s0 + $0x8] sm:$0xf]  ;;  %v1028_v14 = vld [vmem:[%s1967_s0 + $0x130] sm:$0xf]  ;;  %v1277_v15 = vld [vmem:[%s1967_s0 + $0x150] sm:$0xf0]  ;;  %v1145_v20 = vor.u32 %v1305_v8, %v1144_v5 }
  0x21   :  { %673 = vmatpush.bf16.msra.mxu3 %v1025_v19  ;;  %599 = vmatpush.bf16.msra.mxu0 %v869_v41  ;;  %v1208_v16 = vld [vmem:[%s1967_s0 + $0x298] sm:$0xf]  ;;  %v1322_v17 = vld [vmem:[%s1967_s0 + $0x2b8] sm:$0xf0]  ;;  %v1105_v19 = vor.u32 %v1291_v9, %v1102_v10  ;;  %v877_v21 = vor.u32 %v1240_v13, %v876_v12  ;;  %v1066_v23 = vld [vmem:[%s1967_s0 + $0x19c] sm:$0xf0]  ;;  %v1029_v24 = vor.u32 %v1277_v15, %v1028_v14 }
  0x22   :  { %648 = vmatpush.bf16.msrb.mxu1 %v985_v35  ;;  %v1282_v22 = vld [vmem:[%s1967_s0 + $0x17c] sm:$0xf]  ;;  %v1108_v25 = vld [vmem:[%s1967_s0 + $0x1c8] sm:$0xf]  ;;  %v1296_v26 = vld [vmem:[%s1967_s0 + $0x1e8] sm:$0xf0]  ;;  %v1209_v28 = vor.u32 %v1322_v17, %v1208_v16 }
  0x23   :  { %626 = vmatmul.bf16.vlgmr.msra.gmra.mxu2 %v1585_v50  ;;  %v992_v27 = vld [vmem:[%s1967_s0 + $0xe8] sm:$0xf]  ;;  %v1268_v29 = vld [vmem:[%s1967_s0 + $0x108] sm:$0xf0]  ;;  %v1172_v30 = vld [vmem:[%s1967_s0 + $0x250] sm:$0xf]  ;;  %v1069_v33 = vor.u32 %v1282_v22, %v1066_v23  ;;  %v1109_v36 = vor.u32 %v1296_v26, %v1108_v25 }
  0x24   :  { %696 = vmatpush.bf16.msrb.mxu2 %v1137_v42  ;;  %600 = vmatmul.bf16.vlgmr.msra.gmra.mxu0 %v1585_v50  ;;  %v1313_v32 = vld [vmem:[%s1967_s0 + $0x270] sm:$0xf0]  ;;  %v1210_v35 = vld [vmem:[%s1967_s0 + $0x2bc] sm:$0xf0]  ;;  %v1030_v38 = vld [vmem:[%s1967_s0 + $0x154] sm:$0xf0]  ;;  %v993_v39 = vor.u32 %v1268_v29, %v992_v27 }
  0x25   :  { %674 = vmatpush.bf16.msra.mxu3 %v989_v34  ;;  %689 = vmatpush.bf16.msrb.mxu0 %v1205_v48  ;;  %v1318_v34 = vld [vmem:[%s1967_s0 + $0x29c] sm:$0xf]  ;;  %v1273_v37 = vld [vmem:[%s1967_s0 + $0x134] sm:$0xf]  ;;  %v1072_v40 = vld [vmem:[%s1967_s0 + $0x180] sm:$0xf]  ;;  %v1173_v42 = vor.u32 %v1313_v32, %v1172_v30 }
  0x26   :  { %649 = vmatpush.bf16.msrb.mxu1 %v949_v54  ;;  %v1287_v41 = vld [vmem:[%s1967_s0 + $0x1a0] sm:$0xf0]  ;;  %v956_v31 = vld [vmem:[%s1967_s0 + $0xa0] sm:$0xf]  ;;  %v1213_v45 = vor.u32 %v1318_v34, %v1210_v35  ;;  %v1033_v46 = vor.u32 %v1273_v37, %v1030_v38  ;;  %v1309_v47 = vld [vmem:[%s1967_s0 + $0x254] sm:$0xf] }
  0x27   :  { %v1259_v44 = vld [vmem:[%s1967_s0 + $0xc0] sm:$0xf0]  ;;  %v1174_v48 = vld [vmem:[%s1967_s0 + $0x274] sm:$0xf0]  ;;  %v1264_v51 = vld [vmem:[%s1967_s0 + $0xec] sm:$0xf] }
  0x28   :  { %697 = vmatpush.bf16.msrb.mxu2 %v1101_v59  ;;  %v994_v52 = vld [vmem:[%s1967_s0 + $0x10c] sm:$0xf0]  ;;  %v957_v53 = vor.u32 %v1259_v44, %v956_v31  ;;  %v1036_v54 = vld [vmem:[%s1967_s0 + $0x138] sm:$0xf]  ;;  %v1278_v55 = vld [vmem:[%s1967_s0 + $0x158] sm:$0xf0]  ;;  %v1177_v58 = vor.u32 %v1309_v47, %v1174_v48 }
  0x29   :  { %675 = vmatpush.bf16.msra.mxu3 %v953_v49  ;;  %690 = vmatpush.bf16.msrb.mxu0 %v1169_v1  ;;  %v1073_v49 = vor.u32 %v1287_v41, %v1072_v40  ;;  %v920_v56 = vld [vmem:[%s1967_s0 + $0x58] sm:$0xf]  ;;  %v1250_v57 = vld [vmem:[%s1967_s0 + $0x78] sm:$0xf0]  ;;  %v997_v59 = vor.u32 %v1264_v51, %v994_v52  ;;  %v1037_v60 = vor.u32 %v1278_v55, %v1036_v54  ;;  %v1255_v61 = vld [vmem:[%s1967_s0 + $0xa4] sm:$0xf] }
  0x2a   :  { %650 = vmatpush.bf16.msrb.mxu1 %v913_v7  ;;  %v958_v62 = vld [vmem:[%s1967_s0 + $0xc4] sm:$0xf0]  ;;  %v921_v63 = vor.u32 %v1250_v57, %v920_v56  ;;  %v1000_v0 = vld [vmem:[%s1967_s0 + $0xf0] sm:$0xf]  ;;  %v1269_v1 = vld [vmem:[%s1967_s0 + $0x110] sm:$0xf0] }
  0x2b   :  { %v1241_v3 = vld [vmem:[%s1967_s0 + $0x30] sm:$0xf0]  ;;  %v1216_v4 = vld [vmem:[%s1967_s0 + $0x2a0] sm:$0xf]  ;;  %v1323_v5 = vld [vmem:[%s1967_s0 + $0x2c0] sm:$0xf0]  ;;  %v1001_v7 = vor.u32 %v1269_v1, %v1000_v0 }
  0x2c   :  { %698 = vmatpush.bf16.msrb.mxu2 %v1065_v11  ;;  %v1246_v8 = vld [vmem:[%s1967_s0 + $0x5c] sm:$0xf]  ;;  %v922_v9 = vld [vmem:[%s1967_s0 + $0x7c] sm:$0xf0]  ;;  %v964_v11 = vld [vmem:[%s1967_s0 + $0xa8] sm:$0xf]  ;;  %v1217_v13 = vor.u32 %v1323_v5, %v1216_v4 }
  0x2d   :  { %676 = vmatpush.bf16.msra.mxu3 %v917_v2  ;;  %722 = vmatpush.bf16.msra.mxu0 %v1141_v6  ;;  %v884_v2 = vld [vmem:[%s1967_s0 + $0x10] sm:$0xf]  ;;  %v961_v6 = vor.u32 %v1255_v61, %v958_v62  ;;  %v1260_v12 = vld [vmem:[%s1967_s0 + $0xc8] sm:$0xf0]  ;;  %v1301_v14 = vld [vmem:[%s1967_s0 + $0x214] sm:$0xf] }
  0x2e   :  { %651 = vmatpush.bf16.msrb.mxu1 %v877_v21  ;;  %v885_v10 = vor.u32 %v1241_v3, %v884_v2  ;;  %v1146_v15 = vld [vmem:[%s1967_s0 + $0x234] sm:$0xf0]  ;;  %v1314_v17 = vld [vmem:[%s1967_s0 + $0x278] sm:$0xf0]  ;;  %v965_v21 = vor.u32 %v1260_v12, %v964_v11  ;;  %v1237_v23 = vld [vmem:[%s1967_s0 + $0x14] sm:$0xf] }
  0x2f   :  { %v1180_v16 = vld [vmem:[%s1967_s0 + $0x258] sm:$0xf]  ;;  %v1306_v22 = vld [vmem:[%s1967_s0 + $0x238] sm:$0xf0]  ;;  %v1149_v25 = vor.u32 %v1301_v14, %v1146_v15  ;;  %v1251_v26 = vld [vmem:[%s1967_s0 + $0x80] sm:$0xf0] }
  0x30   :  { %699 = vmatpush.bf16.msrb.mxu2 %v1029_v24  ;;  %v886_v24 = vld [vmem:[%s1967_s0 + $0x34] sm:$0xf0]  ;;  %v1319_v27 = vld [vmem:[%s1967_s0 + $0x2a4] sm:$0xf]  ;;  %v1181_v29 = vor.u32 %v1314_v17, %v1180_v16  ;;  %v1292_v30 = vld [vmem:[%s1967_s0 + $0x1cc] sm:$0xf] }
  0x31   :  { %677 = vmatpush.bf16.msra.mxu3 %v881_v18  ;;  %723 = vmatpush.bf16.msra.mxu0 %v1105_v19  ;;  %v928_v18 = vld [vmem:[%s1967_s0 + $0x60] sm:$0xf]  ;;  %v1152_v19 = vld [vmem:[%s1967_s0 + $0x218] sm:$0xf]  ;;  %v1110_v32 = vld [vmem:[%s1967_s0 + $0x1ec] sm:$0xf0]  ;;  %v889_v35 = vor.u32 %v1237_v23, %v886_v24 }
  0x32   :  { %715 = vmatpush.bf16.msra.mxu1 %v1209_v28  ;;  %v1218_v28 = vld [vmem:[%s1967_s0 + $0x2c4] sm:$0xf0]  ;;  %v892_v34 = vld [vmem:[%s1967_s0 + $0x18] sm:$0xf]  ;;  %v1242_v37 = vld [vmem:[%s1967_s0 + $0x38] sm:$0xf0]  ;;  %v1113_v41 = vor.u32 %v1292_v30, %v1110_v32 }
  0x33   :  { %652 = vmatmul.bf16.vlgmr.msrb.gmra.mxu1 %v1585_v50  ;;  %v1116_v38 = vld [vmem:[%s1967_s0 + $0x1d0] sm:$0xf]  ;;  %v1221_v40 = vor.u32 %v1319_v27, %v1218_v28  ;;  %v1310_v31 = vld [vmem:[%s1967_s0 + $0x25c] sm:$0xf]  ;;  %v1182_v44 = vld [vmem:[%s1967_s0 + $0x27c] sm:$0xf0] }
  0x34   :  { %678 = vmatmul.bf16.vlgmr.msra.gmra.mxu3 %v1585_v50  ;;  %700 = vmatpush.bf16.msrb.mxu2 %v993_v39  ;;  %v1297_v39 = vld [vmem:[%s1967_s0 + $0x1f0] sm:$0xf0]  ;;  %v1324_v47 = vld [vmem:[%s1967_s0 + $0x2c8] sm:$0xf0]  ;;  %v1080_v51 = vld [vmem:[%s1967_s0 + $0x188] sm:$0xf] }
  0x35   :  { %748 = vmatpush.bf16.msrb.mxu3 %v1145_v20  ;;  %724 = vmatpush.bf16.msra.mxu0 %v1069_v33  ;;  %v925_v20 = vor.u32 %v1246_v8, %v922_v9  ;;  %v1153_v33 = vor.u32 %v1306_v22, %v1152_v19  ;;  %v1117_v48 = vor.u32 %v1297_v39, %v1116_v38  ;;  %v1288_v52 = vld [vmem:[%s1967_s0 + $0x1a8] sm:$0xf0]  ;;  %v1274_v55 = vld [vmem:[%s1967_s0 + $0x13c] sm:$0xf]  ;;  %v1038_v57 = vld [vmem:[%s1967_s0 + $0x15c] sm:$0xf0] }
  0x36   :  { %716 = vmatpush.bf16.msra.mxu1 %v1173_v42  ;;  %1229 = vmatmul.msk.bf16.vlgmr.msrb.gmra.mxu0 %vm588_vm0, %v1441_v43  ;;  %v1283_v42 = vld [vmem:[%s1967_s0 + $0x184] sm:$0xf]  ;;  %v1044_v61 = vld [vmem:[%s1967_s0 + $0x140] sm:$0xf]  ;;  %v1265_v1 = vld [vmem:[%s1967_s0 + $0xf4] sm:$0xf] }
  0x37   :  { %v1279_v62 = vld [vmem:[%s1967_s0 + $0x160] sm:$0xf0]  ;;  %v1002_v2 = vld [vmem:[%s1967_s0 + $0x114] sm:$0xf0]  ;;  %v1270_v5 = vld [vmem:[%s1967_s0 + $0x118] sm:$0xf0] }
  0x38   :  { %701 = vmatpush.bf16.msrb.mxu2 %v957_v53  ;;  %v1185_v53 = vor.u32 %v1310_v31, %v1182_v44  ;;  %v1045_v3 = vor.u32 %v1279_v62, %v1044_v61  ;;  %v1008_v4 = vld [vmem:[%s1967_s0 + $0xf8] sm:$0xf]  ;;  %v966_v8 = vld [vmem:[%s1967_s0 + $0xcc] sm:$0xf0]  ;;  %v1261_v11 = vld [vmem:[%s1967_s0 + $0xd0] sm:$0xf0] }
  0x39   :  { %749 = vmatpush.bf16.msrb.mxu3 %v1109_v36  ;;  %725 = vmatpush.bf16.msra.mxu0 %v1033_v46  ;;  %v929_v36 = vor.u32 %v1251_v26, %v928_v18  ;;  %v1224_v46 = vld [vmem:[%s1967_s0 + $0x2a8] sm:$0xf]  ;;  %v1009_v9 = vor.u32 %v1270_v5, %v1008_v4  ;;  %v1252_v17 = vld [vmem:[%s1967_s0 + $0x88] sm:$0xf0]  ;;  %v1238_v19 = vld [vmem:[%s1967_s0 + $0x1c] sm:$0xf] }
  0x3a   :  { %741 = vmatpush.bf16.msrb.mxu1 %v1213_v45  ;;  %v1074_v45 = vld [vmem:[%s1967_s0 + $0x1a4] sm:$0xf0]  ;;  %v1225_v56 = vor.u32 %v1324_v47, %v1224_v46  ;;  %v900_v22 = vld [vmem:[%s1967_s0 + $0x20] sm:$0xf]  ;;  %v1243_v23 = vld [vmem:[%s1967_s0 + $0x40] sm:$0xf0] }
  0x3b   :  { %v1077_v54 = vor.u32 %v1283_v42, %v1074_v45  ;;  %v930_v14 = vld [vmem:[%s1967_s0 + $0x84] sm:$0xf0] }
  0x3c   :  { %702 = vmatpush.bf16.msrb.mxu2 %v921_v63  ;;  %v1041_v63 = vor.u32 %v1274_v55, %v1038_v57  ;;  %v936_v16 = vld [vmem:[%s1967_s0 + $0x68] sm:$0xf] }
  0x3d   :  { %750 = vmatpush.bf16.msrb.mxu3 %v1073_v49  ;;  %726 = vmatpush.bf16.msra.mxu0 %v997_v59  ;;  %v893_v49 = vor.u32 %v1242_v37, %v892_v34  ;;  %v1315_v59 = vld [vmem:[%s1967_s0 + $0x280] sm:$0xf0] }
  0x3e   :  { %742 = vmatpush.bf16.msrb.mxu1 %v1177_v58  ;;  %v1188_v58 = vld [vmem:[%s1967_s0 + $0x260] sm:$0xf] }
  0x3f   :  { %v1189_v0 = vor.u32 %v1315_v59, %v1188_v58 }
  0x40   :  { %703 = vmatpush.bf16.msrb.mxu2 %v885_v10  ;;  %v972_v10 = vld [vmem:[%s1967_s0 + $0xb0] sm:$0xf] }
  0x41   :  { %751 = vmatpush.bf16.msrb.mxu3 %v1037_v60  ;;  %727 = vmatpush.bf16.msra.mxu0 %v961_v6  ;;  %v1081_v60 = vor.u32 %v1288_v52, %v1080_v51  ;;  %v1005_v6 = vor.u32 %v1265_v1, %v1002_v2  ;;  %v973_v15 = vor.u32 %v1261_v11, %v972_v10 }
  0x43   :  { %1230 = vmatmul.msk.bf16.vlgmr.msra.gmra.mxu1 %vm588_vm0, %v1441_v43  ;;  %704 = vmatmul.bf16.vlgmr.msrb.gmra.mxu2 %v1585_v50 }
  0x44   :  { %767 = vmatpush.bf16.msra.mxu2 %v1217_v13  ;;  %774 = vmatpush.bf16.msra.mxu1 %v1149_v25  ;;  %v1247_v13 = vld [vmem:[%s1967_s0 + $0x64] sm:$0xf]  ;;  %v901_v25 = vor.u32 %v1243_v23, %v900_v22 }
  0x45   :  { %752 = vmatpush.bf16.msrb.mxu3 %v1001_v7  ;;  %728 = vmatpush.bf16.msra.mxu0 %v925_v20  ;;  %v1256_v7 = vld [vmem:[%s1967_s0 + $0xac] sm:$0xf]  ;;  %v933_v18 = vor.u32 %v1247_v13, %v930_v14  ;;  %v894_v20 = vld [vmem:[%s1967_s0 + $0x3c] sm:$0xf0] }
  0x46   :  { %v969_v12 = vor.u32 %v1256_v7, %v966_v8  ;;  %v897_v24 = vor.u32 %v1238_v19, %v894_v20 }
  0x48   :  { %768 = vmatpush.bf16.msra.mxu2 %v1181_v29  ;;  %775 = vmatpush.bf16.msra.mxu1 %v1113_v41 }
  0x49   :  { %753 = vmatpush.bf16.msrb.mxu3 %v965_v21  ;;  %729 = vmatpush.bf16.msra.mxu0 %v889_v35  ;;  %v937_v21 = vor.u32 %v1252_v17, %v936_v16 }
  0x4c   :  { %800 = vmatpush.bf16.msrb.mxu2 %v1153_v33  ;;  %730 = vmatmul.bf16.vlgmr.msra.gmra.mxu0 %v1585_v50 }
  0x4d   :  { %754 = vmatpush.bf16.msrb.mxu3 %v929_v36  ;;  %793 = vmatpush.bf16.msrb.mxu0 %v1221_v40 }
  0x4e   :  { %776 = vmatpush.bf16.msra.mxu1 %v1077_v54 }
  0x50   :  { %801 = vmatpush.bf16.msrb.mxu2 %v1117_v48 }
  0x51   :  { %755 = vmatpush.bf16.msrb.mxu3 %v893_v49  ;;  %794 = vmatpush.bf16.msrb.mxu0 %v1185_v53 }
  0x52   :  { %777 = vmatpush.bf16.msra.mxu1 %v1041_v63 }
  0x53   :  { %1231 = vmatmul.msk.bf16.vlgmr.msrb.gmra.mxu1 %vm588_vm0, %v1441_v43  ;;  %1232 = vmatmul.msk.bf16.vlgmr.msra.gmra.mxu2 %vm588_vm0, %v1441_v43 }
  0x54   :  { %756 = vmatmul.bf16.vlgmr.msrb.gmra.mxu3 %v1585_v50  ;;  %802 = vmatpush.bf16.msrb.mxu2 %v1081_v60 }
  0x55   :  { %819 = vmatpush.bf16.msra.mxu3 %v1225_v56 }
  0x56   :  { %778 = vmatpush.bf16.msra.mxu1 %v1005_v6 }
  0x58   :  { %803 = vmatpush.bf16.msrb.mxu2 %v1045_v3 }
  0x59   :  { %820 = vmatpush.bf16.msra.mxu3 %v1189_v0 }
  0x5a   :  { %779 = vmatpush.bf16.msra.mxu1 %v969_v12 }
  0x5c   :  { %804 = vmatpush.bf16.msrb.mxu2 %v1009_v9  ;;  %1233 = vmatmul.msk.bf16.vlgmr.msrb.gmra.mxu0 %vm588_vm0, %v1441_v43 }
  0x5e   :  { %780 = vmatpush.bf16.msra.mxu1 %v933_v18 }
  0x60   :  { %805 = vmatpush.bf16.msrb.mxu2 %v973_v15 }
  0x62   :  { %781 = vmatpush.bf16.msra.mxu1 %v897_v24 }
  0x64   :  { %1234 = vmatmul.msk.bf16.vlgmr.msra.gmra.mxu3 %vm588_vm0, %v1441_v43  ;;  %806 = vmatpush.bf16.msrb.mxu2 %v937_v21 }
  0x65   :  { %782 = vmatmul.bf16.vlgmr.msra.gmra.mxu1 %v1585_v50 }
  0x68   :  { %807 = vmatpush.bf16.msrb.mxu2 %v901_v25 }
  0x6b   :  { %808 = vmatmul.bf16.vlgmr.msrb.gmra.mxu2 %v1585_v50 }
  0x8f   :  { %v640_v27 = vpop.f32.mrf.mxu3 }
  0x90   :  { %v614_v26 = vpop.f32.mrf.mxu1  ;;  %v1929_v30 = vpop.permute.xlu0 %119 }
  0x97   :  { %v642_v29 = vpop.f32.mrf.mxu3 }
  0x98   :  { %v616_v28 = vpop.f32.mrf.mxu1 }
  0x9f   :  { %v666_v32 = vpop.f32.mrf.mxu3 }
  0xa1   :  { %v601_v33 = vpop.f32.mrf.mxu0 }
  0xa2   :  { %v602_v34 = vadd.f32 %v601_v33, %v1929_v30 }
  0xa4   :  { %v615_v35 = vadd.f32 %v614_v26, %v602_v34 }
  0xa6   :  { %vm826_vm1 = vcmp.gt.f32.partialorder %v615_v35, 0.0  ;;  %v835_v43 = vmul.f32 0.2, %v615_v35  ;;  %v627_v36 = vpop.f32.mrf.mxu2 }
  0xa7   :  { %v628_v37 = vadd.f32 %v627_v36, %v1929_v30  ;;  %v668_v39 = vpop.f32.mrf.mxu3 }
  0xa8   :  { %v844_v38 = vsel %vm826_vm1, %v615_v35, %v835_v43 }
  0xa9   :  { %853 = vst [vmem:[%s1970_s3] sm:$0xff] %v844_v38  ;;  %v641_v50 = vadd.f32 %v640_v27, %v628_v37  ;;  %v603_v40 = vpop.f32.mrf.mxu0 }
  0xab   :  { %vm827_vm2 = vcmp.gt.f32.partialorder %v641_v50, 0.0  ;;  %v836_v41 = vmul.f32 0.2, %v641_v50 }
  0xad   :  { %v845_v31 = vsel %vm827_vm2, %v641_v50, %v836_v41 }
  0xae   :  { %854 = vst [vmem:[%s1970_s3 + $0x8] sm:$0xff] %v845_v31  ;;  %v629_v45 = vpop.f32.mrf.mxu2 }
  0xb0   :  { %v653_v42 = vpop.f32.mrf.mxu1 }
  0xb1   :  { %v654_v44 = vadd.f32 %v653_v42, %v1929_v30 }
  0xb3   :  { %v667_v46 = vadd.f32 %v666_v32, %v654_v44  ;;  %v692_v49 = vpop.f32.mrf.mxu0 }
  0xb5   :  { %vm828_vm3 = vcmp.gt.f32.partialorder %v667_v46, 0.0  ;;  %v837_v47 = vmul.f32 0.2, %v667_v46 }
  0xb7   :  { %v679_v48 = vpop.f32.mrf.mxu3  ;;  %v846_v52 = vsel %vm828_vm3, %v667_v46, %v837_v47 }
  0xb8   :  { %v680_v51 = vadd.f32 %v679_v48, %v1929_v30  ;;  %855 = vst [vmem:[%s1970_s3 + $0x10] sm:$0xff] %v846_v52  ;;  %v655_v53 = vpop.f32.mrf.mxu1 }
  0xba   :  { %v693_v54 = vadd.f32 %v692_v49, %v680_v51 }
  0xbb   :  { %v694_v58 = vpop.f32.mrf.mxu0 }
  0xbc   :  { %vm829_vm4 = vcmp.gt.f32.partialorder %v693_v54, 0.0  ;;  %v838_v55 = vmul.f32 0.2, %v693_v54 }
  0xbe   :  { %v847_v56 = vsel %vm829_vm4, %v693_v54, %v838_v55 }
  0xbf   :  { %856 = vst [vmem:[%s1970_s3 + $0x18] sm:$0xff] %v847_v56  ;;  %v681_v57 = vpop.f32.mrf.mxu3 }
  0xc0   :  { %v718_v59 = vpop.f32.mrf.mxu1 }
  0xc6   :  { %v705_v60 = vpop.f32.mrf.mxu2 }
  0xc7   :  { %v706_v62 = vadd.f32 %v705_v60, %v1929_v30 }
  0xc8   :  { %v720_v63 = vpop.f32.mrf.mxu1 }
  0xc9   :  { %v731_v61 = vpop.f32.mrf.mxu0  ;;  %v719_v0 = vadd.f32 %v718_v59, %v706_v62 }
  0xca   :  { %v732_v2 = vadd.f32 %v731_v61, %v1929_v30 }
  0xcb   :  { %vm830_vm5 = vcmp.gt.f32.partialorder %v719_v0, 0.0  ;;  %v839_v1 = vmul.f32 0.2, %v719_v0 }
  0xcd   :  { %v848_v3 = vsel %vm830_vm5, %v719_v0, %v839_v1 }
  0xce   :  { %857 = vst [vmem:[%s1970_s3 + $0x20] sm:$0xff] %v848_v3  ;;  %v707_v4 = vpop.f32.mrf.mxu2 }
  0xd0   :  { %v744_v6 = vpop.f32.mrf.mxu1 }
  0xd1   :  { %v733_v5 = vpop.f32.mrf.mxu0  ;;  %v745_v7 = vadd.f32 %v744_v6, %v732_v2 }
  0xd3   :  { %vm831_vm6 = vcmp.gt.f32.partialorder %v745_v7, 0.0  ;;  %v840_v9 = vmul.f32 0.2, %v745_v7 }
  0xd5   :  { %v849_v11 = vsel %vm831_vm6, %v745_v7, %v840_v9 }
  0xd6   :  { %858 = vst [vmem:[%s1970_s3 + $0x28] sm:$0xff] %v849_v11  ;;  %v770_v12 = vpop.f32.mrf.mxu2 }
  0xd7   :  { %v757_v8 = vpop.f32.mrf.mxu3 }
  0xd8   :  { %v758_v10 = vadd.f32 %v757_v8, %v1929_v30  ;;  %v746_v15 = vpop.f32.mrf.mxu1 }
  0xd9   :  { %v796_v13 = vpop.f32.mrf.mxu0 }
  0xda   :  { %v771_v14 = vadd.f32 %v770_v12, %v758_v10 }
  0xdc   :  { %vm832_vm7 = vcmp.gt.f32.partialorder %v771_v14, 0.0  ;;  %v841_v16 = vmul.f32 0.2, %v771_v14 }
  0xde   :  { %v850_v18 = vsel %vm832_vm7, %v771_v14, %v841_v16  ;;  %v772_v19 = vpop.f32.mrf.mxu2 }
  0xdf   :  { %v759_v17 = vpop.f32.mrf.mxu3  ;;  %859 = vst [vmem:[%s1970_s3 + $0x30] sm:$0xff] %v850_v18 }
  0xe1   :  { %v798_v20 = vpop.f32.mrf.mxu0 }
  0xe2   :  { %v783_v21 = vpop.f32.mrf.mxu1 }
  0xe3   :  { %v784_v22 = vadd.f32 %v783_v21, %v1929_v30 }
  0xe5   :  { %v797_v24 = vadd.f32 %v796_v13, %v784_v22 }
  0xe7   :  { %v822_v23 = vpop.f32.mrf.mxu3  ;;  %vm833_vm8 = vcmp.gt.f32.partialorder %v797_v24, 0.0  ;;  %v842_v25 = vmul.f32 0.2, %v797_v24 }
  0xe9   :  { %v851_v26 = vsel %vm833_vm8, %v797_v24, %v842_v25 }
  0xea   :  { %860 = vst [vmem:[%s1970_s3 + $0x38] sm:$0xff] %v851_v26  ;;  %v785_v27 = vpop.f32.mrf.mxu1 }
  0xee   :  { %v809_v28 = vpop.f32.mrf.mxu2 }
  0xef   :  { %v810_v29 = vadd.f32 %v809_v28, %v1929_v30  ;;  %v824_v32 = vpop.f32.mrf.mxu3 }
  0xf1   :  { %v823_v33 = vadd.f32 %v822_v23, %v810_v29 }
  0xf3   :  { %vm834_vm9 = vcmp.gt.f32.partialorder %v823_v33, 0.0  ;;  %v843_v34 = vmul.f32 0.2, %v823_v33 }
  0xf5   :  { %v852_v35 = vsel %vm834_vm9, %v823_v33, %v843_v34 }
  0xf6   :  { %861 = vst [vmem:[%s1970_s3 + $0x40] sm:$0xff] %v852_v35  ;;  %v811_v43 = vpop.f32.mrf.mxu2 }

// kernel: tile.7
= control target key start
LH: loop header
LB: loop body
LE: loop exit
PB: predicated region body
PF: predicated region fallthrough
CT: control target
= control target key end

     0   :  { %vm2052_vm0 = vcmask 1047556   ;;  %s3964_s15 = smov 55   ;;  %vm2054_vm1 = vcmask 449536   ;;  %vm2631_vm2 = vcmask 900536   ;;  %s6329_s0 = inlined_call_operand.vmem [shape: f32[32,16,2,55], index: 0, kind: input, shape index: {}]   ;;  %s6330_s1 = inlined_call_operand.vmem [shape: f32[32,16,110], index: 1, kind: output, shape index: {}]  }
   0x1   :  { %v3830_v0 = vld [vmem:[%s6329_s0 + $0xe] sm:$0x3]  ;;  %v3831_v1 = vld [vmem:[%s6329_s0 + $0xc] sm:$0x3]  ;;  %v3832_v2 = vld [vmem:[%s6329_s0 + $0xa] sm:$0x3] }
   0x2   :  { %2023 = vst [vmem:[#allocation0 + $0x38] sm:$0x3] %v3830_v0  ;;  %v3833_v3 = vld [vmem:[%s6329_s0 + $0x8] sm:$0x3]  ;;  %v3834_v4 = vld [vmem:[%s6329_s0 + $0x6] sm:$0x3] }
   0x3   :  { %2027 = vst [vmem:[#allocation0 + $0x30] sm:$0x3] %v3831_v1  ;;  %v3835_v5 = vld [vmem:[%s6329_s0 + $0x4] sm:$0x3]  ;;  %v3836_v6 = vld [vmem:[%s6329_s0 + $0x2] sm:$0x3] }
   0x4   :  { %2031 = vst [vmem:[#allocation0 + $0x28] sm:$0x3] %v3832_v2  ;;  %v2048_v7 = vld [vmem:[%s6329_s0] sm:$0x3]  ;;  %v3798_v8 = vld [vmem:[%s6329_s0 + $0x4e] sm:$0x3] }
   0x5   :  { %2035 = vst [vmem:[#allocation0 + $0x20] sm:$0x3] %v3833_v3  ;;  %v3799_v9 = vld [vmem:[%s6329_s0 + $0x4c] sm:$0x3]  ;;  %v3800_v10 = vld [vmem:[%s6329_s0 + $0x4a] sm:$0x3] }
   0x6   :  { %2039 = vst [vmem:[#allocation0 + $0x18] sm:$0x3] %v3834_v4  ;;  %v3801_v11 = vld [vmem:[%s6329_s0 + $0x48] sm:$0x3]  ;;  %v3802_v12 = vld [vmem:[%s6329_s0 + $0x46] sm:$0x3] }
   0x7   :  { %2043 = vst [vmem:[#allocation0 + $0x10] sm:$0x3] %v3835_v5  ;;  %v3803_v13 = vld [vmem:[%s6329_s0 + $0x44] sm:$0x3]  ;;  %v3804_v14 = vld [vmem:[%s6329_s0 + $0x42] sm:$0x3] }
   0x8   :  { %2047 = vst [vmem:[#allocation0 + $0x8] sm:$0x3] %v3836_v6  ;;  %v3805_v15 = vld [vmem:[%s6329_s0 + $0x40] sm:$0x3]  ;;  %v3766_v17 = vld [vmem:[%s6329_s0 + $0x8e] sm:$0x3] }
   0x9   :  { %2049 = vst [vmem:[#allocation0] sm:$0x3] %v2048_v7  ;;  %v3767_v18 = vld [vmem:[%s6329_s0 + $0x8c] sm:$0x3]  ;;  %v3768_v21 = vld [vmem:[%s6329_s0 + $0x8a] sm:$0x3] }
   0xa   :  { %1895 = vst [vmem:[#allocation0 + $0x138] sm:$0x3] %v3798_v8  ;;  %v3769_v22 = vld [vmem:[%s6329_s0 + $0x88] sm:$0x3]  ;;  %v3770_v23 = vld [vmem:[%s6329_s0 + $0x86] sm:$0x3] }
   0xb   :  { %1899 = vst [vmem:[#allocation0 + $0x130] sm:$0x3] %v3799_v9  ;;  %v3771_v24 = vld [vmem:[%s6329_s0 + $0x84] sm:$0x3]  ;;  %v3772_v25 = vld [vmem:[%s6329_s0 + $0x82] sm:$0x3] }
   0xc   :  { %1903 = vst [vmem:[#allocation0 + $0x128] sm:$0x3] %v3800_v10  ;;  %v2626_v16 = vld [vmem:[#allocation0 + $0x1] ss:$8 sm:$0xf0]  }
   0xd   :  { %1907 = vst [vmem:[#allocation0 + $0x120] sm:$0x3] %v3801_v11  ;;  %v3773_v26 = vld [vmem:[%s6329_s0 + $0x80] sm:$0x3]  ;;  %v3734_v28 = vld [vmem:[%s6329_s0 + $0xce] sm:$0x3] }
   0xe   :  { %1911 = vst [vmem:[#allocation0 + $0x118] sm:$0x3] %v3802_v12  ;;  %v3735_v29 = vld [vmem:[%s6329_s0 + $0xcc] sm:$0x3]  ;;  %v3736_v32 = vld [vmem:[%s6329_s0 + $0xca] sm:$0x3] }
   0xf   :  { %1915 = vst [vmem:[#allocation0 + $0x110] sm:$0x3] %v3803_v13  ;;  %v3737_v33 = vld [vmem:[%s6329_s0 + $0xc8] sm:$0x3]  ;;  %v3738_v34 = vld [vmem:[%s6329_s0 + $0xc6] sm:$0x3] }
  0x10   :  { %v2624_v19 = vld [vmem:[#allocation0 + $0x1] ss:$8 sm:$0xf]   ;;  %1919 = vst [vmem:[#allocation0 + $0x108] sm:$0x3] %v3804_v14 }
  0x11   :  { %v2628_v20 = vsel %vm2052_vm0, %v2626_v16, %v2624_v19  ;;  %1923 = vst [vmem:[#allocation0 + $0x100] sm:$0x3] %v3805_v15  ;;  %v3739_v35 = vld [vmem:[%s6329_s0 + $0xc4] sm:$0x3]  ;;  %v3740_v36 = vld [vmem:[%s6329_s0 + $0xc2] sm:$0x3] }
  0x12   :  { %2629 = vrot.lane.b32.xlu0 %v2628_v20, %s3964_s15  ;;  %1767 = vst [vmem:[#allocation0 + $0x238] sm:$0x3] %v3766_v17  ;;  %v3741_v37 = vld [vmem:[%s6329_s0 + $0xc0] sm:$0x3]  ;;  %v3638_v39 = vld [vmem:[%s6329_s0 + $0x18e] sm:$0x3] }
  0x13   :  { %1771 = vst [vmem:[#allocation0 + $0x230] sm:$0x3] %v3767_v18  ;;  %v3639_v40 = vld [vmem:[%s6329_s0 + $0x18c] sm:$0x3]  ;;  %v3640_v43 = vld [vmem:[%s6329_s0 + $0x18a] sm:$0x3] }
  0x14   :  { %1775 = vst [vmem:[#allocation0 + $0x228] sm:$0x3] %v3768_v21  ;;  %v2636_v27 = vld [vmem:[#allocation0 + $0x101] ss:$8 sm:$0xf0]  }
  0x15   :  { %1779 = vst [vmem:[#allocation0 + $0x220] sm:$0x3] %v3769_v22  ;;  %v3641_v44 = vld [vmem:[%s6329_s0 + $0x188] sm:$0x3]  ;;  %v3642_v45 = vld [vmem:[%s6329_s0 + $0x186] sm:$0x3] }
  0x16   :  { %1783 = vst [vmem:[#allocation0 + $0x218] sm:$0x3] %v3770_v23  ;;  %v3643_v46 = vld [vmem:[%s6329_s0 + $0x184] sm:$0x3]  ;;  %v3644_v47 = vld [vmem:[%s6329_s0 + $0x182] sm:$0x3] }
  0x17   :  { %1787 = vst [vmem:[#allocation0 + $0x210] sm:$0x3] %v3771_v24  ;;  %v3645_v48 = vld [vmem:[%s6329_s0 + $0x180] sm:$0x3]  ;;  %v3606_v50 = vld [vmem:[%s6329_s0 + $0x1ce] sm:$0x3] }
  0x18   :  { %v2634_v30 = vld [vmem:[#allocation0 + $0x101] ss:$8 sm:$0xf]   ;;  %1791 = vst [vmem:[#allocation0 + $0x208] sm:$0x3] %v3772_v25 }
  0x19   :  { %v2638_v31 = vsel %vm2052_vm0, %v2636_v27, %v2634_v30  ;;  %1795 = vst [vmem:[#allocation0 + $0x200] sm:$0x3] %v3773_v26  ;;  %v3607_v51 = vld [vmem:[%s6329_s0 + $0x1cc] sm:$0x3]  ;;  %v3608_v54 = vld [vmem:[%s6329_s0 + $0x1ca] sm:$0x3] }
  0x1a   :  { %2639 = vrot.lane.b32.xlu0 %v2638_v31, %s3964_s15  ;;  %1639 = vst [vmem:[#allocation0 + $0x338] sm:$0x3] %v3734_v28  ;;  %v3609_v55 = vld [vmem:[%s6329_s0 + $0x1c8] sm:$0x3]  ;;  %v3610_v56 = vld [vmem:[%s6329_s0 + $0x1c6] sm:$0x3] }
  0x1b   :  { %1643 = vst [vmem:[#allocation0 + $0x330] sm:$0x3] %v3735_v29  ;;  %v3611_v57 = vld [vmem:[%s6329_s0 + $0x1c4] sm:$0x3]  ;;  %v3612_v58 = vld [vmem:[%s6329_s0 + $0x1c2] sm:$0x3] }
  0x1c   :  { %1647 = vst [vmem:[#allocation0 + $0x328] sm:$0x3] %v3736_v32  ;;  %v2647_v38 = vld [vmem:[#allocation0 + $0x201] ss:$8 sm:$0xf0]  }
  0x1d   :  { %1651 = vst [vmem:[#allocation0 + $0x320] sm:$0x3] %v3737_v33  ;;  %v3613_v59 = vld [vmem:[%s6329_s0 + $0x1c0] sm:$0x3]  ;;  %v3542_v61 = vld [vmem:[%s6329_s0 + $0x24e] sm:$0x3] }
  0x1e   :  { %1655 = vst [vmem:[#allocation0 + $0x318] sm:$0x3] %v3738_v34  ;;  %v3543_v62 = vld [vmem:[%s6329_s0 + $0x24c] sm:$0x3]  ;;  %v3544_v1 = vld [vmem:[%s6329_s0 + $0x24a] sm:$0x3] }
  0x1f   :  { %1659 = vst [vmem:[#allocation0 + $0x310] sm:$0x3] %v3739_v35  ;;  %v3545_v2 = vld [vmem:[%s6329_s0 + $0x248] sm:$0x3]  ;;  %v3546_v3 = vld [vmem:[%s6329_s0 + $0x246] sm:$0x3] }
  0x20   :  { %v2645_v41 = vld [vmem:[#allocation0 + $0x201] ss:$8 sm:$0xf]   ;;  %1663 = vst [vmem:[#allocation0 + $0x308] sm:$0x3] %v3740_v36 }
  0x21   :  { %v2649_v42 = vsel %vm2052_vm0, %v2647_v38, %v2645_v41  ;;  %1667 = vst [vmem:[#allocation0 + $0x300] sm:$0x3] %v3741_v37  ;;  %v3547_v4 = vld [vmem:[%s6329_s0 + $0x244] sm:$0x3]  ;;  %v3548_v5 = vld [vmem:[%s6329_s0 + $0x242] sm:$0x3] }
  0x22   :  { %2650 = vrot.lane.b32.xlu1 %v2649_v42, %s3964_s15  ;;  %1255 = vst [vmem:[#allocation0 + $0x638] sm:$0x3] %v3638_v39  ;;  %v3549_v6 = vld [vmem:[%s6329_s0 + $0x240] sm:$0x3]  ;;  %v3702_v8 = vld [vmem:[%s6329_s0 + $0x10e] sm:$0x3] }
  0x23   :  { %1259 = vst [vmem:[#allocation0 + $0x630] sm:$0x3] %v3639_v40  ;;  %v3703_v9 = vld [vmem:[%s6329_s0 + $0x10c] sm:$0x3]  ;;  %v3704_v12 = vld [vmem:[%s6329_s0 + $0x10a] sm:$0x3] }
  0x24   :  { %1263 = vst [vmem:[#allocation0 + $0x628] sm:$0x3] %v3640_v43  ;;  %v2658_v49 = vld [vmem:[#allocation0 + $0x301] ss:$8 sm:$0xf0]  }
  0x25   :  { %1267 = vst [vmem:[#allocation0 + $0x620] sm:$0x3] %v3641_v44  ;;  %v3705_v13 = vld [vmem:[%s6329_s0 + $0x108] sm:$0x3]  ;;  %v3706_v14 = vld [vmem:[%s6329_s0 + $0x106] sm:$0x3] }
  0x26   :  { %1271 = vst [vmem:[#allocation0 + $0x618] sm:$0x3] %v3642_v45  ;;  %v3707_v15 = vld [vmem:[%s6329_s0 + $0x104] sm:$0x3]  ;;  %v3708_v16 = vld [vmem:[%s6329_s0 + $0x102] sm:$0x3] }
  0x27   :  { %1275 = vst [vmem:[#allocation0 + $0x610] sm:$0x3] %v3643_v46  ;;  %v3709_v17 = vld [vmem:[%s6329_s0 + $0x100] sm:$0x3]  ;;  %v3510_v19 = vld [vmem:[%s6329_s0 + $0x28e] sm:$0x3] }
  0x28   :  { %v2656_v52 = vld [vmem:[#allocation0 + $0x301] ss:$8 sm:$0xf]   ;;  %1279 = vst [vmem:[#allocation0 + $0x608] sm:$0x3] %v3644_v47 }
  0x29   :  { %v2660_v53 = vsel %vm2052_vm0, %v2658_v49, %v2656_v52  ;;  %1283 = vst [vmem:[#allocation0 + $0x600] sm:$0x3] %v3645_v48  ;;  %v3511_v20 = vld [vmem:[%s6329_s0 + $0x28c] sm:$0x3]  ;;  %v3512_v23 = vld [vmem:[%s6329_s0 + $0x28a] sm:$0x3] }
  0x2a   :  { %2661 = vrot.lane.b32.xlu1 %v2660_v53, %s3964_s15  ;;  %1127 = vst [vmem:[#allocation0 + $0x738] sm:$0x3] %v3606_v50  ;;  %v3513_v24 = vld [vmem:[%s6329_s0 + $0x288] sm:$0x3]  ;;  %v3514_v25 = vld [vmem:[%s6329_s0 + $0x286] sm:$0x3] }
  0x2b   :  { %1131 = vst [vmem:[#allocation0 + $0x730] sm:$0x3] %v3607_v51  ;;  %v3515_v26 = vld [vmem:[%s6329_s0 + $0x284] sm:$0x3]  ;;  %v3516_v27 = vld [vmem:[%s6329_s0 + $0x282] sm:$0x3] }
  0x2c   :  { %1135 = vst [vmem:[#allocation0 + $0x728] sm:$0x3] %v3608_v54  ;;  %v2691_v60 = vld [vmem:[#allocation0 + $0x601] ss:$8 sm:$0xf0]  }
  0x2d   :  { %1139 = vst [vmem:[#allocation0 + $0x720] sm:$0x3] %v3609_v55  ;;  %v3517_v28 = vld [vmem:[%s6329_s0 + $0x280] sm:$0x3]  ;;  %v3446_v30 = vld [vmem:[%s6329_s0 + $0x30e] sm:$0x3] }
  0x2e   :  { %1143 = vst [vmem:[#allocation0 + $0x718] sm:$0x3] %v3610_v56  ;;  %v3447_v31 = vld [vmem:[%s6329_s0 + $0x30c] sm:$0x3]  ;;  %v3448_v34 = vld [vmem:[%s6329_s0 + $0x30a] sm:$0x3] }
  0x2f   :  { %1147 = vst [vmem:[#allocation0 + $0x710] sm:$0x3] %v3611_v57  ;;  %v3449_v35 = vld [vmem:[%s6329_s0 + $0x308] sm:$0x3]  ;;  %v3450_v36 = vld [vmem:[%s6329_s0 + $0x306] sm:$0x3] }
  0x30   :  { %v2689_v63 = vld [vmem:[#allocation0 + $0x601] ss:$8 sm:$0xf]   ;;  %1151 = vst [vmem:[#allocation0 + $0x708] sm:$0x3] %v3612_v58 }
  0x31   :  { %v2693_v0 = vsel %vm2052_vm0, %v2691_v60, %v2689_v63  ;;  %1155 = vst [vmem:[#allocation0 + $0x700] sm:$0x3] %v3613_v59  ;;  %v3451_v37 = vld [vmem:[%s6329_s0 + $0x304] sm:$0x3]  ;;  %v3452_v38 = vld [vmem:[%s6329_s0 + $0x302] sm:$0x3] }
  0x32   :  { %2694 = vrot.lane.b32.xlu0 %v2693_v0, %s3964_s15  ;;  %871 = vst [vmem:[#allocation0 + $0x938] sm:$0x3] %v3542_v61  ;;  %v3453_v39 = vld [vmem:[%s6329_s0 + $0x300] sm:$0x3]  ;;  %v3670_v41 = vld [vmem:[%s6329_s0 + $0x14e] sm:$0x3] }
  0x33   :  { %875 = vst [vmem:[#allocation0 + $0x930] sm:$0x3] %v3543_v62  ;;  %v3671_v42 = vld [vmem:[%s6329_s0 + $0x14c] sm:$0x3]  ;;  %v3672_v45 = vld [vmem:[%s6329_s0 + $0x14a] sm:$0x3] }
  0x34   :  { %879 = vst [vmem:[#allocation0 + $0x928] sm:$0x3] %v3544_v1  ;;  %v2702_v7 = vld [vmem:[#allocation0 + $0x701] ss:$8 sm:$0xf0]  }
  0x35   :  { %883 = vst [vmem:[#allocation0 + $0x920] sm:$0x3] %v3545_v2  ;;  %v3673_v46 = vld [vmem:[%s6329_s0 + $0x148] sm:$0x3]  ;;  %v3674_v47 = vld [vmem:[%s6329_s0 + $0x146] sm:$0x3] }
  0x36   :  { %887 = vst [vmem:[#allocation0 + $0x918] sm:$0x3] %v3546_v3  ;;  %v3675_v48 = vld [vmem:[%s6329_s0 + $0x144] sm:$0x3]  ;;  %v3676_v49 = vld [vmem:[%s6329_s0 + $0x142] sm:$0x3] }
  0x37   :  { %891 = vst [vmem:[#allocation0 + $0x910] sm:$0x3] %v3547_v4  ;;  %v3677_v50 = vld [vmem:[%s6329_s0 + $0x140] sm:$0x3]  ;;  %v3414_v52 = vld [vmem:[%s6329_s0 + $0x34e] sm:$0x3] }
  0x38   :  { %v2700_v10 = vld [vmem:[#allocation0 + $0x701] ss:$8 sm:$0xf]   ;;  %895 = vst [vmem:[#allocation0 + $0x908] sm:$0x3] %v3548_v5 }
  0x39   :  { %v2704_v11 = vsel %vm2052_vm0, %v2702_v7, %v2700_v10  ;;  %899 = vst [vmem:[#allocation0 + $0x900] sm:$0x3] %v3549_v6  ;;  %v3415_v53 = vld [vmem:[%s6329_s0 + $0x34c] sm:$0x3]  ;;  %v3416_v56 = vld [vmem:[%s6329_s0 + $0x34a] sm:$0x3] }
  0x3a   :  { %2705 = vrot.lane.b32.xlu1 %v2704_v11, %s3964_s15  ;;  %1511 = vst [vmem:[#allocation0 + $0x438] sm:$0x3] %v3702_v8  ;;  %v3417_v57 = vld [vmem:[%s6329_s0 + $0x348] sm:$0x3]  ;;  %v3418_v58 = vld [vmem:[%s6329_s0 + $0x346] sm:$0x3] }
  0x3b   :  { %1515 = vst [vmem:[#allocation0 + $0x430] sm:$0x3] %v3703_v9  ;;  %v3419_v59 = vld [vmem:[%s6329_s0 + $0x344] sm:$0x3]  ;;  %v3420_v60 = vld [vmem:[%s6329_s0 + $0x342] sm:$0x3] }
  0x3c   :  { %1519 = vst [vmem:[#allocation0 + $0x428] sm:$0x3] %v3704_v12  ;;  %v2724_v18 = vld [vmem:[#allocation0 + $0x901] ss:$8 sm:$0xf0]  }
  0x3d   :  { %1523 = vst [vmem:[#allocation0 + $0x420] sm:$0x3] %v3705_v13  ;;  %v3421_v61 = vld [vmem:[%s6329_s0 + $0x340] sm:$0x3]  ;;  %v3350_v63 = vld [vmem:[%s6329_s0 + $0x3ce] sm:$0x3] }
  0x3e   :  { %1527 = vst [vmem:[#allocation0 + $0x418] sm:$0x3] %v3706_v14  ;;  %v3351_v0 = vld [vmem:[%s6329_s0 + $0x3cc] sm:$0x3]  ;;  %v3352_v3 = vld [vmem:[%s6329_s0 + $0x3ca] sm:$0x3] }
  0x3f   :  { %1531 = vst [vmem:[#allocation0 + $0x410] sm:$0x3] %v3707_v15  ;;  %v3353_v4 = vld [vmem:[%s6329_s0 + $0x3c8] sm:$0x3]  ;;  %v3354_v5 = vld [vmem:[%s6329_s0 + $0x3c6] sm:$0x3] }
  0x40   :  { %v2722_v21 = vld [vmem:[#allocation0 + $0x901] ss:$8 sm:$0xf]   ;;  %1535 = vst [vmem:[#allocation0 + $0x408] sm:$0x3] %v3708_v16 }
  0x41   :  { %v2726_v22 = vsel %vm2052_vm0, %v2724_v18, %v2722_v21  ;;  %1539 = vst [vmem:[#allocation0 + $0x400] sm:$0x3] %v3709_v17  ;;  %v3355_v6 = vld [vmem:[%s6329_s0 + $0x3c4] sm:$0x3]  ;;  %v3356_v7 = vld [vmem:[%s6329_s0 + $0x3c2] sm:$0x3] }
  0x42   :  { %2727 = vrot.lane.b32.xlu0 %v2726_v22, %s3964_s15  ;;  %743 = vst [vmem:[#allocation0 + $0xa38] sm:$0x3] %v3510_v19  ;;  %v3357_v8 = vld [vmem:[%s6329_s0 + $0x3c0] sm:$0x3]  ;;  %v3574_v10 = vld [vmem:[%s6329_s0 + $0x20e] sm:$0x3] }
  0x43   :  { %747 = vst [vmem:[#allocation0 + $0xa30] sm:$0x3] %v3511_v20  ;;  %v3575_v11 = vld [vmem:[%s6329_s0 + $0x20c] sm:$0x3]  ;;  %v3576_v14 = vld [vmem:[%s6329_s0 + $0x20a] sm:$0x3] }
  0x44   :  { %751 = vst [vmem:[#allocation0 + $0xa28] sm:$0x3] %v3512_v23  ;;  %v2669_v29 = vld [vmem:[#allocation0 + $0x401] ss:$8 sm:$0xf0]  }
  0x45   :  { %755 = vst [vmem:[#allocation0 + $0xa20] sm:$0x3] %v3513_v24  ;;  %v3577_v15 = vld [vmem:[%s6329_s0 + $0x208] sm:$0x3]  ;;  %v3578_v16 = vld [vmem:[%s6329_s0 + $0x206] sm:$0x3] }
  0x46   :  { %759 = vst [vmem:[#allocation0 + $0xa18] sm:$0x3] %v3514_v25  ;;  %v3579_v17 = vld [vmem:[%s6329_s0 + $0x204] sm:$0x3]  ;;  %v3580_v18 = vld [vmem:[%s6329_s0 + $0x202] sm:$0x3] }
  0x47   :  { %763 = vst [vmem:[#allocation0 + $0xa10] sm:$0x3] %v3515_v26  ;;  %v3581_v19 = vld [vmem:[%s6329_s0 + $0x200] sm:$0x3]  ;;  %v3822_v21 = vld [vmem:[%s6329_s0 + $0x1e] sm:$0x3] }
  0x48   :  { %v2667_v32 = vld [vmem:[#allocation0 + $0x401] ss:$8 sm:$0xf]   ;;  %767 = vst [vmem:[#allocation0 + $0xa08] sm:$0x3] %v3516_v27 }
  0x49   :  { %v2671_v33 = vsel %vm2052_vm0, %v2669_v29, %v2667_v32  ;;  %771 = vst [vmem:[#allocation0 + $0xa00] sm:$0x3] %v3517_v28  ;;  %v3823_v22 = vld [vmem:[%s6329_s0 + $0x1c] sm:$0x3]  ;;  %v3824_v25 = vld [vmem:[%s6329_s0 + $0x1a] sm:$0x3] }
  0x4a   :  { %2672 = vrot.lane.b32.xlu2 %v2671_v33, %s3964_s15  ;;  %487 = vst [vmem:[#allocation0 + $0xc38] sm:$0x3] %v3446_v30  ;;  %v3825_v26 = vld [vmem:[%s6329_s0 + $0x18] sm:$0x3]  ;;  %v3826_v27 = vld [vmem:[%s6329_s0 + $0x16] sm:$0x3] }
  0x4b   :  { %491 = vst [vmem:[#allocation0 + $0xc30] sm:$0x3] %v3447_v31  ;;  %v3827_v28 = vld [vmem:[%s6329_s0 + $0x14] sm:$0x3]  ;;  %v3828_v29 = vld [vmem:[%s6329_s0 + $0x12] sm:$0x3] }
  0x4c   :  { %495 = vst [vmem:[#allocation0 + $0xc28] sm:$0x3] %v3448_v34  ;;  %v2735_v40 = vld [vmem:[#allocation0 + $0xa01] ss:$8 sm:$0xf0]  }
  0x4d   :  { %499 = vst [vmem:[#allocation0 + $0xc20] sm:$0x3] %v3449_v35  ;;  %v3829_v30 = vld [vmem:[%s6329_s0 + $0x10] sm:$0x3]  ;;  %v3758_v32 = vld [vmem:[%s6329_s0 + $0x9e] sm:$0x3] }
  0x4e   :  { %503 = vst [vmem:[#allocation0 + $0xc18] sm:$0x3] %v3450_v36  ;;  %v3759_v33 = vld [vmem:[%s6329_s0 + $0x9c] sm:$0x3]  ;;  %v3760_v36 = vld [vmem:[%s6329_s0 + $0x9a] sm:$0x3] }
  0x4f   :  { %507 = vst [vmem:[#allocation0 + $0xc10] sm:$0x3] %v3451_v37  ;;  %v3761_v37 = vld [vmem:[%s6329_s0 + $0x98] sm:$0x3] }
  0x50   :  { %v2733_v43 = vld [vmem:[#allocation0 + $0xa01] ss:$8 sm:$0xf]   ;;  %511 = vst [vmem:[#allocation0 + $0xc08] sm:$0x3] %v3452_v38 }
  0x51   :  { %v2737_v44 = vsel %vm2052_vm0, %v2735_v40, %v2733_v43  ;;  %515 = vst [vmem:[#allocation0 + $0xc00] sm:$0x3] %v3453_v39  ;;  %v3762_v38 = vld [vmem:[%s6329_s0 + $0x96] sm:$0x3]  ;;  %v3763_v39 = vld [vmem:[%s6329_s0 + $0x94] sm:$0x3] }
  0x52   :  { %2738 = vrot.lane.b32.xlu1 %v2737_v44, %s3964_s15  ;;  %1383 = vst [vmem:[#allocation0 + $0x538] sm:$0x3] %v3670_v41  ;;  %v3764_v40 = vld [vmem:[%s6329_s0 + $0x92] sm:$0x3]  ;;  %v3765_v41 = vld [vmem:[%s6329_s0 + $0x90] sm:$0x3] }
  0x53   :  { %1387 = vst [vmem:[#allocation0 + $0x530] sm:$0x3] %v3671_v42  ;;  %v3478_v43 = vld [vmem:[%s6329_s0 + $0x2ce] sm:$0x3]  ;;  %v3479_v44 = vld [vmem:[%s6329_s0 + $0x2cc] sm:$0x3] }
  0x54   :  { %1391 = vst [vmem:[#allocation0 + $0x528] sm:$0x3] %v3672_v45  ;;  %v2757_v51 = vld [vmem:[#allocation0 + $0xc01] ss:$8 sm:$0xf0]  }
  0x55   :  { %1395 = vst [vmem:[#allocation0 + $0x520] sm:$0x3] %v3673_v46 }
  0x56   :  { %1399 = vst [vmem:[#allocation0 + $0x518] sm:$0x3] %v3674_v47  ;;  %v3480_v47 = vld [vmem:[%s6329_s0 + $0x2ca] sm:$0x3] }
  0x57   :  { %1403 = vst [vmem:[#allocation0 + $0x510] sm:$0x3] %v3675_v48  ;;  %v3481_v48 = vld [vmem:[%s6329_s0 + $0x2c8] sm:$0x3] }
  0x58   :  { %v2755_v54 = vld [vmem:[#allocation0 + $0xc01] ss:$8 sm:$0xf]   ;;  %1407 = vst [vmem:[#allocation0 + $0x508] sm:$0x3] %v3676_v49 }
  0x59   :  { %v2759_v55 = vsel %vm2052_vm0, %v2757_v51, %v2755_v54  ;;  %1411 = vst [vmem:[#allocation0 + $0x500] sm:$0x3] %v3677_v50  ;;  %v3482_v49 = vld [vmem:[%s6329_s0 + $0x2c6] sm:$0x3]  ;;  %v3483_v50 = vld [vmem:[%s6329_s0 + $0x2c4] sm:$0x3] }
  0x5a   :  { %2760 = vrot.lane.b32.xlu0 %v2759_v55, %s3964_s15  ;;  %359 = vst [vmem:[#allocation0 + $0xd38] sm:$0x3] %v3414_v52  ;;  %v3484_v51 = vld [vmem:[%s6329_s0 + $0x2c2] sm:$0x3]  ;;  %v3485_v52 = vld [vmem:[%s6329_s0 + $0x2c0] sm:$0x3] }
  0x5b   :  { %363 = vst [vmem:[#allocation0 + $0xd30] sm:$0x3] %v3415_v53  ;;  %v3726_v54 = vld [vmem:[%s6329_s0 + $0xde] sm:$0x3]  ;;  %v3727_v55 = vld [vmem:[%s6329_s0 + $0xdc] sm:$0x3] }
  0x5c   :  { %367 = vst [vmem:[#allocation0 + $0xd28] sm:$0x3] %v3416_v56  ;;  %v2680_v62 = vld [vmem:[#allocation0 + $0x501] ss:$8 sm:$0xf0]  }
  0x5d   :  { %371 = vst [vmem:[#allocation0 + $0xd20] sm:$0x3] %v3417_v57 }
  0x5e   :  { %375 = vst [vmem:[#allocation0 + $0xd18] sm:$0x3] %v3418_v58  ;;  %v3728_v58 = vld [vmem:[%s6329_s0 + $0xda] sm:$0x3] }
  0x5f   :  { %379 = vst [vmem:[#allocation0 + $0xd10] sm:$0x3] %v3419_v59  ;;  %v3729_v59 = vld [vmem:[%s6329_s0 + $0xd8] sm:$0x3] }
  0x60   :  { %v2678_v1 = vld [vmem:[#allocation0 + $0x501] ss:$8 sm:$0xf]   ;;  %383 = vst [vmem:[#allocation0 + $0xd08] sm:$0x3] %v3420_v60 }
  0x61   :  { %v2682_v2 = vsel %vm2052_vm0, %v2680_v62, %v2678_v1  ;;  %387 = vst [vmem:[#allocation0 + $0xd00] sm:$0x3] %v3421_v61  ;;  %v3730_v60 = vld [vmem:[%s6329_s0 + $0xd6] sm:$0x3]  ;;  %v3731_v61 = vld [vmem:[%s6329_s0 + $0xd4] sm:$0x3] }
  0x62   :  { %2683 = vrot.lane.b32.xlu2 %v2682_v2, %s3964_s15  ;;  %103 = vst [vmem:[#allocation0 + $0xf38] sm:$0x3] %v3350_v63  ;;  %v3732_v62 = vld [vmem:[%s6329_s0 + $0xd2] sm:$0x3]  ;;  %v3733_v63 = vld [vmem:[%s6329_s0 + $0xd0] sm:$0x3] }
  0x63   :  { %107 = vst [vmem:[#allocation0 + $0xf30] sm:$0x3] %v3351_v0  ;;  %v3662_v1 = vld [vmem:[%s6329_s0 + $0x15e] sm:$0x3]  ;;  %v3663_v2 = vld [vmem:[%s6329_s0 + $0x15c] sm:$0x3] }
  0x64   :  { %111 = vst [vmem:[#allocation0 + $0xf28] sm:$0x3] %v3352_v3  ;;  %v2768_v9 = vld [vmem:[#allocation0 + $0xd01] ss:$8 sm:$0xf0]  }
  0x65   :  { %115 = vst [vmem:[#allocation0 + $0xf20] sm:$0x3] %v3353_v4 }
  0x66   :  { %119 = vst [vmem:[#allocation0 + $0xf18] sm:$0x3] %v3354_v5  ;;  %v3664_v5 = vld [vmem:[%s6329_s0 + $0x15a] sm:$0x3] }
  0x67   :  { %123 = vst [vmem:[#allocation0 + $0xf10] sm:$0x3] %v3355_v6  ;;  %v3665_v6 = vld [vmem:[%s6329_s0 + $0x158] sm:$0x3] }
  0x68   :  { %v2766_v12 = vld [vmem:[#allocation0 + $0xd01] ss:$8 sm:$0xf]   ;;  %127 = vst [vmem:[#allocation0 + $0xf08] sm:$0x3] %v3356_v7 }
  0x69   :  { %v2770_v13 = vsel %vm2052_vm0, %v2768_v9, %v2766_v12  ;;  %131 = vst [vmem:[#allocation0 + $0xf00] sm:$0x3] %v3357_v8  ;;  %v3666_v7 = vld [vmem:[%s6329_s0 + $0x156] sm:$0x3]  ;;  %v3667_v8 = vld [vmem:[%s6329_s0 + $0x154] sm:$0x3] }
  0x6a   :  { %2771 = vrot.lane.b32.xlu1 %v2770_v13, %s3964_s15  ;;  %999 = vst [vmem:[#allocation0 + $0x838] sm:$0x3] %v3574_v10  ;;  %v3668_v9 = vld [vmem:[%s6329_s0 + $0x152] sm:$0x3]  ;;  %v3669_v10 = vld [vmem:[%s6329_s0 + $0x150] sm:$0x3] }
  0x6b   :  { %1003 = vst [vmem:[#allocation0 + $0x830] sm:$0x3] %v3575_v11  ;;  %v3630_v12 = vld [vmem:[%s6329_s0 + $0x19e] sm:$0x3]  ;;  %v3631_v13 = vld [vmem:[%s6329_s0 + $0x19c] sm:$0x3] }
  0x6c   :  { %1007 = vst [vmem:[#allocation0 + $0x828] sm:$0x3] %v3576_v14  ;;  %v2790_v20 = vld [vmem:[#allocation0 + $0xf01] ss:$8 sm:$0xf0]  }
  0x6d   :  { %1011 = vst [vmem:[#allocation0 + $0x820] sm:$0x3] %v3577_v15 }
  0x6e   :  { %1015 = vst [vmem:[#allocation0 + $0x818] sm:$0x3] %v3578_v16  ;;  %v3632_v16 = vld [vmem:[%s6329_s0 + $0x19a] sm:$0x3] }
  0x6f   :  { %1019 = vst [vmem:[#allocation0 + $0x810] sm:$0x3] %v3579_v17  ;;  %v3633_v17 = vld [vmem:[%s6329_s0 + $0x198] sm:$0x3] }
  0x70   :  { %v2788_v23 = vld [vmem:[#allocation0 + $0xf01] ss:$8 sm:$0xf]   ;;  %1023 = vst [vmem:[#allocation0 + $0x808] sm:$0x3] %v3580_v18 }
  0x71   :  { %v2792_v24 = vsel %vm2052_vm0, %v2790_v20, %v2788_v23  ;;  %1027 = vst [vmem:[#allocation0 + $0x800] sm:$0x3] %v3581_v19  ;;  %v3634_v18 = vld [vmem:[%s6329_s0 + $0x196] sm:$0x3]  ;;  %v3635_v19 = vld [vmem:[%s6329_s0 + $0x194] sm:$0x3] }
  0x72   :  { %2793 = vrot.lane.b32.xlu0 %v2792_v24, %s3964_s15  ;;  %1991 = vst [vmem:[#allocation0 + $0x78] sm:$0x3] %v3822_v21  ;;  %v3636_v20 = vld [vmem:[%s6329_s0 + $0x192] sm:$0x3]  ;;  %v3637_v21 = vld [vmem:[%s6329_s0 + $0x190] sm:$0x3] }
  0x73   :  { %1995 = vst [vmem:[#allocation0 + $0x70] sm:$0x3] %v3823_v22  ;;  %v3382_v23 = vld [vmem:[%s6329_s0 + $0x38e] sm:$0x3]  ;;  %v3383_v24 = vld [vmem:[%s6329_s0 + $0x38c] sm:$0x3] }
  0x74   :  { %1999 = vst [vmem:[#allocation0 + $0x68] sm:$0x3] %v3824_v25  ;;  %v2713_v31 = vld [vmem:[#allocation0 + $0x801] ss:$8 sm:$0xf0]  }
  0x75   :  { %2003 = vst [vmem:[#allocation0 + $0x60] sm:$0x3] %v3825_v26 }
  0x76   :  { %2007 = vst [vmem:[#allocation0 + $0x58] sm:$0x3] %v3826_v27  ;;  %v3384_v27 = vld [vmem:[%s6329_s0 + $0x38a] sm:$0x3] }
  0x77   :  { %2011 = vst [vmem:[#allocation0 + $0x50] sm:$0x3] %v3827_v28  ;;  %v3385_v28 = vld [vmem:[%s6329_s0 + $0x388] sm:$0x3] }
  0x78   :  { %v2711_v34 = vld [vmem:[#allocation0 + $0x801] ss:$8 sm:$0xf]   ;;  %2015 = vst [vmem:[#allocation0 + $0x48] sm:$0x3] %v3828_v29 }
  0x79   :  { %v2715_v35 = vsel %vm2052_vm0, %v2713_v31, %v2711_v34  ;;  %2019 = vst [vmem:[#allocation0 + $0x40] sm:$0x3] %v3829_v30  ;;  %v3386_v29 = vld [vmem:[%s6329_s0 + $0x386] sm:$0x3]  ;;  %v3387_v30 = vld [vmem:[%s6329_s0 + $0x384] sm:$0x3] }
  0x7a   :  { %2716 = vrot.lane.b32.xlu2 %v2715_v35, %s3964_s15  ;;  %1735 = vst [vmem:[#allocation0 + $0x278] sm:$0x3] %v3758_v32  ;;  %v3388_v31 = vld [vmem:[%s6329_s0 + $0x382] sm:$0x3]  ;;  %v3389_v32 = vld [vmem:[%s6329_s0 + $0x380] sm:$0x3] }
  0x7b   :  { %1739 = vst [vmem:[#allocation0 + $0x270] sm:$0x3] %v3759_v33  ;;  %v3566_v34 = vld [vmem:[%s6329_s0 + $0x21e] sm:$0x3]  ;;  %v3567_v35 = vld [vmem:[%s6329_s0 + $0x21c] sm:$0x3] }
  0x7c   :  { %1743 = vst [vmem:[#allocation0 + $0x268] sm:$0x3] %v3760_v36  ;;  %v2801_v42 = vld [vmem:[#allocation0 + $0x41] ss:$8 sm:$0xf0]  }
  0x7d   :  { %1747 = vst [vmem:[#allocation0 + $0x260] sm:$0x3] %v3761_v37 }
  0x7e   :  { %1751 = vst [vmem:[#allocation0 + $0x258] sm:$0x3] %v3762_v38  ;;  %v3568_v38 = vld [vmem:[%s6329_s0 + $0x21a] sm:$0x3] }
  0x7f   :  { %1755 = vst [vmem:[#allocation0 + $0x250] sm:$0x3] %v3763_v39  ;;  %v3569_v39 = vld [vmem:[%s6329_s0 + $0x218] sm:$0x3] }
  0x80   :  { %v2799_v45 = vld [vmem:[#allocation0 + $0x41] ss:$8 sm:$0xf]   ;;  %1759 = vst [vmem:[#allocation0 + $0x248] sm:$0x3] %v3764_v40 }
  0x81   :  { %v2803_v46 = vsel %vm2052_vm0, %v2801_v42, %v2799_v45  ;;  %1763 = vst [vmem:[#allocation0 + $0x240] sm:$0x3] %v3765_v41  ;;  %v3570_v40 = vld [vmem:[%s6329_s0 + $0x216] sm:$0x3]  ;;  %v3571_v41 = vld [vmem:[%s6329_s0 + $0x214] sm:$0x3] }
  0x82   :  { %2804 = vrot.lane.b32.xlu1 %v2803_v46, %s3964_s15  ;;  %615 = vst [vmem:[#allocation0 + $0xb38] sm:$0x3] %v3478_v43  ;;  %v3572_v42 = vld [vmem:[%s6329_s0 + $0x212] sm:$0x3]  ;;  %v3573_v43 = vld [vmem:[%s6329_s0 + $0x210] sm:$0x3] }
  0x83   :  { %619 = vst [vmem:[#allocation0 + $0xb30] sm:$0x3] %v3479_v44  ;;  %v3534_v45 = vld [vmem:[%s6329_s0 + $0x25e] sm:$0x3]  ;;  %v3535_v46 = vld [vmem:[%s6329_s0 + $0x25c] sm:$0x3] }
  0x84   :  { %623 = vst [vmem:[#allocation0 + $0xb28] sm:$0x3] %v3480_v47  ;;  %v2823_v53 = vld [vmem:[#allocation0 + $0x241] ss:$8 sm:$0xf0]  }
  0x85   :  { %627 = vst [vmem:[#allocation0 + $0xb20] sm:$0x3] %v3481_v48 }
  0x86   :  { %631 = vst [vmem:[#allocation0 + $0xb18] sm:$0x3] %v3482_v49  ;;  %v3536_v49 = vld [vmem:[%s6329_s0 + $0x25a] sm:$0x3] }
  0x87   :  { %635 = vst [vmem:[#allocation0 + $0xb10] sm:$0x3] %v3483_v50  ;;  %v3537_v50 = vld [vmem:[%s6329_s0 + $0x258] sm:$0x3] }
  0x88   :  { %v2821_v56 = vld [vmem:[#allocation0 + $0x241] ss:$8 sm:$0xf]   ;;  %639 = vst [vmem:[#allocation0 + $0xb08] sm:$0x3] %v3484_v51 }
  0x89   :  { %v2825_v57 = vsel %vm2052_vm0, %v2823_v53, %v2821_v56  ;;  %643 = vst [vmem:[#allocation0 + $0xb00] sm:$0x3] %v3485_v52  ;;  %v3538_v51 = vld [vmem:[%s6329_s0 + $0x256] sm:$0x3]  ;;  %v3539_v52 = vld [vmem:[%s6329_s0 + $0x254] sm:$0x3] }
  0x8a   :  { %2826 = vrot.lane.b32.xlu0 %v2825_v57, %s3964_s15  ;;  %1607 = vst [vmem:[#allocation0 + $0x378] sm:$0x3] %v3726_v54  ;;  %v3540_v53 = vld [vmem:[%s6329_s0 + $0x252] sm:$0x3]  ;;  %v3541_v54 = vld [vmem:[%s6329_s0 + $0x250] sm:$0x3] }
  0x8b   :  { %1611 = vst [vmem:[#allocation0 + $0x370] sm:$0x3] %v3727_v55  ;;  %v3790_v56 = vld [vmem:[%s6329_s0 + $0x5e] sm:$0x3]  ;;  %v3791_v57 = vld [vmem:[%s6329_s0 + $0x5c] sm:$0x3] }
  0x8c   :  { %1615 = vst [vmem:[#allocation0 + $0x368] sm:$0x3] %v3728_v58  ;;  %v2746_v0 = vld [vmem:[#allocation0 + $0xb01] ss:$8 sm:$0xf0]  }
  0x8d   :  { %1619 = vst [vmem:[#allocation0 + $0x360] sm:$0x3] %v3729_v59 }
  0x8e   :  { %1623 = vst [vmem:[#allocation0 + $0x358] sm:$0x3] %v3730_v60  ;;  %v3792_v60 = vld [vmem:[%s6329_s0 + $0x5a] sm:$0x3] }
  0x8f   :  { %1627 = vst [vmem:[#allocation0 + $0x350] sm:$0x3] %v3731_v61  ;;  %v3793_v61 = vld [vmem:[%s6329_s0 + $0x58] sm:$0x3] }
  0x90   :  { %v2744_v3 = vld [vmem:[#allocation0 + $0xb01] ss:$8 sm:$0xf]   ;;  %1631 = vst [vmem:[#allocation0 + $0x348] sm:$0x3] %v3732_v62 }
  0x91   :  { %v2748_v4 = vsel %vm2052_vm0, %v2746_v0, %v2744_v3  ;;  %1635 = vst [vmem:[#allocation0 + $0x340] sm:$0x3] %v3733_v63  ;;  %v3794_v62 = vld [vmem:[%s6329_s0 + $0x56] sm:$0x3]  ;;  %v3795_v63 = vld [vmem:[%s6329_s0 + $0x54] sm:$0x3] }
  0x92   :  { %2749 = vrot.lane.b32.xlu2 %v2748_v4, %s3964_s15  ;;  %1351 = vst [vmem:[#allocation0 + $0x578] sm:$0x3] %v3662_v1  ;;  %v3796_v0 = vld [vmem:[%s6329_s0 + $0x52] sm:$0x3]  ;;  %v3797_v1 = vld [vmem:[%s6329_s0 + $0x50] sm:$0x3] }
  0x93   :  { %1355 = vst [vmem:[#allocation0 + $0x570] sm:$0x3] %v3663_v2  ;;  %v3470_v3 = vld [vmem:[%s6329_s0 + $0x2de] sm:$0x3]  ;;  %v3471_v4 = vld [vmem:[%s6329_s0 + $0x2dc] sm:$0x3] }
  0x94   :  { %1359 = vst [vmem:[#allocation0 + $0x568] sm:$0x3] %v3664_v5  ;;  %v2834_v11 = vld [vmem:[#allocation0 + $0x341] ss:$8 sm:$0xf0]  }
  0x95   :  { %1363 = vst [vmem:[#allocation0 + $0x560] sm:$0x3] %v3665_v6 }
  0x96   :  { %1367 = vst [vmem:[#allocation0 + $0x558] sm:$0x3] %v3666_v7  ;;  %v3472_v7 = vld [vmem:[%s6329_s0 + $0x2da] sm:$0x3] }
  0x97   :  { %1371 = vst [vmem:[#allocation0 + $0x550] sm:$0x3] %v3667_v8  ;;  %v3473_v8 = vld [vmem:[%s6329_s0 + $0x2d8] sm:$0x3] }
  0x98   :  { %v2832_v14 = vld [vmem:[#allocation0 + $0x341] ss:$8 sm:$0xf]   ;;  %1375 = vst [vmem:[#allocation0 + $0x548] sm:$0x3] %v3668_v9 }
  0x99   :  { %v2836_v15 = vsel %vm2052_vm0, %v2834_v11, %v2832_v14  ;;  %1379 = vst [vmem:[#allocation0 + $0x540] sm:$0x3] %v3669_v10  ;;  %v3474_v9 = vld [vmem:[%s6329_s0 + $0x2d6] sm:$0x3]  ;;  %v3475_v10 = vld [vmem:[%s6329_s0 + $0x2d4] sm:$0x3] }
  0x9a   :  { %2837 = vrot.lane.b32.xlu1 %v2836_v15, %s3964_s15  ;;  %1223 = vst [vmem:[#allocation0 + $0x678] sm:$0x3] %v3630_v12  ;;  %v3476_v11 = vld [vmem:[%s6329_s0 + $0x2d2] sm:$0x3]  ;;  %v3477_v12 = vld [vmem:[%s6329_s0 + $0x2d0] sm:$0x3] }
  0x9b   :  { %1227 = vst [vmem:[#allocation0 + $0x670] sm:$0x3] %v3631_v13  ;;  %v3438_v14 = vld [vmem:[%s6329_s0 + $0x31e] sm:$0x3]  ;;  %v3439_v15 = vld [vmem:[%s6329_s0 + $0x31c] sm:$0x3] }
  0x9c   :  { %1231 = vst [vmem:[#allocation0 + $0x668] sm:$0x3] %v3632_v16  ;;  %v2856_v22 = vld [vmem:[#allocation0 + $0x541] ss:$8 sm:$0xf0]  }
  0x9d   :  { %1235 = vst [vmem:[#allocation0 + $0x660] sm:$0x3] %v3633_v17 }
  0x9e   :  { %1239 = vst [vmem:[#allocation0 + $0x658] sm:$0x3] %v3634_v18  ;;  %v3440_v18 = vld [vmem:[%s6329_s0 + $0x31a] sm:$0x3] }
  0x9f   :  { %1243 = vst [vmem:[#allocation0 + $0x650] sm:$0x3] %v3635_v19  ;;  %v3441_v19 = vld [vmem:[%s6329_s0 + $0x318] sm:$0x3] }
  0xa0   :  { %v2854_v25 = vld [vmem:[#allocation0 + $0x541] ss:$8 sm:$0xf]   ;;  %1247 = vst [vmem:[#allocation0 + $0x648] sm:$0x3] %v3636_v20 }
  0xa1   :  { %v2858_v26 = vsel %vm2052_vm0, %v2856_v22, %v2854_v25  ;;  %1251 = vst [vmem:[#allocation0 + $0x640] sm:$0x3] %v3637_v21  ;;  %v3442_v20 = vld [vmem:[%s6329_s0 + $0x316] sm:$0x3]  ;;  %v3443_v21 = vld [vmem:[%s6329_s0 + $0x314] sm:$0x3] }
  0xa2   :  { %2859 = vrot.lane.b32.xlu0 %v2858_v26, %s3964_s15  ;;  %231 = vst [vmem:[#allocation0 + $0xe38] sm:$0x3] %v3382_v23  ;;  %v3444_v22 = vld [vmem:[%s6329_s0 + $0x312] sm:$0x3]  ;;  %v3445_v23 = vld [vmem:[%s6329_s0 + $0x310] sm:$0x3] }
  0xa3   :  { %235 = vst [vmem:[#allocation0 + $0xe30] sm:$0x3] %v3383_v24  ;;  %v3694_v25 = vld [vmem:[%s6329_s0 + $0x11e] sm:$0x3]  ;;  %v3695_v26 = vld [vmem:[%s6329_s0 + $0x11c] sm:$0x3] }
  0xa4   :  { %239 = vst [vmem:[#allocation0 + $0xe28] sm:$0x3] %v3384_v27  ;;  %v2867_v33 = vld [vmem:[#allocation0 + $0x641] ss:$8 sm:$0xf0]  }
  0xa5   :  { %243 = vst [vmem:[#allocation0 + $0xe20] sm:$0x3] %v3385_v28 }
  0xa6   :  { %247 = vst [vmem:[#allocation0 + $0xe18] sm:$0x3] %v3386_v29  ;;  %v3696_v29 = vld [vmem:[%s6329_s0 + $0x11a] sm:$0x3] }
  0xa7   :  { %251 = vst [vmem:[#allocation0 + $0xe10] sm:$0x3] %v3387_v30  ;;  %v3697_v30 = vld [vmem:[%s6329_s0 + $0x118] sm:$0x3] }
  0xa8   :  { %v2865_v36 = vld [vmem:[#allocation0 + $0x641] ss:$8 sm:$0xf]   ;;  %255 = vst [vmem:[#allocation0 + $0xe08] sm:$0x3] %v3388_v31 }
  0xa9   :  { %v2869_v37 = vsel %vm2052_vm0, %v2867_v33, %v2865_v36  ;;  %259 = vst [vmem:[#allocation0 + $0xe00] sm:$0x3] %v3389_v32  ;;  %v3698_v31 = vld [vmem:[%s6329_s0 + $0x116] sm:$0x3]  ;;  %v3699_v32 = vld [vmem:[%s6329_s0 + $0x114] sm:$0x3] }
  0xaa   :  { %2870 = vrot.lane.b32.xlu1 %v2869_v37, %s3964_s15  ;;  %967 = vst [vmem:[#allocation0 + $0x878] sm:$0x3] %v3566_v34  ;;  %v3700_v33 = vld [vmem:[%s6329_s0 + $0x112] sm:$0x3]  ;;  %v3701_v34 = vld [vmem:[%s6329_s0 + $0x110] sm:$0x3] }
  0xab   :  { %971 = vst [vmem:[#allocation0 + $0x870] sm:$0x3] %v3567_v35  ;;  %v3374_v36 = vld [vmem:[%s6329_s0 + $0x39e] sm:$0x3]  ;;  %v3375_v37 = vld [vmem:[%s6329_s0 + $0x39c] sm:$0x3] }
  0xac   :  { %975 = vst [vmem:[#allocation0 + $0x868] sm:$0x3] %v3568_v38  ;;  %v2779_v44 = vld [vmem:[#allocation0 + $0xe01] ss:$8 sm:$0xf0]  }
  0xad   :  { %979 = vst [vmem:[#allocation0 + $0x860] sm:$0x3] %v3569_v39 }
  0xae   :  { %983 = vst [vmem:[#allocation0 + $0x858] sm:$0x3] %v3570_v40  ;;  %v3376_v40 = vld [vmem:[%s6329_s0 + $0x39a] sm:$0x3] }
  0xaf   :  { %987 = vst [vmem:[#allocation0 + $0x850] sm:$0x3] %v3571_v41  ;;  %v3377_v41 = vld [vmem:[%s6329_s0 + $0x398] sm:$0x3] }
  0xb0   :  { %v2777_v47 = vld [vmem:[#allocation0 + $0xe01] ss:$8 sm:$0xf]   ;;  %991 = vst [vmem:[#allocation0 + $0x848] sm:$0x3] %v3572_v42 }
  0xb1   :  { %v2781_v48 = vsel %vm2052_vm0, %v2779_v44, %v2777_v47  ;;  %995 = vst [vmem:[#allocation0 + $0x840] sm:$0x3] %v3573_v43  ;;  %v3378_v42 = vld [vmem:[%s6329_s0 + $0x396] sm:$0x3]  ;;  %v3379_v43 = vld [vmem:[%s6329_s0 + $0x394] sm:$0x3] }
  0xb2   :  { %2782 = vrot.lane.b32.xlu2 %v2781_v48, %s3964_s15  ;;  %839 = vst [vmem:[#allocation0 + $0x978] sm:$0x3] %v3534_v45  ;;  %v3380_v44 = vld [vmem:[%s6329_s0 + $0x392] sm:$0x3]  ;;  %v3381_v45 = vld [vmem:[%s6329_s0 + $0x390] sm:$0x3] }
  0xb3   :  { %843 = vst [vmem:[#allocation0 + $0x970] sm:$0x3] %v3535_v46  ;;  %v3598_v47 = vld [vmem:[%s6329_s0 + $0x1de] sm:$0x3]  ;;  %v3599_v48 = vld [vmem:[%s6329_s0 + $0x1dc] sm:$0x3] }
  0xb4   :  { %847 = vst [vmem:[#allocation0 + $0x968] sm:$0x3] %v3536_v49  ;;  %v2889_v55 = vld [vmem:[#allocation0 + $0x841] ss:$8 sm:$0xf0]  }
  0xb5   :  { %851 = vst [vmem:[#allocation0 + $0x960] sm:$0x3] %v3537_v50 }
  0xb6   :  { %855 = vst [vmem:[#allocation0 + $0x958] sm:$0x3] %v3538_v51  ;;  %v3600_v51 = vld [vmem:[%s6329_s0 + $0x1da] sm:$0x3] }
  0xb7   :  { %859 = vst [vmem:[#allocation0 + $0x950] sm:$0x3] %v3539_v52  ;;  %v3601_v52 = vld [vmem:[%s6329_s0 + $0x1d8] sm:$0x3] }
  0xb8   :  { %v2887_v58 = vld [vmem:[#allocation0 + $0x841] ss:$8 sm:$0xf]   ;;  %863 = vst [vmem:[#allocation0 + $0x948] sm:$0x3] %v3540_v53 }
  0xb9   :  { %v2891_v59 = vsel %vm2052_vm0, %v2889_v55, %v2887_v58  ;;  %867 = vst [vmem:[#allocation0 + $0x940] sm:$0x3] %v3541_v54  ;;  %v3602_v53 = vld [vmem:[%s6329_s0 + $0x1d6] sm:$0x3]  ;;  %v3603_v54 = vld [vmem:[%s6329_s0 + $0x1d4] sm:$0x3] }
  0xba   :  { %2892 = vrot.lane.b32.xlu0 %v2891_v59, %s3964_s15  ;;  %1863 = vst [vmem:[#allocation0 + $0x178] sm:$0x3] %v3790_v56  ;;  %v3604_v55 = vld [vmem:[%s6329_s0 + $0x1d2] sm:$0x3]  ;;  %v3605_v56 = vld [vmem:[%s6329_s0 + $0x1d0] sm:$0x3] }
  0xbb   :  { %1867 = vst [vmem:[#allocation0 + $0x170] sm:$0x3] %v3791_v57  ;;  %v3782_v58 = vld [vmem:[%s6329_s0 + $0x6e] sm:$0x3]  ;;  %v3783_v59 = vld [vmem:[%s6329_s0 + $0x6c] sm:$0x3] }
  0xbc   :  { %1871 = vst [vmem:[#allocation0 + $0x168] sm:$0x3] %v3792_v60  ;;  %v2900_v2 = vld [vmem:[#allocation0 + $0x941] ss:$8 sm:$0xf0]  }
  0xbd   :  { %1875 = vst [vmem:[#allocation0 + $0x160] sm:$0x3] %v3793_v61 }
  0xbe   :  { %1879 = vst [vmem:[#allocation0 + $0x158] sm:$0x3] %v3794_v62  ;;  %v3784_v62 = vld [vmem:[%s6329_s0 + $0x6a] sm:$0x3] }
  0xbf   :  { %1883 = vst [vmem:[#allocation0 + $0x150] sm:$0x3] %v3795_v63  ;;  %v3785_v63 = vld [vmem:[%s6329_s0 + $0x68] sm:$0x3] }
  0xc0   :  { %v2898_v5 = vld [vmem:[#allocation0 + $0x941] ss:$8 sm:$0xf]   ;;  %1887 = vst [vmem:[#allocation0 + $0x148] sm:$0x3] %v3796_v0 }
  0xc1   :  { %v2902_v6 = vsel %vm2052_vm0, %v2900_v2, %v2898_v5  ;;  %1891 = vst [vmem:[#allocation0 + $0x140] sm:$0x3] %v3797_v1  ;;  %v3786_v0 = vld [vmem:[%s6329_s0 + $0x66] sm:$0x3]  ;;  %v3787_v1 = vld [vmem:[%s6329_s0 + $0x64] sm:$0x3] }
  0xc2   :  { %2903 = vrot.lane.b32.xlu1 %v2902_v6, %s3964_s15  ;;  %583 = vst [vmem:[#allocation0 + $0xb78] sm:$0x3] %v3470_v3  ;;  %v3788_v2 = vld [vmem:[%s6329_s0 + $0x62] sm:$0x3]  ;;  %v3789_v3 = vld [vmem:[%s6329_s0 + $0x60] sm:$0x3] }
  0xc3   :  { %587 = vst [vmem:[#allocation0 + $0xb70] sm:$0x3] %v3471_v4  ;;  %v3342_v5 = vld [vmem:[%s6329_s0 + $0x3de] sm:$0x3]  ;;  %v3343_v6 = vld [vmem:[%s6329_s0 + $0x3dc] sm:$0x3] }
  0xc4   :  { %591 = vst [vmem:[#allocation0 + $0xb68] sm:$0x3] %v3472_v7  ;;  %v2812_v13 = vld [vmem:[#allocation0 + $0x141] ss:$8 sm:$0xf0]  }
  0xc5   :  { %595 = vst [vmem:[#allocation0 + $0xb60] sm:$0x3] %v3473_v8 }
  0xc6   :  { %599 = vst [vmem:[#allocation0 + $0xb58] sm:$0x3] %v3474_v9  ;;  %v3344_v9 = vld [vmem:[%s6329_s0 + $0x3da] sm:$0x3] }
  0xc7   :  { %603 = vst [vmem:[#allocation0 + $0xb50] sm:$0x3] %v3475_v10  ;;  %v3345_v10 = vld [vmem:[%s6329_s0 + $0x3d8] sm:$0x3] }
  0xc8   :  { %v2810_v16 = vld [vmem:[#allocation0 + $0x141] ss:$8 sm:$0xf]   ;;  %607 = vst [vmem:[#allocation0 + $0xb48] sm:$0x3] %v3476_v11 }
  0xc9   :  { %v2814_v17 = vsel %vm2052_vm0, %v2812_v13, %v2810_v16  ;;  %611 = vst [vmem:[#allocation0 + $0xb40] sm:$0x3] %v3477_v12  ;;  %v3346_v11 = vld [vmem:[%s6329_s0 + $0x3d6] sm:$0x3]  ;;  %v3347_v12 = vld [vmem:[%s6329_s0 + $0x3d4] sm:$0x3] }
  0xca   :  { %2815 = vrot.lane.b32.xlu2 %v2814_v17, %s3964_s15  ;;  %455 = vst [vmem:[#allocation0 + $0xc78] sm:$0x3] %v3438_v14  ;;  %v3348_v13 = vld [vmem:[%s6329_s0 + $0x3d2] sm:$0x3]  ;;  %v3349_v14 = vld [vmem:[%s6329_s0 + $0x3d0] sm:$0x3] }
  0xcb   :  { %459 = vst [vmem:[#allocation0 + $0xc70] sm:$0x3] %v3439_v15  ;;  %v3502_v16 = vld [vmem:[%s6329_s0 + $0x29e] sm:$0x3]  ;;  %v3503_v17 = vld [vmem:[%s6329_s0 + $0x29c] sm:$0x3] }
  0xcc   :  { %463 = vst [vmem:[#allocation0 + $0xc68] sm:$0x3] %v3440_v18  ;;  %v2922_v24 = vld [vmem:[#allocation0 + $0xb41] ss:$8 sm:$0xf0]  }
  0xcd   :  { %467 = vst [vmem:[#allocation0 + $0xc60] sm:$0x3] %v3441_v19 }
  0xce   :  { %471 = vst [vmem:[#allocation0 + $0xc58] sm:$0x3] %v3442_v20  ;;  %v3504_v20 = vld [vmem:[%s6329_s0 + $0x29a] sm:$0x3] }
  0xcf   :  { %475 = vst [vmem:[#allocation0 + $0xc50] sm:$0x3] %v3443_v21  ;;  %v3505_v21 = vld [vmem:[%s6329_s0 + $0x298] sm:$0x3] }
  0xd0   :  { %v2920_v27 = vld [vmem:[#allocation0 + $0xb41] ss:$8 sm:$0xf]   ;;  %479 = vst [vmem:[#allocation0 + $0xc48] sm:$0x3] %v3444_v22 }
  0xd1   :  { %v2924_v28 = vsel %vm2052_vm0, %v2922_v24, %v2920_v27  ;;  %483 = vst [vmem:[#allocation0 + $0xc40] sm:$0x3] %v3445_v23  ;;  %v3506_v22 = vld [vmem:[%s6329_s0 + $0x296] sm:$0x3]  ;;  %v3507_v23 = vld [vmem:[%s6329_s0 + $0x294] sm:$0x3] }
  0xd2   :  { %2925 = vrot.lane.b32.xlu0 %v2924_v28, %s3964_s15  ;;  %1479 = vst [vmem:[#allocation0 + $0x478] sm:$0x3] %v3694_v25  ;;  %v3508_v24 = vld [vmem:[%s6329_s0 + $0x292] sm:$0x3]  ;;  %v3509_v25 = vld [vmem:[%s6329_s0 + $0x290] sm:$0x3] }
  0xd3   :  { %1483 = vst [vmem:[#allocation0 + $0x470] sm:$0x3] %v3695_v26  ;;  %v3686_v27 = vld [vmem:[%s6329_s0 + $0x12e] sm:$0x3]  ;;  %v3687_v28 = vld [vmem:[%s6329_s0 + $0x12c] sm:$0x3] }
  0xd4   :  { %1487 = vst [vmem:[#allocation0 + $0x468] sm:$0x3] %v3696_v29  ;;  %v2933_v35 = vld [vmem:[#allocation0 + $0xc41] ss:$8 sm:$0xf0]  }
  0xd5   :  { %1491 = vst [vmem:[#allocation0 + $0x460] sm:$0x3] %v3697_v30 }
  0xd6   :  { %1495 = vst [vmem:[#allocation0 + $0x458] sm:$0x3] %v3698_v31  ;;  %v3688_v31 = vld [vmem:[%s6329_s0 + $0x12a] sm:$0x3] }
  0xd7   :  { %1499 = vst [vmem:[#allocation0 + $0x450] sm:$0x3] %v3699_v32  ;;  %v3689_v32 = vld [vmem:[%s6329_s0 + $0x128] sm:$0x3] }
  0xd8   :  { %v2931_v38 = vld [vmem:[#allocation0 + $0xc41] ss:$8 sm:$0xf]   ;;  %1503 = vst [vmem:[#allocation0 + $0x448] sm:$0x3] %v3700_v33 }
  0xd9   :  { %v2935_v39 = vsel %vm2052_vm0, %v2933_v35, %v2931_v38  ;;  %1507 = vst [vmem:[#allocation0 + $0x440] sm:$0x3] %v3701_v34  ;;  %v3690_v33 = vld [vmem:[%s6329_s0 + $0x126] sm:$0x3]  ;;  %v3691_v34 = vld [vmem:[%s6329_s0 + $0x124] sm:$0x3] }
  0xda   :  { %2936 = vrot.lane.b32.xlu1 %v2935_v39, %s3964_s15  ;;  %199 = vst [vmem:[#allocation0 + $0xe78] sm:$0x3] %v3374_v36  ;;  %v3692_v35 = vld [vmem:[%s6329_s0 + $0x122] sm:$0x3]  ;;  %v3693_v36 = vld [vmem:[%s6329_s0 + $0x120] sm:$0x3] }
  0xdb   :  { %203 = vst [vmem:[#allocation0 + $0xe70] sm:$0x3] %v3375_v37  ;;  %v3750_v38 = vld [vmem:[%s6329_s0 + $0xae] sm:$0x3]  ;;  %v3751_v39 = vld [vmem:[%s6329_s0 + $0xac] sm:$0x3] }
  0xdc   :  { %207 = vst [vmem:[#allocation0 + $0xe68] sm:$0x3] %v3376_v40  ;;  %v2845_v46 = vld [vmem:[#allocation0 + $0x441] ss:$8 sm:$0xf0]  }
  0xdd   :  { %211 = vst [vmem:[#allocation0 + $0xe60] sm:$0x3] %v3377_v41 }
  0xde   :  { %215 = vst [vmem:[#allocation0 + $0xe58] sm:$0x3] %v3378_v42  ;;  %v3752_v42 = vld [vmem:[%s6329_s0 + $0xaa] sm:$0x3] }
  0xdf   :  { %219 = vst [vmem:[#allocation0 + $0xe50] sm:$0x3] %v3379_v43  ;;  %v3753_v43 = vld [vmem:[%s6329_s0 + $0xa8] sm:$0x3] }
  0xe0   :  { %v2843_v49 = vld [vmem:[#allocation0 + $0x441] ss:$8 sm:$0xf]   ;;  %223 = vst [vmem:[#allocation0 + $0xe48] sm:$0x3] %v3380_v44 }
  0xe1   :  { %v2847_v50 = vsel %vm2052_vm0, %v2845_v46, %v2843_v49  ;;  %227 = vst [vmem:[#allocation0 + $0xe40] sm:$0x3] %v3381_v45  ;;  %v3754_v44 = vld [vmem:[%s6329_s0 + $0xa6] sm:$0x3]  ;;  %v3755_v45 = vld [vmem:[%s6329_s0 + $0xa4] sm:$0x3] }
  0xe2   :  { %2848 = vrot.lane.b32.xlu2 %v2847_v50, %s3964_s15  ;;  %1095 = vst [vmem:[#allocation0 + $0x778] sm:$0x3] %v3598_v47  ;;  %v3756_v46 = vld [vmem:[%s6329_s0 + $0xa2] sm:$0x3]  ;;  %v3757_v47 = vld [vmem:[%s6329_s0 + $0xa0] sm:$0x3] }
  0xe3   :  { %1099 = vst [vmem:[#allocation0 + $0x770] sm:$0x3] %v3599_v48  ;;  %v3406_v49 = vld [vmem:[%s6329_s0 + $0x35e] sm:$0x3]  ;;  %v3407_v50 = vld [vmem:[%s6329_s0 + $0x35c] sm:$0x3] }
  0xe4   :  { %1103 = vst [vmem:[#allocation0 + $0x768] sm:$0x3] %v3600_v51  ;;  %v2955_v57 = vld [vmem:[#allocation0 + $0xe41] ss:$8 sm:$0xf0]  }
  0xe5   :  { %1107 = vst [vmem:[#allocation0 + $0x760] sm:$0x3] %v3601_v52 }
  0xe6   :  { %1111 = vst [vmem:[#allocation0 + $0x758] sm:$0x3] %v3602_v53  ;;  %v3408_v53 = vld [vmem:[%s6329_s0 + $0x35a] sm:$0x3] }
  0xe7   :  { %1115 = vst [vmem:[#allocation0 + $0x750] sm:$0x3] %v3603_v54  ;;  %v3409_v54 = vld [vmem:[%s6329_s0 + $0x358] sm:$0x3] }
  0xe8   :  { %v2953_v60 = vld [vmem:[#allocation0 + $0xe41] ss:$8 sm:$0xf]   ;;  %1119 = vst [vmem:[#allocation0 + $0x748] sm:$0x3] %v3604_v55 }
  0xe9   :  { %v2957_v61 = vsel %vm2052_vm0, %v2955_v57, %v2953_v60  ;;  %1123 = vst [vmem:[#allocation0 + $0x740] sm:$0x3] %v3605_v56  ;;  %v3410_v55 = vld [vmem:[%s6329_s0 + $0x356] sm:$0x3]  ;;  %v3411_v56 = vld [vmem:[%s6329_s0 + $0x354] sm:$0x3] }
  0xea   :  { %2958 = vrot.lane.b32.xlu0 %v2957_v61, %s3964_s15  ;;  %1831 = vst [vmem:[#allocation0 + $0x1b8] sm:$0x3] %v3782_v58  ;;  %v3412_v57 = vld [vmem:[%s6329_s0 + $0x352] sm:$0x3]  ;;  %v3413_v58 = vld [vmem:[%s6329_s0 + $0x350] sm:$0x3] }
  0xeb   :  { %1835 = vst [vmem:[#allocation0 + $0x1b0] sm:$0x3] %v3783_v59  ;;  %v3590_v60 = vld [vmem:[%s6329_s0 + $0x1ee] sm:$0x3]  ;;  %v3591_v61 = vld [vmem:[%s6329_s0 + $0x1ec] sm:$0x3] }
  0xec   :  { %1839 = vst [vmem:[#allocation0 + $0x1a8] sm:$0x3] %v3784_v62  ;;  %v2878_v4 = vld [vmem:[#allocation0 + $0x741] ss:$8 sm:$0xf0]  }
  0xed   :  { %1843 = vst [vmem:[#allocation0 + $0x1a0] sm:$0x3] %v3785_v63 }
  0xee   :  { %1847 = vst [vmem:[#allocation0 + $0x198] sm:$0x3] %v3786_v0  ;;  %v3592_v0 = vld [vmem:[%s6329_s0 + $0x1ea] sm:$0x3] }
  0xef   :  { %1851 = vst [vmem:[#allocation0 + $0x190] sm:$0x3] %v3787_v1  ;;  %v3593_v1 = vld [vmem:[%s6329_s0 + $0x1e8] sm:$0x3] }
  0xf0   :  { %v2876_v7 = vld [vmem:[#allocation0 + $0x741] ss:$8 sm:$0xf]   ;;  %1855 = vst [vmem:[#allocation0 + $0x188] sm:$0x3] %v3788_v2 }
  0xf1   :  { %v2880_v8 = vsel %vm2052_vm0, %v2878_v4, %v2876_v7  ;;  %1859 = vst [vmem:[#allocation0 + $0x180] sm:$0x3] %v3789_v3  ;;  %v3594_v2 = vld [vmem:[%s6329_s0 + $0x1e6] sm:$0x3]  ;;  %v3595_v3 = vld [vmem:[%s6329_s0 + $0x1e4] sm:$0x3] }
  0xf2   :  { %2881 = vrot.lane.b32.xlu2 %v2880_v8, %s3964_s15  ;;  %71 = vst [vmem:[#allocation0 + $0xf78] sm:$0x3] %v3342_v5  ;;  %v3596_v4 = vld [vmem:[%s6329_s0 + $0x1e2] sm:$0x3]  ;;  %v3597_v5 = vld [vmem:[%s6329_s0 + $0x1e0] sm:$0x3] }
  0xf3   :  { %75 = vst [vmem:[#allocation0 + $0xf70] sm:$0x3] %v3343_v6  ;;  %v3654_v7 = vld [vmem:[%s6329_s0 + $0x16e] sm:$0x3]  ;;  %v3655_v8 = vld [vmem:[%s6329_s0 + $0x16c] sm:$0x3] }
  0xf4   :  { %79 = vst [vmem:[#allocation0 + $0xf68] sm:$0x3] %v3344_v9  ;;  %v2988_v15 = vld [vmem:[#allocation0 + $0x181] ss:$8 sm:$0xf0]  }
  0xf5   :  { %83 = vst [vmem:[#allocation0 + $0xf60] sm:$0x3] %v3345_v10 }
  0xf6   :  { %87 = vst [vmem:[#allocation0 + $0xf58] sm:$0x3] %v3346_v11  ;;  %v3656_v11 = vld [vmem:[%s6329_s0 + $0x16a] sm:$0x3] }
  0xf7   :  { %91 = vst [vmem:[#allocation0 + $0xf50] sm:$0x3] %v3347_v12  ;;  %v3657_v12 = vld [vmem:[%s6329_s0 + $0x168] sm:$0x3] }
  0xf8   :  { %v2986_v18 = vld [vmem:[#allocation0 + $0x181] ss:$8 sm:$0xf]   ;;  %95 = vst [vmem:[#allocation0 + $0xf48] sm:$0x3] %v3348_v13 }
  0xf9   :  { %v2990_v19 = vsel %vm2052_vm0, %v2988_v15, %v2986_v18  ;;  %99 = vst [vmem:[#allocation0 + $0xf40] sm:$0x3] %v3349_v14  ;;  %v3658_v13 = vld [vmem:[%s6329_s0 + $0x166] sm:$0x3]  ;;  %v3659_v14 = vld [vmem:[%s6329_s0 + $0x164] sm:$0x3] }
  0xfa   :  { %2991 = vrot.lane.b32.xlu0 %v2990_v19, %s3964_s15  ;;  %711 = vst [vmem:[#allocation0 + $0xa78] sm:$0x3] %v3502_v16  ;;  %v3660_v15 = vld [vmem:[%s6329_s0 + $0x162] sm:$0x3]  ;;  %v3661_v16 = vld [vmem:[%s6329_s0 + $0x160] sm:$0x3] }
  0xfb   :  { %715 = vst [vmem:[#allocation0 + $0xa70] sm:$0x3] %v3503_v17  ;;  %v3814_v18 = vld [vmem:[%s6329_s0 + $0x2e] sm:$0x3]  ;;  %v3815_v19 = vld [vmem:[%s6329_s0 + $0x2c] sm:$0x3] }
  0xfc   :  { %719 = vst [vmem:[#allocation0 + $0xa68] sm:$0x3] %v3504_v20  ;;  %v2966_v26 = vld [vmem:[#allocation0 + $0xf41] ss:$8 sm:$0xf0]  }
  0xfd   :  { %723 = vst [vmem:[#allocation0 + $0xa60] sm:$0x3] %v3505_v21 }
  0xfe   :  { %727 = vst [vmem:[#allocation0 + $0xa58] sm:$0x3] %v3506_v22  ;;  %v3816_v22 = vld [vmem:[%s6329_s0 + $0x2a] sm:$0x3] }
  0xff   :  { %731 = vst [vmem:[#allocation0 + $0xa50] sm:$0x3] %v3507_v23  ;;  %v3817_v23 = vld [vmem:[%s6329_s0 + $0x28] sm:$0x3] }
 0x100   :  { %v2964_v29 = vld [vmem:[#allocation0 + $0xf41] ss:$8 sm:$0xf]   ;;  %735 = vst [vmem:[#allocation0 + $0xa48] sm:$0x3] %v3508_v24  ;;  %v4947_v24 = vpop.permute.xlu0 %2629  }
 0x101   :  { %v2968_v30 = vsel %vm2052_vm0, %v2966_v26, %v2964_v29  ;;  %739 = vst [vmem:[#allocation0 + $0xa40] sm:$0x3] %v3509_v25  ;;  %v3818_v25 = vld [vmem:[%s6329_s0 + $0x26] sm:$0x3]  ;;  %v3819_v26 = vld [vmem:[%s6329_s0 + $0x24] sm:$0x3] }
 0x102   :  { %2969 = vrot.lane.b32.xlu1 %v2968_v30, %s3964_s15  ;;  %1447 = vst [vmem:[#allocation0 + $0x4b8] sm:$0x3] %v3686_v27  ;;  %v3820_v27 = vld [vmem:[%s6329_s0 + $0x22] sm:$0x3]  ;;  %v3494_v30 = vld [vmem:[%s6329_s0 + $0x2ae] sm:$0x3] }
 0x103   :  { %1451 = vst [vmem:[#allocation0 + $0x4b0] sm:$0x3] %v3687_v28  ;;  %v3821_v28 = vld [vmem:[%s6329_s0 + $0x20] sm:$0x3] }
 0x104   :  { %1455 = vst [vmem:[#allocation0 + $0x4a8] sm:$0x3] %v3688_v31  ;;  %v2911_v37 = vld [vmem:[#allocation0 + $0xa41] ss:$8 sm:$0xf0]  }
 0x105   :  { %1459 = vst [vmem:[#allocation0 + $0x4a0] sm:$0x3] %v3689_v32  ;;  %v3495_v31 = vld [vmem:[%s6329_s0 + $0x2ac] sm:$0x3] }
 0x106   :  { %1463 = vst [vmem:[#allocation0 + $0x498] sm:$0x3] %v3690_v33 }
 0x107   :  { %1467 = vst [vmem:[#allocation0 + $0x490] sm:$0x3] %v3691_v34  ;;  %v3496_v34 = vld [vmem:[%s6329_s0 + $0x2aa] sm:$0x3] }
 0x108   :  { %v2909_v40 = vld [vmem:[#allocation0 + $0xa41] ss:$8 sm:$0xf]   ;;  %1471 = vst [vmem:[#allocation0 + $0x488] sm:$0x3] %v3692_v35 }
 0x109   :  { %v2913_v41 = vsel %vm2052_vm0, %v2911_v37, %v2909_v40  ;;  %1475 = vst [vmem:[#allocation0 + $0x480] sm:$0x3] %v3693_v36  ;;  %v3497_v35 = vld [vmem:[%s6329_s0 + $0x2a8] sm:$0x3]  ;;  %v3498_v36 = vld [vmem:[%s6329_s0 + $0x2a6] sm:$0x3] }
 0x10a   :  { %2914 = vrot.lane.b32.xlu2 %v2913_v41, %s3964_s15  ;;  %1703 = vst [vmem:[#allocation0 + $0x2b8] sm:$0x3] %v3750_v38  ;;  %v3499_v37 = vld [vmem:[%s6329_s0 + $0x2a4] sm:$0x3]  ;;  %v3500_v38 = vld [vmem:[%s6329_s0 + $0x2a2] sm:$0x3] }
 0x10b   :  { %1707 = vst [vmem:[#allocation0 + $0x2b0] sm:$0x3] %v3751_v39  ;;  %v3501_v39 = vld [vmem:[%s6329_s0 + $0x2a0] sm:$0x3]  ;;  %v3558_v41 = vld [vmem:[%s6329_s0 + $0x22e] sm:$0x3] }
 0x10c   :  { %1711 = vst [vmem:[#allocation0 + $0x2a8] sm:$0x3] %v3752_v42  ;;  %v3021_v48 = vld [vmem:[#allocation0 + $0x481] ss:$8 sm:$0xf0]  }
 0x10d   :  { %1715 = vst [vmem:[#allocation0 + $0x2a0] sm:$0x3] %v3753_v43  ;;  %v3559_v42 = vld [vmem:[%s6329_s0 + $0x22c] sm:$0x3] }
 0x10e   :  { %1719 = vst [vmem:[#allocation0 + $0x298] sm:$0x3] %v3754_v44 }
 0x10f   :  { %1723 = vst [vmem:[#allocation0 + $0x290] sm:$0x3] %v3755_v45  ;;  %v3560_v45 = vld [vmem:[%s6329_s0 + $0x22a] sm:$0x3] }
 0x110   :  { %v3019_v51 = vld [vmem:[#allocation0 + $0x481] ss:$8 sm:$0xf]   ;;  %1727 = vst [vmem:[#allocation0 + $0x288] sm:$0x3] %v3756_v46 }
 0x111   :  { %v3023_v52 = vsel %vm2052_vm0, %v3021_v48, %v3019_v51  ;;  %1731 = vst [vmem:[#allocation0 + $0x280] sm:$0x3] %v3757_v47  ;;  %v3561_v46 = vld [vmem:[%s6329_s0 + $0x228] sm:$0x3]  ;;  %v3562_v47 = vld [vmem:[%s6329_s0 + $0x226] sm:$0x3] }
 0x112   :  { %3024 = vrot.lane.b32.xlu0 %v3023_v52, %s3964_s15  ;;  %327 = vst [vmem:[#allocation0 + $0xd78] sm:$0x3] %v3406_v49  ;;  %v3563_v48 = vld [vmem:[%s6329_s0 + $0x224] sm:$0x3]  ;;  %v3564_v51 = vld [vmem:[%s6329_s0 + $0x222] sm:$0x3] }
 0x113   :  { %331 = vst [vmem:[#allocation0 + $0xd70] sm:$0x3] %v3407_v50  ;;  %v2050_v49 = vld [vmem:[#allocation0] ss:$8 sm:$0xf]  }
 0x114   :  { %335 = vst [vmem:[#allocation0 + $0xd68] sm:$0x3] %v3408_v53  ;;  %v2999_v59 = vld [vmem:[#allocation0 + $0x281] ss:$8 sm:$0xf0]  }
 0x115   :  { %339 = vst [vmem:[#allocation0 + $0xd60] sm:$0x3] %v3409_v54  ;;  %v2051_v50 = vld [vmem:[#allocation0] ss:$8 sm:$0xf0]  }
 0x116   :  { %343 = vst [vmem:[#allocation0 + $0xd58] sm:$0x3] %v3410_v55  ;;  %v3565_v52 = vld [vmem:[%s6329_s0 + $0x220] sm:$0x3]  ;;  %v2053_v54 = vsel %vm2052_vm0, %v2051_v50, %v2050_v49  ;;  %v3627_v49 = vld [vmem:[%s6329_s0 + $0x1a4] sm:$0x3] }
 0x117   :  { %347 = vst [vmem:[#allocation0 + $0xd50] sm:$0x3] %v3411_v56  ;;  %v3628_v50 = vld [vmem:[%s6329_s0 + $0x1a2] sm:$0x3] }
 0x118   :  { %v2997_v62 = vld [vmem:[#allocation0 + $0x281] ss:$8 sm:$0xf]   ;;  %351 = vst [vmem:[#allocation0 + $0xd48] sm:$0x3] %v3412_v57 }
 0x119   :  { %v3001_v63 = vsel %vm2052_vm0, %v2999_v59, %v2997_v62  ;;  %355 = vst [vmem:[#allocation0 + $0xd40] sm:$0x3] %v3413_v58  ;;  %v3718_v57 = vld [vmem:[%s6329_s0 + $0xee] sm:$0x3]  ;;  %v3719_v58 = vld [vmem:[%s6329_s0 + $0xec] sm:$0x3]  ;;  %v5039_v62 = vpop.permute.xlu1 %2650  }
 0x11a   :  { %3002 = vrot.lane.b32.xlu1 %v3001_v63, %s3964_s15  ;;  %1063 = vst [vmem:[#allocation0 + $0x7b8] sm:$0x3] %v3590_v60  ;;  %v3720_v59 = vld [vmem:[%s6329_s0 + $0xea] sm:$0x3]  ;;  %v3721_v60 = vld [vmem:[%s6329_s0 + $0xe8] sm:$0x3] }
 0x11b   :  { %1067 = vst [vmem:[#allocation0 + $0x7b0] sm:$0x3] %v3591_v61  ;;  %v5037_v61 = vpop.permute.xlu0 %2639   ;;  %v3722_v63 = vld [vmem:[%s6329_s0 + $0xe6] sm:$0x3] }
 0x11c   :  { %1071 = vst [vmem:[#allocation0 + $0x7a8] sm:$0x3] %v3592_v0  ;;  %v2944_v6 = vld [vmem:[#allocation0 + $0xd41] ss:$8 sm:$0xf0]  }
 0x11d   :  { %1075 = vst [vmem:[#allocation0 + $0x7a0] sm:$0x3] %v3593_v1  ;;  %v3723_v0 = vld [vmem:[%s6329_s0 + $0xe4] sm:$0x3]  ;;  %v5047_v1 = vpop.permute.xlu2 %2672  }
 0x11e   :  { %1079 = vst [vmem:[#allocation0 + $0x798] sm:$0x3] %v3594_v2 }
 0x11f   :  { %1083 = vst [vmem:[#allocation0 + $0x790] sm:$0x3] %v3595_v3  ;;  %v3724_v3 = vld [vmem:[%s6329_s0 + $0xe2] sm:$0x3] }
 0x120   :  { %v2942_v9 = vld [vmem:[#allocation0 + $0xd41] ss:$8 sm:$0xf]   ;;  %1087 = vst [vmem:[#allocation0 + $0x788] sm:$0x3] %v3596_v4 }
 0x121   :  { %v2946_v10 = vsel %vm2052_vm0, %v2944_v6, %v2942_v9  ;;  %1091 = vst [vmem:[#allocation0 + $0x780] sm:$0x3] %v3597_v5  ;;  %v3725_v4 = vld [vmem:[%s6329_s0 + $0xe0] sm:$0x3]  ;;  %v3400_v9 = vld [vmem:[%s6329_s0 + $0x36a] sm:$0x3] }
 0x122   :  { %2947 = vrot.lane.b32.xlu2 %v2946_v10, %s3964_s15  ;;  %1319 = vst [vmem:[#allocation0 + $0x5b8] sm:$0x3] %v3654_v7  ;;  %v3398_v7 = vld [vmem:[%s6329_s0 + $0x36e] sm:$0x3]  ;;  %v3401_v10 = vld [vmem:[%s6329_s0 + $0x368] sm:$0x3] }
 0x123   :  { %1323 = vst [vmem:[#allocation0 + $0x5b0] sm:$0x3] %v3655_v8  ;;  %v3399_v8 = vld [vmem:[%s6329_s0 + $0x36c] sm:$0x3] }
 0x124   :  { %1327 = vst [vmem:[#allocation0 + $0x5a8] sm:$0x3] %v3656_v11  ;;  %v3054_v17 = vld [vmem:[#allocation0 + $0x781] ss:$8 sm:$0xf0]  }
 0x125   :  { %1331 = vst [vmem:[#allocation0 + $0x5a0] sm:$0x3] %v3657_v12  ;;  %v3402_v11 = vld [vmem:[%s6329_s0 + $0x366] sm:$0x3]  ;;  %v3403_v12 = vld [vmem:[%s6329_s0 + $0x364] sm:$0x3] }
 0x126   :  { %1335 = vst [vmem:[#allocation0 + $0x598] sm:$0x3] %v3658_v13  ;;  %v3404_v13 = vld [vmem:[%s6329_s0 + $0x362] sm:$0x3] }
 0x127   :  { %1339 = vst [vmem:[#allocation0 + $0x590] sm:$0x3] %v3659_v14  ;;  %v3405_v14 = vld [vmem:[%s6329_s0 + $0x360] sm:$0x3] }
 0x128   :  { %v3052_v20 = vld [vmem:[#allocation0 + $0x781] ss:$8 sm:$0xf]   ;;  %1343 = vst [vmem:[#allocation0 + $0x588] sm:$0x3] %v3660_v15 }
 0x129   :  { %v3056_v21 = vsel %vm2052_vm0, %v3054_v17, %v3052_v20  ;;  %1347 = vst [vmem:[#allocation0 + $0x580] sm:$0x3] %v3661_v16  ;;  %v3462_v15 = vld [vmem:[%s6329_s0 + $0x2ee] sm:$0x3]  ;;  %v3463_v17 = vld [vmem:[%s6329_s0 + $0x2ec] sm:$0x3] }
 0x12a   :  { %3057 = vrot.lane.b32.xlu0 %v3056_v21, %s3964_s15  ;;  %1959 = vst [vmem:[#allocation0 + $0xb8] sm:$0x3] %v3814_v18  ;;  %v3464_v18 = vld [vmem:[%s6329_s0 + $0x2ea] sm:$0x3]  ;;  %v3465_v21 = vld [vmem:[%s6329_s0 + $0x2e8] sm:$0x3] }
 0x12b   :  { %1963 = vst [vmem:[#allocation0 + $0xb0] sm:$0x3] %v3815_v19 }
 0x12c   :  { %1967 = vst [vmem:[#allocation0 + $0xa8] sm:$0x3] %v3816_v22  ;;  %v3032_v29 = vld [vmem:[#allocation0 + $0x581] ss:$8 sm:$0xf0]  }
 0x12d   :  { %1971 = vst [vmem:[#allocation0 + $0xa0] sm:$0x3] %v3817_v23  ;;  %v3466_v22 = vld [vmem:[%s6329_s0 + $0x2e6] sm:$0x3]  ;;  %v3467_v23 = vld [vmem:[%s6329_s0 + $0x2e4] sm:$0x3] }
 0x12e   :  { %1975 = vst [vmem:[#allocation0 + $0x98] sm:$0x3] %v3818_v25  ;;  %v3468_v25 = vld [vmem:[%s6329_s0 + $0x2e2] sm:$0x3] }
 0x12f   :  { %1979 = vst [vmem:[#allocation0 + $0x90] sm:$0x3] %v3819_v26  ;;  %v2086_v26 = vld [vmem:[#allocation0 + $0x100] ss:$8 sm:$0xf0]  }
 0x130   :  { %v3030_v32 = vld [vmem:[#allocation0 + $0x581] ss:$8 sm:$0xf]   ;;  %1983 = vst [vmem:[#allocation0 + $0x88] sm:$0x3] %v3820_v27 }
 0x131   :  { %v3034_v33 = vsel %vm2052_vm0, %v3032_v29, %v3030_v32  ;;  %1987 = vst [vmem:[#allocation0 + $0x80] sm:$0x3] %v3821_v28  ;;  %v3469_v27 = vld [vmem:[%s6329_s0 + $0x2e0] sm:$0x3] }
 0x132   :  { %3035 = vrot.lane.b32.xlu1 %v3034_v33, %s3964_s15  ;;  %679 = vst [vmem:[#allocation0 + $0xab8] sm:$0x3] %v3494_v30  ;;  %v2120_v28 = vld [vmem:[#allocation0 + $0x200] ss:$8 sm:$0xf]  }
 0x133   :  { %683 = vst [vmem:[#allocation0 + $0xab0] sm:$0x3] %v3495_v31  ;;  %v2122_v29 = vld [vmem:[#allocation0 + $0x200] ss:$8 sm:$0xf0]  }
 0x134   :  { %687 = vst [vmem:[#allocation0 + $0xaa8] sm:$0x3] %v3496_v34  ;;  %v2977_v40 = vld [vmem:[#allocation0 + $0x81] ss:$8 sm:$0xf0]  }
 0x135   :  { %691 = vst [vmem:[#allocation0 + $0xaa0] sm:$0x3] %v3497_v35  ;;  %v2192_v31 = vld [vmem:[#allocation0 + $0x400] ss:$8 sm:$0xf]  }
 0x136   :  { %695 = vst [vmem:[#allocation0 + $0xa98] sm:$0x3] %v3498_v36  ;;  %v2194_v33 = vld [vmem:[#allocation0 + $0x400] ss:$8 sm:$0xf0]   ;;  %v2124_v36 = vsel %vm2052_vm0, %v2122_v29, %v2120_v28 }
 0x137   :  { %699 = vst [vmem:[#allocation0 + $0xa90] sm:$0x3] %v3499_v37  ;;  %v2196_v37 = vsel %vm2052_vm0, %v2194_v33, %v2192_v31  ;;  %v3530_v28 = vld [vmem:[%s6329_s0 + $0x266] sm:$0x3]  ;;  %v3532_v31 = vld [vmem:[%s6329_s0 + $0x262] sm:$0x3] }
 0x138   :  { %v2975_v43 = vld [vmem:[#allocation0 + $0x81] ss:$8 sm:$0xf]   ;;  %703 = vst [vmem:[#allocation0 + $0xa88] sm:$0x3] %v3500_v38 }
 0x139   :  { %v2979_v44 = vsel %vm2052_vm0, %v2977_v40, %v2975_v43  ;;  %707 = vst [vmem:[#allocation0 + $0xa80] sm:$0x3] %v3501_v39  ;;  %v3622_v38 = vld [vmem:[%s6329_s0 + $0x1ae] sm:$0x3]  ;;  %v3623_v40 = vld [vmem:[%s6329_s0 + $0x1ac] sm:$0x3] }
 0x13a   :  { %2980 = vrot.lane.b32.xlu2 %v2979_v44, %s3964_s15  ;;  %935 = vst [vmem:[#allocation0 + $0x8b8] sm:$0x3] %v3558_v41  ;;  %v3624_v41 = vld [vmem:[%s6329_s0 + $0x1aa] sm:$0x3]  ;;  %v5151_v44 = vpop.permute.xlu1 %2661   ;;  %v3710_v33 = vld [vmem:[%s6329_s0 + $0xfe] sm:$0x3] }
 0x13b   :  { %939 = vst [vmem:[#allocation0 + $0x8b0] sm:$0x3] %v3559_v42  ;;  %v3625_v42 = vld [vmem:[%s6329_s0 + $0x1a8] sm:$0x3] }
 0x13c   :  { %943 = vst [vmem:[#allocation0 + $0x8a8] sm:$0x3] %v3560_v45  ;;  %v3087_v53 = vld [vmem:[#allocation0 + $0xa81] ss:$8 sm:$0xf0]   ;;  %v5153_v45 = vpop.permute.xlu2 %2683  }
 0x13d   :  { %947 = vst [vmem:[#allocation0 + $0x8a0] sm:$0x3] %v3561_v46 }
 0x13e   :  { %951 = vst [vmem:[#allocation0 + $0x898] sm:$0x3] %v3562_v47  ;;  %v3626_v47 = vld [vmem:[%s6329_s0 + $0x1a6] sm:$0x3] }
 0x13f   :  { %955 = vst [vmem:[#allocation0 + $0x890] sm:$0x3] %v3563_v48  ;;  %v5159_v48 = vpop.permute.xlu0 %2694  }
 0x140   :  { %v3085_v55 = vld [vmem:[#allocation0 + $0xa81] ss:$8 sm:$0xf]   ;;  %959 = vst [vmem:[#allocation0 + $0x888] sm:$0x3] %v3564_v51 }
 0x141   :  { %v3089_v56 = vsel %vm2052_vm0, %v3087_v53, %v3085_v55  ;;  %963 = vst [vmem:[#allocation0 + $0x880] sm:$0x3] %v3565_v52  ;;  %v3629_v51 = vld [vmem:[%s6329_s0 + $0x1a0] sm:$0x3]  ;;  %v3806_v52 = vld [vmem:[%s6329_s0 + $0x3e] sm:$0x3] }
 0x142   :  { %3090 = vrot.lane.b32.xlu0 %v3089_v56, %s3964_s15  ;;  %2055 = vst.msk [vmem:[%s6330_s1] sm:$0xff] %vm2054_vm1, %v2053_v54   ;;  %v3807_v53 = vld [vmem:[%s6329_s0 + $0x3c] sm:$0x3]  ;;  %v3808_v54 = vld [vmem:[%s6329_s0 + $0x3a] sm:$0x3] }
 0x143   :  { %2632 = vst.msk [vmem:[%s6330_s1] sm:$0xff] %vm2631_vm2, %v4947_v24   ;;  %v2084_v24 = vld [vmem:[#allocation0 + $0x100] ss:$8 sm:$0xf]   ;;  %v3810_v56 = vld [vmem:[%s6329_s0 + $0x36] sm:$0x3] }
 0x144   :  { %1575 = vst [vmem:[#allocation0 + $0x3b8] sm:$0x3] %v3718_v57  ;;  %v3065_v2 = vld [vmem:[#allocation0 + $0x881] ss:$8 sm:$0xf0]   ;;  %v2088_v32 = vsel %vm2052_vm0, %v2086_v26, %v2084_v24  ;;  %v5267_v26 = vpop.permute.xlu2 %2716  }
 0x145   :  { %1579 = vst [vmem:[#allocation0 + $0x3b0] sm:$0x3] %v3719_v58  ;;  %v3809_v55 = vld [vmem:[%s6329_s0 + $0x38] sm:$0x3]  ;;  %v3811_v57 = vld [vmem:[%s6329_s0 + $0x34] sm:$0x3] }
 0x146   :  { %1583 = vst [vmem:[#allocation0 + $0x3a8] sm:$0x3] %v3720_v59  ;;  %v3812_v58 = vld [vmem:[%s6329_s0 + $0x32] sm:$0x3]  ;;  %v3813_v59 = vld [vmem:[%s6329_s0 + $0x30] sm:$0x3] }
 0x147   :  { %1587 = vst [vmem:[#allocation0 + $0x3a0] sm:$0x3] %v3721_v60  ;;  %v3366_v60 = vld [vmem:[%s6329_s0 + $0x3ae] sm:$0x3]  ;;  %v5273_v29 = vpop.permute.xlu0 %2727  }
 0x148   :  { %v3063_v5 = vld [vmem:[#allocation0 + $0x881] ss:$8 sm:$0xf]   ;;  %1591 = vst [vmem:[#allocation0 + $0x398] sm:$0x3] %v3722_v63 }
 0x149   :  { %v3067_v6 = vsel %vm2052_vm0, %v3065_v2, %v3063_v5  ;;  %1595 = vst [vmem:[#allocation0 + $0x390] sm:$0x3] %v3723_v0  ;;  %v3368_v63 = vld [vmem:[%s6329_s0 + $0x3aa] sm:$0x3]  ;;  %v3369_v2 = vld [vmem:[%s6329_s0 + $0x3a8] sm:$0x3] }
 0x14a   :  { %3068 = vrot.lane.b32.xlu1 %v3067_v6, %s3964_s15  ;;  %1599 = vst [vmem:[#allocation0 + $0x388] sm:$0x3] %v3724_v3  ;;  %v3370_v3 = vld [vmem:[%s6329_s0 + $0x3a6] sm:$0x3]  ;;  %v3372_v6 = vld [vmem:[%s6329_s0 + $0x3a2] sm:$0x3] }
 0x14b   :  { %1603 = vst [vmem:[#allocation0 + $0x380] sm:$0x3] %v3725_v4  ;;  %v3371_v4 = vld [vmem:[%s6329_s0 + $0x3a4] sm:$0x3] }
 0x14c   :  { %295 = vst [vmem:[#allocation0 + $0xdb8] sm:$0x3] %v3398_v7  ;;  %v2156_v5 = vld [vmem:[#allocation0 + $0x300] ss:$8 sm:$0xf]  }
 0x14d   :  { %299 = vst [vmem:[#allocation0 + $0xdb0] sm:$0x3] %v3399_v8  ;;  %v2158_v7 = vld [vmem:[#allocation0 + $0x300] ss:$8 sm:$0xf0]  }
 0x14e   :  { %303 = vst [vmem:[#allocation0 + $0xda8] sm:$0x3] %v3400_v9  ;;  %v3010_v16 = vld [vmem:[#allocation0 + $0x381] ss:$8 sm:$0xf0]  }
 0x14f   :  { %307 = vst [vmem:[#allocation0 + $0xda0] sm:$0x3] %v3401_v10  ;;  %v3373_v8 = vld [vmem:[%s6329_s0 + $0x3a0] sm:$0x3] }
 0x150   :  { %311 = vst [vmem:[#allocation0 + $0xd98] sm:$0x3] %v3402_v11  ;;  %v2228_v9 = vld [vmem:[#allocation0 + $0x500] ss:$8 sm:$0xf]  }
 0x151   :  { %315 = vst [vmem:[#allocation0 + $0xd90] sm:$0x3] %v3403_v12  ;;  %v2230_v10 = vld [vmem:[#allocation0 + $0x500] ss:$8 sm:$0xf0]  }
 0x152   :  { %v3008_v19 = vld [vmem:[#allocation0 + $0x381] ss:$8 sm:$0xf]   ;;  %319 = vst [vmem:[#allocation0 + $0xd88] sm:$0x3] %v3404_v13  ;;  %v2160_v13 = vsel %vm2052_vm0, %v2158_v7, %v2156_v5  ;;  %v5381_v7 = vpop.permute.xlu2 %2749  }
 0x153   :  { %v3012_v20 = vsel %vm2052_vm0, %v3010_v16, %v3008_v19  ;;  %323 = vst [vmem:[#allocation0 + $0xd80] sm:$0x3] %v3405_v14  ;;  %v2264_v12 = vld [vmem:[#allocation0 + $0x600] ss:$8 sm:$0xf]  }
 0x154   :  { %3013 = vrot.lane.b32.xlu2 %v3012_v20, %s3964_s15  ;;  %551 = vst [vmem:[#allocation0 + $0xbb8] sm:$0x3] %v3462_v15  ;;  %v2266_v14 = vld [vmem:[#allocation0 + $0x600] ss:$8 sm:$0xf0]  }
 0x155   :  { %555 = vst [vmem:[#allocation0 + $0xbb0] sm:$0x3] %v3463_v17  ;;  %v2232_v17 = vsel %vm2052_vm0, %v2230_v10, %v2228_v9  ;;  %v3526_v19 = vld [vmem:[%s6329_s0 + $0x26e] sm:$0x3]  ;;  %v3434_v9 = vld [vmem:[%s6329_s0 + $0x326] sm:$0x3]  ;;  %v5387_v10 = vpop.permute.xlu0 %2760  }
 0x156   :  { %559 = vst [vmem:[#allocation0 + $0xba8] sm:$0x3] %v3464_v18  ;;  %v3120_v30 = vld [vmem:[#allocation0 + $0xd81] ss:$8 sm:$0xf0]   ;;  %v2268_v18 = vsel %vm2052_vm0, %v2266_v14, %v2264_v12 }
 0x157   :  { %563 = vst [vmem:[#allocation0 + $0xba0] sm:$0x3] %v3465_v21  ;;  %v3527_v21 = vld [vmem:[%s6329_s0 + $0x26c] sm:$0x3]  ;;  %v3436_v12 = vld [vmem:[%s6329_s0 + $0x322] sm:$0x3] }
 0x158   :  { %567 = vst [vmem:[#allocation0 + $0xb98] sm:$0x3] %v3466_v22  ;;  %v3528_v22 = vld [vmem:[%s6329_s0 + $0x26a] sm:$0x3]  ;;  %v3614_v14 = vld [vmem:[%s6329_s0 + $0x1be] sm:$0x3] }
 0x159   :  { %571 = vst [vmem:[#allocation0 + $0xb90] sm:$0x3] %v3467_v23  ;;  %v3529_v23 = vld [vmem:[%s6329_s0 + $0x268] sm:$0x3] }
 0x15a   :  { %v3118_v34 = vld [vmem:[#allocation0 + $0xd81] ss:$8 sm:$0xf]   ;;  %575 = vst [vmem:[#allocation0 + $0xb88] sm:$0x3] %v3468_v25  ;;  %v5265_v25 = vpop.permute.xlu1 %2705  }
 0x15b   :  { %v3122_v35 = vsel %vm2052_vm0, %v3120_v30, %v3118_v34  ;;  %579 = vst [vmem:[#allocation0 + $0xb80] sm:$0x3] %v3469_v27  ;;  %v3531_v30 = vld [vmem:[%s6329_s0 + $0x264] sm:$0x3]  ;;  %v3711_v34 = vld [vmem:[%s6329_s0 + $0xfc] sm:$0x3] }
 0x15c   :  { %3123 = vrot.lane.b32.xlu0 %v3122_v35, %s3964_s15  ;;  %3840 = vst.msk [vmem:[%s6330_s1 + $0x20] sm:$0xff] %vm2054_vm1, %v2088_v32   ;;  %v3533_v32 = vld [vmem:[%s6329_s0 + $0x260] sm:$0x3]  ;;  %v3712_v35 = vld [vmem:[%s6329_s0 + $0xfa] sm:$0x3] }
 0x15d   :  { %3900 = vst.msk [vmem:[%s6330_s1 + $0x20] sm:$0xff] %vm2631_vm2, %v5037_v61  }
 0x15e   :  { %3844 = vst.msk [vmem:[%s6330_s1 + $0x40] sm:$0xff] %vm2054_vm1, %v2124_v36   ;;  %v3098_v39 = vld [vmem:[#allocation0 + $0xb81] ss:$8 sm:$0xf0]  }
 0x15f   :  { %3901 = vst.msk [vmem:[%s6330_s1 + $0x40] sm:$0xff] %vm2631_vm2, %v5039_v62   ;;  %v3367_v62 = vld [vmem:[%s6329_s0 + $0x3ac] sm:$0x3]  ;;  %v3713_v36 = vld [vmem:[%s6329_s0 + $0xf8] sm:$0x3] }
 0x160   :  { %3852 = vst.msk [vmem:[%s6330_s1 + $0x80] sm:$0xff] %vm2054_vm1, %v2196_v37   ;;  %v3714_v37 = vld [vmem:[%s6329_s0 + $0xf6] sm:$0x3] }
 0x161   :  { %3903 = vst.msk [vmem:[%s6330_s1 + $0x80] sm:$0xff] %vm2631_vm2, %v5047_v1  }
 0x162   :  { %v3096_v43 = vld [vmem:[#allocation0 + $0xb81] ss:$8 sm:$0xf]   ;;  %1191 = vst [vmem:[#allocation0 + $0x6b8] sm:$0x3] %v3622_v38 }
 0x163   :  { %v3100_v46 = vsel %vm2052_vm0, %v3098_v39, %v3096_v43  ;;  %1195 = vst [vmem:[#allocation0 + $0x6b0] sm:$0x3] %v3623_v40  ;;  %v3715_v38 = vld [vmem:[%s6329_s0 + $0xf4] sm:$0x3]  ;;  %v3716_v39 = vld [vmem:[%s6329_s0 + $0xf2] sm:$0x3] }
 0x164   :  { %3101 = vrot.lane.b32.xlu1 %v3100_v46, %s3964_s15  ;;  %1199 = vst [vmem:[#allocation0 + $0x6a8] sm:$0x3] %v3624_v41  ;;  %v3717_v40 = vld [vmem:[%s6329_s0 + $0xf0] sm:$0x3]  ;;  %v3774_v41 = vld [vmem:[%s6329_s0 + $0x7e] sm:$0x3] }
 0x165   :  { %1203 = vst [vmem:[#allocation0 + $0x6a0] sm:$0x3] %v3625_v42  ;;  %v3775_v43 = vld [vmem:[%s6329_s0 + $0x7c] sm:$0x3] }
 0x166   :  { %1207 = vst [vmem:[#allocation0 + $0x698] sm:$0x3] %v3626_v47  ;;  %v3777_v47 = vld [vmem:[%s6329_s0 + $0x78] sm:$0x3] }
 0x167   :  { %1211 = vst [vmem:[#allocation0 + $0x690] sm:$0x3] %v3627_v49  ;;  %v3779_v49 = vld [vmem:[%s6329_s0 + $0x74] sm:$0x3] }
 0x168   :  { %1215 = vst [vmem:[#allocation0 + $0x688] sm:$0x3] %v3628_v50  ;;  %v2300_v50 = vld [vmem:[#allocation0 + $0x700] ss:$8 sm:$0xf]  }
 0x169   :  { %1219 = vst [vmem:[#allocation0 + $0x680] sm:$0x3] %v3629_v51  ;;  %v3780_v51 = vld [vmem:[%s6329_s0 + $0x72] sm:$0x3] }
 0x16a   :  { %1927 = vst [vmem:[#allocation0 + $0xf8] sm:$0x3] %v3806_v52  ;;  %v2302_v52 = vld [vmem:[#allocation0 + $0x700] ss:$8 sm:$0xf0]  }
 0x16b   :  { %1931 = vst [vmem:[#allocation0 + $0xf0] sm:$0x3] %v3807_v53  ;;  %v3781_v53 = vld [vmem:[%s6329_s0 + $0x70] sm:$0x3] }
 0x16c   :  { %1935 = vst [vmem:[#allocation0 + $0xe8] sm:$0x3] %v3808_v54  ;;  %v3043_v61 = vld [vmem:[#allocation0 + $0x681] ss:$8 sm:$0xf0]  }
 0x16d   :  { %1939 = vst [vmem:[#allocation0 + $0xe0] sm:$0x3] %v3809_v55  ;;  %v2336_v54 = vld [vmem:[#allocation0 + $0x800] ss:$8 sm:$0xf]  }
 0x16e   :  { %1943 = vst [vmem:[#allocation0 + $0xd8] sm:$0x3] %v3810_v56  ;;  %v2338_v55 = vld [vmem:[#allocation0 + $0x800] ss:$8 sm:$0xf0]  }
 0x16f   :  { %1947 = vst [vmem:[#allocation0 + $0xd0] sm:$0x3] %v3811_v57  ;;  %v2372_v57 = vld [vmem:[#allocation0 + $0x900] ss:$8 sm:$0xf]  }
 0x170   :  { %v3041_v0 = vld [vmem:[#allocation0 + $0x681] ss:$8 sm:$0xf]   ;;  %1951 = vst [vmem:[#allocation0 + $0xc8] sm:$0x3] %v3812_v58  ;;  %v2304_v58 = vsel %vm2052_vm0, %v2302_v52, %v2300_v50  ;;  %v5495_v52 = vpop.permute.xlu2 %2782  }
 0x171   :  { %v3045_v1 = vsel %vm2052_vm0, %v3043_v61, %v3041_v0  ;;  %1955 = vst [vmem:[#allocation0 + $0xc0] sm:$0x3] %v3813_v59  ;;  %v2374_v59 = vld [vmem:[#allocation0 + $0x900] ss:$8 sm:$0xf0]  }
 0x172   :  { %3046 = vrot.lane.b32.xlu2 %v3045_v1, %s3964_s15  ;;  %167 = vst [vmem:[#allocation0 + $0xeb8] sm:$0x3] %v3366_v60  ;;  %v3430_v0 = vld [vmem:[%s6329_s0 + $0x32e] sm:$0x3] }
 0x173   :  { %171 = vst [vmem:[#allocation0 + $0xeb0] sm:$0x3] %v3367_v62  ;;  %v2340_v62 = vsel %vm2052_vm0, %v2338_v55, %v2336_v54  ;;  %v3522_v54 = vld [vmem:[%s6329_s0 + $0x276] sm:$0x3]  ;;  %v5501_v55 = vpop.permute.xlu0 %2793  }
 0x174   :  { %175 = vst [vmem:[#allocation0 + $0xea8] sm:$0x3] %v3368_v63  ;;  %v3153_v11 = vld [vmem:[#allocation0 + $0xc1] ss:$8 sm:$0xf0]   ;;  %v2376_v63 = vsel %vm2052_vm0, %v2374_v59, %v2372_v57 }
 0x175   :  { %179 = vst [vmem:[#allocation0 + $0xea0] sm:$0x3] %v3369_v2  ;;  %v3431_v2 = vld [vmem:[%s6329_s0 + $0x32c] sm:$0x3]  ;;  %v3524_v57 = vld [vmem:[%s6329_s0 + $0x272] sm:$0x3] }
 0x176   :  { %183 = vst [vmem:[#allocation0 + $0xe98] sm:$0x3] %v3370_v3  ;;  %v3432_v3 = vld [vmem:[%s6329_s0 + $0x32a] sm:$0x3]  ;;  %v3582_v59 = vld [vmem:[%s6329_s0 + $0x1fe] sm:$0x3] }
 0x177   :  { %187 = vst [vmem:[#allocation0 + $0xe90] sm:$0x3] %v3371_v4  ;;  %v3433_v4 = vld [vmem:[%s6329_s0 + $0x328] sm:$0x3] }
 0x178   :  { %v3151_v15 = vld [vmem:[#allocation0 + $0xc1] ss:$8 sm:$0xf]   ;;  %191 = vst [vmem:[#allocation0 + $0xe88] sm:$0x3] %v3372_v6  ;;  %v5379_v6 = vpop.permute.xlu1 %2738  }
 0x179   :  { %v3155_v16 = vsel %vm2052_vm0, %v3153_v11, %v3151_v15  ;;  %195 = vst [vmem:[#allocation0 + $0xe80] sm:$0x3] %v3373_v8  ;;  %v3435_v11 = vld [vmem:[%s6329_s0 + $0x324] sm:$0x3]  ;;  %v3615_v15 = vld [vmem:[%s6329_s0 + $0x1bc] sm:$0x3] }
 0x17a   :  { %3156 = vrot.lane.b32.xlu0 %v3155_v16, %s3964_s15  ;;  %3848 = vst.msk [vmem:[%s6330_s1 + $0x60] sm:$0xff] %vm2054_vm1, %v2160_v13   ;;  %v3437_v13 = vld [vmem:[%s6329_s0 + $0x320] sm:$0x3]  ;;  %v3616_v16 = vld [vmem:[%s6329_s0 + $0x1ba] sm:$0x3] }
 0x17b   :  { %3902 = vst.msk [vmem:[%s6330_s1 + $0x60] sm:$0xff] %vm2631_vm2, %v5151_v44   ;;  %v3776_v44 = vld [vmem:[%s6329_s0 + $0x7a] sm:$0x3] }
 0x17c   :  { %3856 = vst.msk [vmem:[%s6330_s1 + $0xa0] sm:$0xff] %vm2054_vm1, %v2232_v17   ;;  %v3131_v20 = vld [vmem:[#allocation0 + $0xe81] ss:$8 sm:$0xf0]  }
 0x17d   :  { %3904 = vst.msk [vmem:[%s6330_s1 + $0xa0] sm:$0xff] %vm2631_vm2, %v5153_v45   ;;  %v3617_v17 = vld [vmem:[%s6329_s0 + $0x1b8] sm:$0x3] }
 0x17e   :  { %3860 = vst.msk [vmem:[%s6330_s1 + $0xc0] sm:$0xff] %vm2054_vm1, %v2268_v18   ;;  %v3618_v18 = vld [vmem:[%s6329_s0 + $0x1b6] sm:$0x3] }
 0x17f   :  { %3905 = vst.msk [vmem:[%s6330_s1 + $0xc0] sm:$0xff] %vm2631_vm2, %v5159_v48   ;;  %v3778_v48 = vld [vmem:[%s6329_s0 + $0x76] sm:$0x3] }
 0x180   :  { %v3129_v24 = vld [vmem:[#allocation0 + $0xe81] ss:$8 sm:$0xf]   ;;  %807 = vst [vmem:[#allocation0 + $0x9b8] sm:$0x3] %v3526_v19 }
 0x181   :  { %v3133_v27 = vsel %vm2052_vm0, %v3131_v20, %v3129_v24  ;;  %811 = vst [vmem:[#allocation0 + $0x9b0] sm:$0x3] %v3527_v21  ;;  %v3619_v19 = vld [vmem:[%s6329_s0 + $0x1b4] sm:$0x3]  ;;  %v3620_v20 = vld [vmem:[%s6329_s0 + $0x1b2] sm:$0x3] }
 0x182   :  { %3134 = vrot.lane.b32.xlu1 %v3133_v27, %s3964_s15  ;;  %815 = vst [vmem:[#allocation0 + $0x9a8] sm:$0x3] %v3528_v22  ;;  %v3621_v21 = vld [vmem:[%s6329_s0 + $0x1b0] sm:$0x3]  ;;  %v3678_v22 = vld [vmem:[%s6329_s0 + $0x13e] sm:$0x3] }
 0x183   :  { %819 = vst [vmem:[#allocation0 + $0x9a0] sm:$0x3] %v3529_v23  ;;  %v3679_v24 = vld [vmem:[%s6329_s0 + $0x13c] sm:$0x3] }
 0x184   :  { %823 = vst [vmem:[#allocation0 + $0x998] sm:$0x3] %v3530_v28  ;;  %v3681_v28 = vld [vmem:[%s6329_s0 + $0x138] sm:$0x3] }
 0x185   :  { %827 = vst [vmem:[#allocation0 + $0x990] sm:$0x3] %v3531_v30  ;;  %v3683_v30 = vld [vmem:[%s6329_s0 + $0x134] sm:$0x3] }
 0x186   :  { %831 = vst [vmem:[#allocation0 + $0x988] sm:$0x3] %v3532_v31  ;;  %v2408_v31 = vld [vmem:[#allocation0 + $0xa00] ss:$8 sm:$0xf]  }
 0x187   :  { %835 = vst [vmem:[#allocation0 + $0x980] sm:$0x3] %v3533_v32  ;;  %v3684_v32 = vld [vmem:[%s6329_s0 + $0x132] sm:$0x3] }
 0x188   :  { %1543 = vst [vmem:[#allocation0 + $0x3f8] sm:$0x3] %v3710_v33  ;;  %v2410_v33 = vld [vmem:[#allocation0 + $0xa00] ss:$8 sm:$0xf0]  }
 0x189   :  { %1547 = vst [vmem:[#allocation0 + $0x3f0] sm:$0x3] %v3711_v34  ;;  %v3685_v34 = vld [vmem:[%s6329_s0 + $0x130] sm:$0x3] }
 0x18a   :  { %1551 = vst [vmem:[#allocation0 + $0x3e8] sm:$0x3] %v3712_v35  ;;  %v3076_v42 = vld [vmem:[#allocation0 + $0x981] ss:$8 sm:$0xf0]  }
 0x18b   :  { %1555 = vst [vmem:[#allocation0 + $0x3e0] sm:$0x3] %v3713_v36  ;;  %v2444_v35 = vld [vmem:[#allocation0 + $0xb00] ss:$8 sm:$0xf]  }
 0x18c   :  { %1559 = vst [vmem:[#allocation0 + $0x3d8] sm:$0x3] %v3714_v37  ;;  %v2446_v36 = vld [vmem:[#allocation0 + $0xb00] ss:$8 sm:$0xf0]  }
 0x18d   :  { %1563 = vst [vmem:[#allocation0 + $0x3d0] sm:$0x3] %v3715_v38  ;;  %v2480_v38 = vld [vmem:[#allocation0 + $0xc00] ss:$8 sm:$0xf]  }
 0x18e   :  { %v3074_v45 = vld [vmem:[#allocation0 + $0x981] ss:$8 sm:$0xf]   ;;  %1567 = vst [vmem:[#allocation0 + $0x3c8] sm:$0x3] %v3716_v39  ;;  %v2412_v39 = vsel %vm2052_vm0, %v2410_v33, %v2408_v31  ;;  %v5609_v33 = vpop.permute.xlu2 %2815  }
 0x18f   :  { %v3078_v46 = vsel %vm2052_vm0, %v3076_v42, %v3074_v45  ;;  %1571 = vst [vmem:[#allocation0 + $0x3c0] sm:$0x3] %v3717_v40  ;;  %v2482_v40 = vld [vmem:[#allocation0 + $0xc00] ss:$8 sm:$0xf0]  }
 0x190   :  { %3079 = vrot.lane.b32.xlu2 %v3078_v46, %s3964_s15  ;;  %1799 = vst [vmem:[#allocation0 + $0x1f8] sm:$0x3] %v3774_v41  ;;  %v3518_v45 = vld [vmem:[%s6329_s0 + $0x27e] sm:$0x3] }
 0x191   :  { %1803 = vst [vmem:[#allocation0 + $0x1f0] sm:$0x3] %v3775_v43  ;;  %v2448_v43 = vsel %vm2052_vm0, %v2446_v36, %v2444_v35  ;;  %v3426_v35 = vld [vmem:[%s6329_s0 + $0x336] sm:$0x3]  ;;  %v5615_v36 = vpop.permute.xlu0 %2826  }
 0x192   :  { %1807 = vst [vmem:[#allocation0 + $0x1e8] sm:$0x3] %v3776_v44  ;;  %v3186_v56 = vld [vmem:[#allocation0 + $0x3c1] ss:$8 sm:$0xf0]   ;;  %v2484_v44 = vsel %vm2052_vm0, %v2482_v40, %v2480_v38 }
 0x193   :  { %1811 = vst [vmem:[#allocation0 + $0x1e0] sm:$0x3] %v3777_v47  ;;  %v3519_v47 = vld [vmem:[%s6329_s0 + $0x27c] sm:$0x3]  ;;  %v3428_v38 = vld [vmem:[%s6329_s0 + $0x332] sm:$0x3] }
 0x194   :  { %1815 = vst [vmem:[#allocation0 + $0x1d8] sm:$0x3] %v3778_v48  ;;  %v3520_v48 = vld [vmem:[%s6329_s0 + $0x27a] sm:$0x3]  ;;  %v3486_v40 = vld [vmem:[%s6329_s0 + $0x2be] sm:$0x3] }
 0x195   :  { %1819 = vst [vmem:[#allocation0 + $0x1d0] sm:$0x3] %v3779_v49  ;;  %v3521_v49 = vld [vmem:[%s6329_s0 + $0x278] sm:$0x3] }
 0x196   :  { %v3184_v60 = vld [vmem:[#allocation0 + $0x3c1] ss:$8 sm:$0xf]   ;;  %1823 = vst [vmem:[#allocation0 + $0x1c8] sm:$0x3] %v3780_v51  ;;  %v5493_v51 = vpop.permute.xlu1 %2771  }
 0x197   :  { %v3188_v61 = vsel %vm2052_vm0, %v3186_v56, %v3184_v60  ;;  %1827 = vst [vmem:[#allocation0 + $0x1c0] sm:$0x3] %v3781_v53  ;;  %v3523_v56 = vld [vmem:[%s6329_s0 + $0x274] sm:$0x3]  ;;  %v3583_v60 = vld [vmem:[%s6329_s0 + $0x1fc] sm:$0x3] }
 0x198   :  { %3189 = vrot.lane.b32.xlu0 %v3188_v61, %s3964_s15  ;;  %3864 = vst.msk [vmem:[%s6330_s1 + $0xe0] sm:$0xff] %vm2054_vm1, %v2304_v58   ;;  %v3525_v58 = vld [vmem:[%s6329_s0 + $0x270] sm:$0x3]  ;;  %v3584_v61 = vld [vmem:[%s6329_s0 + $0x1fa] sm:$0x3] }
 0x199   :  { %3906 = vst.msk [vmem:[%s6330_s1 + $0xe0] sm:$0xff] %vm2631_vm2, %v5265_v25   ;;  %v3680_v25 = vld [vmem:[%s6329_s0 + $0x13a] sm:$0x3] }
 0x19a   :  { %3868 = vst.msk [vmem:[%s6330_s1 + $0x100] sm:$0xff] %vm2054_vm1, %v2340_v62   ;;  %v3164_v1 = vld [vmem:[#allocation0 + $0x1c1] ss:$8 sm:$0xf0]  }
 0x19b   :  { %3907 = vst.msk [vmem:[%s6330_s1 + $0x100] sm:$0xff] %vm2631_vm2, %v5267_v26   ;;  %v3585_v62 = vld [vmem:[%s6329_s0 + $0x1f8] sm:$0x3] }
 0x19c   :  { %3872 = vst.msk [vmem:[%s6330_s1 + $0x120] sm:$0xff] %vm2054_vm1, %v2376_v63   ;;  %v3586_v63 = vld [vmem:[%s6329_s0 + $0x1f6] sm:$0x3] }
 0x19d   :  { %3908 = vst.msk [vmem:[%s6330_s1 + $0x120] sm:$0xff] %vm2631_vm2, %v5273_v29   ;;  %v3682_v29 = vld [vmem:[%s6329_s0 + $0x136] sm:$0x3] }
 0x19e   :  { %v3162_v5 = vld [vmem:[#allocation0 + $0x1c1] ss:$8 sm:$0xf]   ;;  %423 = vst [vmem:[#allocation0 + $0xcb8] sm:$0x3] %v3430_v0 }
 0x19f   :  { %v3166_v8 = vsel %vm2052_vm0, %v3164_v1, %v3162_v5  ;;  %427 = vst [vmem:[#allocation0 + $0xcb0] sm:$0x3] %v3431_v2  ;;  %v3587_v0 = vld [vmem:[%s6329_s0 + $0x1f4] sm:$0x3]  ;;  %v3588_v1 = vld [vmem:[%s6329_s0 + $0x1f2] sm:$0x3] }
 0x1a0   :  { %3167 = vrot.lane.b32.xlu1 %v3166_v8, %s3964_s15  ;;  %431 = vst [vmem:[#allocation0 + $0xca8] sm:$0x3] %v3432_v3  ;;  %v3589_v2 = vld [vmem:[%s6329_s0 + $0x1f0] sm:$0x3]  ;;  %v3334_v3 = vld [vmem:[%s6329_s0 + $0x3ee] sm:$0x3] }
 0x1a1   :  { %435 = vst [vmem:[#allocation0 + $0xca0] sm:$0x3] %v3433_v4  ;;  %v3335_v5 = vld [vmem:[%s6329_s0 + $0x3ec] sm:$0x3] }
 0x1a2   :  { %439 = vst [vmem:[#allocation0 + $0xc98] sm:$0x3] %v3434_v9  ;;  %v3337_v9 = vld [vmem:[%s6329_s0 + $0x3e8] sm:$0x3] }
 0x1a3   :  { %443 = vst [vmem:[#allocation0 + $0xc90] sm:$0x3] %v3435_v11  ;;  %v3339_v11 = vld [vmem:[%s6329_s0 + $0x3e4] sm:$0x3] }
 0x1a4   :  { %447 = vst [vmem:[#allocation0 + $0xc88] sm:$0x3] %v3436_v12  ;;  %v2516_v12 = vld [vmem:[#allocation0 + $0xd00] ss:$8 sm:$0xf]  }
 0x1a5   :  { %451 = vst [vmem:[#allocation0 + $0xc80] sm:$0x3] %v3437_v13  ;;  %v3340_v13 = vld [vmem:[%s6329_s0 + $0x3e2] sm:$0x3] }
 0x1a6   :  { %1159 = vst [vmem:[#allocation0 + $0x6f8] sm:$0x3] %v3614_v14  ;;  %v2518_v14 = vld [vmem:[#allocation0 + $0xd00] ss:$8 sm:$0xf0]  }
 0x1a7   :  { %1163 = vst [vmem:[#allocation0 + $0x6f0] sm:$0x3] %v3615_v15  ;;  %v3341_v15 = vld [vmem:[%s6329_s0 + $0x3e0] sm:$0x3] }
 0x1a8   :  { %1167 = vst [vmem:[#allocation0 + $0x6e8] sm:$0x3] %v3616_v16  ;;  %v3109_v23 = vld [vmem:[#allocation0 + $0xc81] ss:$8 sm:$0xf0]  }
 0x1a9   :  { %1171 = vst [vmem:[#allocation0 + $0x6e0] sm:$0x3] %v3617_v17  ;;  %v2552_v16 = vld [vmem:[#allocation0 + $0xe00] ss:$8 sm:$0xf]  }
 0x1aa   :  { %1175 = vst [vmem:[#allocation0 + $0x6d8] sm:$0x3] %v3618_v18  ;;  %v2554_v17 = vld [vmem:[#allocation0 + $0xe00] ss:$8 sm:$0xf0]  }
 0x1ab   :  { %1179 = vst [vmem:[#allocation0 + $0x6d0] sm:$0x3] %v3619_v19  ;;  %v2588_v19 = vld [vmem:[#allocation0 + $0xf00] ss:$8 sm:$0xf]  }
 0x1ac   :  { %v3107_v26 = vld [vmem:[#allocation0 + $0xc81] ss:$8 sm:$0xf]   ;;  %1183 = vst [vmem:[#allocation0 + $0x6c8] sm:$0x3] %v3620_v20  ;;  %v2520_v20 = vsel %vm2052_vm0, %v2518_v14, %v2516_v12  ;;  %v5723_v14 = vpop.permute.xlu2 %2848  }
 0x1ad   :  { %v3111_v27 = vsel %vm2052_vm0, %v3109_v23, %v3107_v26  ;;  %1187 = vst [vmem:[#allocation0 + $0x6c0] sm:$0x3] %v3621_v21  ;;  %v2590_v21 = vld [vmem:[#allocation0 + $0xf00] ss:$8 sm:$0xf0]  }
 0x1ae   :  { %3112 = vrot.lane.b32.xlu2 %v3111_v27, %s3964_s15  ;;  %1415 = vst [vmem:[#allocation0 + $0x4f8] sm:$0x3] %v3678_v22  ;;  %v3422_v26 = vld [vmem:[%s6329_s0 + $0x33e] sm:$0x3] }
 0x1af   :  { %1419 = vst [vmem:[#allocation0 + $0x4f0] sm:$0x3] %v3679_v24  ;;  %v2556_v24 = vsel %vm2052_vm0, %v2554_v17, %v2552_v16  ;;  %v3394_v16 = vld [vmem:[%s6329_s0 + $0x376] sm:$0x3]  ;;  %v5729_v17 = vpop.permute.xlu0 %2859  }
 0x1b0   :  { %1423 = vst [vmem:[#allocation0 + $0x4e8] sm:$0x3] %v3680_v25  ;;  %v3219_v37 = vld [vmem:[#allocation0 + $0x6c1] ss:$8 sm:$0xf0]   ;;  %v2592_v25 = vsel %vm2052_vm0, %v2590_v21, %v2588_v19 }
 0x1b1   :  { %1427 = vst [vmem:[#allocation0 + $0x4e0] sm:$0x3] %v3681_v28  ;;  %v3423_v28 = vld [vmem:[%s6329_s0 + $0x33c] sm:$0x3]  ;;  %v3396_v19 = vld [vmem:[%s6329_s0 + $0x372] sm:$0x3] }
 0x1b2   :  { %1431 = vst [vmem:[#allocation0 + $0x4d8] sm:$0x3] %v3682_v29  ;;  %v3424_v29 = vld [vmem:[%s6329_s0 + $0x33a] sm:$0x3]  ;;  %v3646_v21 = vld [vmem:[%s6329_s0 + $0x17e] sm:$0x3] }
 0x1b3   :  { %1435 = vst [vmem:[#allocation0 + $0x4d0] sm:$0x3] %v3683_v30  ;;  %v3425_v30 = vld [vmem:[%s6329_s0 + $0x338] sm:$0x3] }
 0x1b4   :  { %v3217_v41 = vld [vmem:[#allocation0 + $0x6c1] ss:$8 sm:$0xf]   ;;  %1439 = vst [vmem:[#allocation0 + $0x4c8] sm:$0x3] %v3684_v32  ;;  %v5607_v32 = vpop.permute.xlu1 %2804  }
 0x1b5   :  { %v3221_v42 = vsel %vm2052_vm0, %v3219_v37, %v3217_v41  ;;  %1443 = vst [vmem:[#allocation0 + $0x4c0] sm:$0x3] %v3685_v34  ;;  %v3427_v37 = vld [vmem:[%s6329_s0 + $0x334] sm:$0x3]  ;;  %v3487_v41 = vld [vmem:[%s6329_s0 + $0x2bc] sm:$0x3] }
 0x1b6   :  { %3222 = vrot.lane.b32.xlu0 %v3221_v42, %s3964_s15  ;;  %3876 = vst.msk [vmem:[%s6330_s1 + $0x140] sm:$0xff] %vm2054_vm1, %v2412_v39   ;;  %v3429_v39 = vld [vmem:[%s6329_s0 + $0x330] sm:$0x3]  ;;  %v3488_v42 = vld [vmem:[%s6329_s0 + $0x2ba] sm:$0x3] }
 0x1b7   :  { %3909 = vst.msk [vmem:[%s6330_s1 + $0x140] sm:$0xff] %vm2631_vm2, %v5379_v6   ;;  %v3336_v6 = vld [vmem:[%s6329_s0 + $0x3ea] sm:$0x3] }
 0x1b8   :  { %3880 = vst.msk [vmem:[%s6330_s1 + $0x160] sm:$0xff] %vm2054_vm1, %v2448_v43   ;;  %v3197_v46 = vld [vmem:[#allocation0 + $0x4c1] ss:$8 sm:$0xf0]  }
 0x1b9   :  { %3910 = vst.msk [vmem:[%s6330_s1 + $0x160] sm:$0xff] %vm2631_vm2, %v5381_v7   ;;  %v3489_v43 = vld [vmem:[%s6329_s0 + $0x2b8] sm:$0x3] }
 0x1ba   :  { %3884 = vst.msk [vmem:[%s6330_s1 + $0x180] sm:$0xff] %vm2054_vm1, %v2484_v44   ;;  %v3490_v44 = vld [vmem:[%s6329_s0 + $0x2b6] sm:$0x3] }
 0x1bb   :  { %3911 = vst.msk [vmem:[%s6330_s1 + $0x180] sm:$0xff] %vm2631_vm2, %v5387_v10   ;;  %v3338_v10 = vld [vmem:[%s6329_s0 + $0x3e6] sm:$0x3] }
 0x1bc   :  { %v3195_v50 = vld [vmem:[#allocation0 + $0x4c1] ss:$8 sm:$0xf]   ;;  %775 = vst [vmem:[#allocation0 + $0x9f8] sm:$0x3] %v3518_v45 }
 0x1bd   :  { %v3199_v53 = vsel %vm2052_vm0, %v3197_v46, %v3195_v50  ;;  %779 = vst [vmem:[#allocation0 + $0x9f0] sm:$0x3] %v3519_v47  ;;  %v3491_v45 = vld [vmem:[%s6329_s0 + $0x2b4] sm:$0x3]  ;;  %v3492_v46 = vld [vmem:[%s6329_s0 + $0x2b2] sm:$0x3] }
 0x1be   :  { %3200 = vrot.lane.b32.xlu1 %v3199_v53, %s3964_s15  ;;  %783 = vst [vmem:[#allocation0 + $0x9e8] sm:$0x3] %v3520_v48  ;;  %v3493_v47 = vld [vmem:[%s6329_s0 + $0x2b0] sm:$0x3]  ;;  %v3742_v48 = vld [vmem:[%s6329_s0 + $0xbe] sm:$0x3] }
 0x1bf   :  { %787 = vst [vmem:[#allocation0 + $0x9e0] sm:$0x3] %v3521_v49  ;;  %v3743_v50 = vld [vmem:[%s6329_s0 + $0xbc] sm:$0x3] }
 0x1c0   :  { %791 = vst [vmem:[#allocation0 + $0x9d8] sm:$0x3] %v3522_v54  ;;  %v3745_v54 = vld [vmem:[%s6329_s0 + $0xb8] sm:$0x3] }
 0x1c1   :  { %795 = vst [vmem:[#allocation0 + $0x9d0] sm:$0x3] %v3523_v56  ;;  %v3747_v56 = vld [vmem:[%s6329_s0 + $0xb4] sm:$0x3] }
 0x1c2   :  { %799 = vst [vmem:[#allocation0 + $0x9c8] sm:$0x3] %v3524_v57  ;;  %v2057_v57 = vld [vmem:[#allocation0 + $0x40] ss:$8 sm:$0xf]  }
 0x1c3   :  { %803 = vst [vmem:[#allocation0 + $0x9c0] sm:$0x3] %v3525_v58  ;;  %v3748_v58 = vld [vmem:[%s6329_s0 + $0xb2] sm:$0x3] }
 0x1c4   :  { %1031 = vst [vmem:[#allocation0 + $0x7f8] sm:$0x3] %v3582_v59  ;;  %v2059_v59 = vld [vmem:[#allocation0 + $0x40] ss:$8 sm:$0xf0]  }
 0x1c5   :  { %1035 = vst [vmem:[#allocation0 + $0x7f0] sm:$0x3] %v3583_v60  ;;  %v3749_v60 = vld [vmem:[%s6329_s0 + $0xb0] sm:$0x3] }
 0x1c6   :  { %1039 = vst [vmem:[#allocation0 + $0x7e8] sm:$0x3] %v3584_v61  ;;  %v3252_v4 = vld [vmem:[#allocation0 + $0x9c1] ss:$8 sm:$0xf0]  }
 0x1c7   :  { %1043 = vst [vmem:[#allocation0 + $0x7e0] sm:$0x3] %v3585_v62  ;;  %v2093_v61 = vld [vmem:[#allocation0 + $0x140] ss:$8 sm:$0xf]  }
 0x1c8   :  { %1047 = vst [vmem:[#allocation0 + $0x7d8] sm:$0x3] %v3586_v63  ;;  %v2095_v62 = vld [vmem:[#allocation0 + $0x140] ss:$8 sm:$0xf0]  }
 0x1c9   :  { %1051 = vst [vmem:[#allocation0 + $0x7d0] sm:$0x3] %v3587_v0  ;;  %v2129_v0 = vld [vmem:[#allocation0 + $0x240] ss:$8 sm:$0xf]  }
 0x1ca   :  { %v3250_v7 = vld [vmem:[#allocation0 + $0x9c1] ss:$8 sm:$0xf]   ;;  %1055 = vst [vmem:[#allocation0 + $0x7c8] sm:$0x3] %v3588_v1  ;;  %v2061_v1 = vsel %vm2052_vm0, %v2059_v59, %v2057_v57 }
 0x1cb   :  { %v3254_v8 = vsel %vm2052_vm0, %v3252_v4, %v3250_v7  ;;  %1059 = vst [vmem:[#allocation0 + $0x7c0] sm:$0x3] %v3589_v2  ;;  %v2131_v2 = vld [vmem:[#allocation0 + $0x240] ss:$8 sm:$0xf0]  }
 0x1cc   :  { %3255 = vrot.lane.b32.xlu0 %v3254_v8, %s3964_s15  ;;  %39 = vst [vmem:[#allocation0 + $0xfb8] sm:$0x3] %v3334_v3  ;;  %v3390_v7 = vld [vmem:[%s6329_s0 + $0x37e] sm:$0x3] }
 0x1cd   :  { %43 = vst [vmem:[#allocation0 + $0xfb0] sm:$0x3] %v3335_v5  ;;  %v2097_v5 = vsel %vm2052_vm0, %v2095_v62, %v2093_v61  ;;  %v3553_v61 = vld [vmem:[%s6329_s0 + $0x238] sm:$0x3]  ;;  %v3554_v62 = vld [vmem:[%s6329_s0 + $0x236] sm:$0x3] }
 0x1ce   :  { %47 = vst [vmem:[#allocation0 + $0xfa8] sm:$0x3] %v3336_v6  ;;  %v3230_v18 = vld [vmem:[#allocation0 + $0x7c1] ss:$8 sm:$0xf0]   ;;  %v2133_v6 = vsel %vm2052_vm0, %v2131_v2, %v2129_v0 }
 0x1cf   :  { %51 = vst [vmem:[#allocation0 + $0xfa0] sm:$0x3] %v3337_v9  ;;  %v3391_v9 = vld [vmem:[%s6329_s0 + $0x37c] sm:$0x3] }
 0x1d0   :  { %55 = vst [vmem:[#allocation0 + $0xf98] sm:$0x3] %v3338_v10  ;;  %v3392_v10 = vld [vmem:[%s6329_s0 + $0x37a] sm:$0x3] }
 0x1d1   :  { %59 = vst [vmem:[#allocation0 + $0xf90] sm:$0x3] %v3339_v11  ;;  %v3393_v11 = vld [vmem:[%s6329_s0 + $0x378] sm:$0x3] }
 0x1d2   :  { %v3228_v22 = vld [vmem:[#allocation0 + $0x7c1] ss:$8 sm:$0xf]   ;;  %63 = vst [vmem:[#allocation0 + $0xf88] sm:$0x3] %v3340_v13  ;;  %v5721_v13 = vpop.permute.xlu1 %2837  }
 0x1d3   :  { %v3232_v23 = vsel %vm2052_vm0, %v3230_v18, %v3228_v22  ;;  %67 = vst [vmem:[#allocation0 + $0xf80] sm:$0x3] %v3341_v15  ;;  %v3395_v18 = vld [vmem:[%s6329_s0 + $0x374] sm:$0x3]  ;;  %v3647_v22 = vld [vmem:[%s6329_s0 + $0x17c] sm:$0x3] }
 0x1d4   :  { %3233 = vrot.lane.b32.xlu1 %v3232_v23, %s3964_s15  ;;  %3888 = vst.msk [vmem:[%s6330_s1 + $0x1a0] sm:$0xff] %vm2054_vm1, %v2520_v20   ;;  %v3397_v20 = vld [vmem:[%s6329_s0 + $0x370] sm:$0x3]  ;;  %v3648_v23 = vld [vmem:[%s6329_s0 + $0x17a] sm:$0x3] }
 0x1d5   :  { %3912 = vst.msk [vmem:[%s6330_s1 + $0x1a0] sm:$0xff] %vm2631_vm2, %v5493_v51   ;;  %v3744_v51 = vld [vmem:[%s6329_s0 + $0xba] sm:$0x3] }
 0x1d6   :  { %3892 = vst.msk [vmem:[%s6330_s1 + $0x1c0] sm:$0xff] %vm2054_vm1, %v2556_v24   ;;  %v3142_v27 = vld [vmem:[#allocation0 + $0xf81] ss:$8 sm:$0xf0]  }
 0x1d7   :  { %3913 = vst.msk [vmem:[%s6330_s1 + $0x1c0] sm:$0xff] %vm2631_vm2, %v5495_v52   ;;  %v3649_v24 = vld [vmem:[%s6329_s0 + $0x178] sm:$0x3] }
 0x1d8   :  { %3896 = vst.msk [vmem:[%s6330_s1 + $0x1e0] sm:$0xff] %vm2054_vm1, %v2592_v25   ;;  %v3650_v25 = vld [vmem:[%s6329_s0 + $0x176] sm:$0x3] }
 0x1d9   :  { %3914 = vst.msk [vmem:[%s6330_s1 + $0x1e0] sm:$0xff] %vm2631_vm2, %v5501_v55   ;;  %v3746_v55 = vld [vmem:[%s6329_s0 + $0xb6] sm:$0x3] }
 0x1da   :  { %v3140_v31 = vld [vmem:[#allocation0 + $0xf81] ss:$8 sm:$0xf]   ;;  %391 = vst [vmem:[#allocation0 + $0xcf8] sm:$0x3] %v3422_v26 }
 0x1db   :  { %v3144_v34 = vsel %vm2052_vm0, %v3142_v27, %v3140_v31  ;;  %395 = vst [vmem:[#allocation0 + $0xcf0] sm:$0x3] %v3423_v28  ;;  %v3651_v26 = vld [vmem:[%s6329_s0 + $0x174] sm:$0x3]  ;;  %v3652_v27 = vld [vmem:[%s6329_s0 + $0x172] sm:$0x3] }
 0x1dc   :  { %3145 = vrot.lane.b32.xlu2 %v3144_v34, %s3964_s15  ;;  %399 = vst [vmem:[#allocation0 + $0xce8] sm:$0x3] %v3424_v29  ;;  %v3653_v28 = vld [vmem:[%s6329_s0 + $0x170] sm:$0x3]  ;;  %v3326_v29 = vld [vmem:[%s6329_s0 + $0x3fe] sm:$0x3]  ;;  %v5774_v34 = vpop.permute.xlu1 %2870  }
 0x1dd   :  { %403 = vst [vmem:[#allocation0 + $0xce0] sm:$0x3] %v3425_v30  ;;  %v3327_v31 = vld [vmem:[%s6329_s0 + $0x3fc] sm:$0x3] }
 0x1de   :  { %407 = vst [vmem:[#allocation0 + $0xcd8] sm:$0x3] %v3426_v35  ;;  %v5776_v35 = vpop.permute.xlu2 %2881  }
 0x1df   :  { %411 = vst [vmem:[#allocation0 + $0xcd0] sm:$0x3] %v3427_v37  ;;  %v3329_v37 = vld [vmem:[%s6329_s0 + $0x3f8] sm:$0x3] }
 0x1e0   :  { %415 = vst [vmem:[#allocation0 + $0xcc8] sm:$0x3] %v3428_v38  ;;  %v3330_v38 = vld [vmem:[%s6329_s0 + $0x3f6] sm:$0x3] }
 0x1e1   :  { %419 = vst [vmem:[#allocation0 + $0xcc0] sm:$0x3] %v3429_v39  ;;  %v5785_v39 = vpop.permute.xlu0 %2892  }
 0x1e2   :  { %647 = vst [vmem:[#allocation0 + $0xaf8] sm:$0x3] %v3486_v40  ;;  %v3331_v40 = vld [vmem:[%s6329_s0 + $0x3f4] sm:$0x3] }
 0x1e3   :  { %651 = vst [vmem:[#allocation0 + $0xaf0] sm:$0x3] %v3487_v41  ;;  %v2165_v41 = vld [vmem:[#allocation0 + $0x340] ss:$8 sm:$0xf]  }
 0x1e4   :  { %655 = vst [vmem:[#allocation0 + $0xae8] sm:$0x3] %v3488_v42  ;;  %v3285_v49 = vld [vmem:[#allocation0 + $0xcc1] ss:$8 sm:$0xf0]   ;;  %v5833_v59 = vpop.permute.xlu1 %2903  }
 0x1e5   :  { %659 = vst [vmem:[#allocation0 + $0xae0] sm:$0x3] %v3489_v43  ;;  %v3332_v42 = vld [vmem:[%s6329_s0 + $0x3f2] sm:$0x3] }
 0x1e6   :  { %663 = vst [vmem:[#allocation0 + $0xad8] sm:$0x3] %v3490_v44  ;;  %v2167_v43 = vld [vmem:[#allocation0 + $0x340] ss:$8 sm:$0xf0]  }
 0x1e7   :  { %667 = vst [vmem:[#allocation0 + $0xad0] sm:$0x3] %v3491_v45  ;;  %v3333_v44 = vld [vmem:[%s6329_s0 + $0x3f0] sm:$0x3] }
 0x1e8   :  { %v3283_v52 = vld [vmem:[#allocation0 + $0xcc1] ss:$8 sm:$0xf]   ;;  %671 = vst [vmem:[#allocation0 + $0xac8] sm:$0x3] %v3492_v46 }
 0x1e9   :  { %v3287_v53 = vsel %vm2052_vm0, %v3285_v49, %v3283_v52  ;;  %675 = vst [vmem:[#allocation0 + $0xac0] sm:$0x3] %v3493_v47  ;;  %v2201_v45 = vld [vmem:[#allocation0 + $0x440] ss:$8 sm:$0xf]   ;;  %v2169_v49 = vsel %vm2052_vm0, %v2167_v43, %v2165_v41 }
 0x1ea   :  { %3288 = vrot.lane.b32.xlu0 %v3287_v53, %s3964_s15  ;;  %1671 = vst [vmem:[#allocation0 + $0x2f8] sm:$0x3] %v3742_v48  ;;  %v2203_v46 = vld [vmem:[#allocation0 + $0x440] ss:$8 sm:$0xf0]  }
 0x1eb   :  { %1675 = vst [vmem:[#allocation0 + $0x2f0] sm:$0x3] %v3743_v50  ;;  %v2237_v48 = vld [vmem:[#allocation0 + $0x540] ss:$8 sm:$0xf]   ;;  %v2205_v53 = vsel %vm2052_vm0, %v2203_v46, %v2201_v45 }
 0x1ec   :  { %1679 = vst [vmem:[#allocation0 + $0x2e8] sm:$0x3] %v3744_v51  ;;  %v3263_v63 = vld [vmem:[#allocation0 + $0xac1] ss:$8 sm:$0xf0]  }
 0x1ed   :  { %1683 = vst [vmem:[#allocation0 + $0x2e0] sm:$0x3] %v3745_v54  ;;  %v2239_v50 = vld [vmem:[#allocation0 + $0x540] ss:$8 sm:$0xf0]  }
 0x1ee   :  { %1687 = vst [vmem:[#allocation0 + $0x2d8] sm:$0x3] %v3746_v55  ;;  %v2241_v54 = vsel %vm2052_vm0, %v2239_v50, %v2237_v48  ;;  %v3550_v55 = vld [vmem:[%s6329_s0 + $0x23e] sm:$0x3]  ;;  %v3359_v41 = vld [vmem:[%s6329_s0 + $0x3bc] sm:$0x3] }
 0x1ef   :  { %1691 = vst [vmem:[#allocation0 + $0x2d0] sm:$0x3] %v3747_v56  ;;  %v3551_v56 = vld [vmem:[%s6329_s0 + $0x23c] sm:$0x3]  ;;  %v3360_v43 = vld [vmem:[%s6329_s0 + $0x3ba] sm:$0x3] }
 0x1f0   :  { %v3261_v3 = vld [vmem:[#allocation0 + $0xac1] ss:$8 sm:$0xf]   ;;  %1695 = vst [vmem:[#allocation0 + $0x2c8] sm:$0x3] %v3748_v58 }
 0x1f1   :  { %v3265_v4 = vsel %vm2052_vm0, %v3263_v63, %v3261_v3  ;;  %1699 = vst [vmem:[#allocation0 + $0x2c0] sm:$0x3] %v3749_v60  ;;  %v3552_v58 = vld [vmem:[%s6329_s0 + $0x23a] sm:$0x3]  ;;  %v5835_v60 = vpop.permute.xlu2 %2914   ;;  %v5848_v63 = vpop.permute.xlu0 %2925   ;;  %v3556_v3 = vld [vmem:[%s6329_s0 + $0x232] sm:$0x3] }
 0x1f2   :  { %3266 = vrot.lane.b32.xlu1 %v3265_v4, %s3964_s15  ;;  %3837 = vst.msk [vmem:[%s6330_s1 + $0x8] sm:$0xff] %vm2054_vm1, %v2061_v1   ;;  %v3555_v1 = vld [vmem:[%s6329_s0 + $0x234] sm:$0x3]  ;;  %v2273_v4 = vld [vmem:[#allocation0 + $0x640] ss:$8 sm:$0xf]  }
 0x1f3   :  { %3915 = vst.msk [vmem:[%s6330_s1 + $0x8] sm:$0xff] %vm2631_vm2, %v5607_v32   ;;  %v3328_v32 = vld [vmem:[%s6329_s0 + $0x3fa] sm:$0x3]  ;;  %v3362_v45 = vld [vmem:[%s6329_s0 + $0x3b6] sm:$0x3] }
 0x1f4   :  { %3841 = vst.msk [vmem:[%s6330_s1 + $0x28] sm:$0xff] %vm2054_vm1, %v2097_v5   ;;  %v3175_v8 = vld [vmem:[#allocation0 + $0x2c1] ss:$8 sm:$0xf0]  }
 0x1f5   :  { %3916 = vst.msk [vmem:[%s6330_s1 + $0x28] sm:$0xff] %vm2631_vm2, %v5609_v33   ;;  %v3557_v5 = vld [vmem:[%s6329_s0 + $0x230] sm:$0x3] }
 0x1f6   :  { %3845 = vst.msk [vmem:[%s6330_s1 + $0x48] sm:$0xff] %vm2054_vm1, %v2133_v6   ;;  %v2275_v6 = vld [vmem:[#allocation0 + $0x640] ss:$8 sm:$0xf0]  }
 0x1f7   :  { %3917 = vst.msk [vmem:[%s6330_s1 + $0x48] sm:$0xff] %vm2631_vm2, %v5615_v36   ;;  %v2489_v48 = vld [vmem:[#allocation0 + $0xc40] ss:$8 sm:$0xf]  }
 0x1f8   :  { %v3173_v12 = vld [vmem:[#allocation0 + $0x2c1] ss:$8 sm:$0xf]   ;;  %263 = vst [vmem:[#allocation0 + $0xdf8] sm:$0x3] %v3390_v7 }
 0x1f9   :  { %v3177_v15 = vsel %vm2052_vm0, %v3175_v8, %v3173_v12  ;;  %267 = vst [vmem:[#allocation0 + $0xdf0] sm:$0x3] %v3391_v9  ;;  %v2309_v7 = vld [vmem:[#allocation0 + $0x740] ss:$8 sm:$0xf]   ;;  %v2277_v9 = vsel %vm2052_vm0, %v2275_v6, %v2273_v4 }
 0x1fa   :  { %3178 = vrot.lane.b32.xlu2 %v3177_v15, %s3964_s15  ;;  %271 = vst [vmem:[#allocation0 + $0xde8] sm:$0x3] %v3392_v10  ;;  %v2311_v8 = vld [vmem:[#allocation0 + $0x740] ss:$8 sm:$0xf0]  }
 0x1fb   :  { %275 = vst [vmem:[#allocation0 + $0xde0] sm:$0x3] %v3393_v11  ;;  %v2345_v10 = vld [vmem:[#allocation0 + $0x840] ss:$8 sm:$0xf]   ;;  %v2313_v12 = vsel %vm2052_vm0, %v2311_v8, %v2309_v7 }
 0x1fc   :  { %279 = vst [vmem:[#allocation0 + $0xdd8] sm:$0x3] %v3394_v16  ;;  %v2347_v11 = vld [vmem:[#allocation0 + $0x840] ss:$8 sm:$0xf0]  }
 0x1fd   :  { %283 = vst [vmem:[#allocation0 + $0xdd0] sm:$0x3] %v3395_v18  ;;  %v3455_v15 = vld [vmem:[%s6329_s0 + $0x2fc] sm:$0x3]  ;;  %v5895_v18 = vpop.permute.xlu1 %2936  }
 0x1fe   :  { %287 = vst [vmem:[#allocation0 + $0xdc8] sm:$0x3] %v3396_v19  ;;  %v5897_v19 = vpop.permute.xlu2 %2947   ;;  %v2104_v4 = vld [vmem:[#allocation0 + $0x180] ss:$8 sm:$0xf0]  }
 0x1ff   :  { %291 = vst [vmem:[#allocation0 + $0xdc0] sm:$0x3] %v3397_v20  ;;  %v3457_v20 = vld [vmem:[%s6329_s0 + $0x2f8] sm:$0x3] }
 0x200   :  { %1287 = vst [vmem:[#allocation0 + $0x5f8] sm:$0x3] %v3646_v21  ;;  %v3458_v21 = vld [vmem:[%s6329_s0 + $0x2f6] sm:$0x3] }
 0x201   :  { %1291 = vst [vmem:[#allocation0 + $0x5f0] sm:$0x3] %v3647_v22  ;;  %v5910_v22 = vpop.permute.xlu0 %2958   ;;  %v2597_v6 = vld [vmem:[#allocation0 + $0xf40] ss:$8 sm:$0xf]  }
 0x202   :  { %1295 = vst [vmem:[#allocation0 + $0x5e8] sm:$0x3] %v3648_v23  ;;  %v3296_v30 = vld [vmem:[#allocation0 + $0xdc1] ss:$8 sm:$0xf0]  }
 0x203   :  { %1299 = vst [vmem:[#allocation0 + $0x5e0] sm:$0x3] %v3649_v24  ;;  %v3459_v24 = vld [vmem:[%s6329_s0 + $0x2f4] sm:$0x3] }
 0x204   :  { %1303 = vst [vmem:[#allocation0 + $0x5d8] sm:$0x3] %v3650_v25  ;;  %v2599_v8 = vld [vmem:[#allocation0 + $0xf40] ss:$8 sm:$0xf0]  }
 0x205   :  { %1307 = vst [vmem:[#allocation0 + $0x5d0] sm:$0x3] %v3651_v26  ;;  %v3460_v26 = vld [vmem:[%s6329_s0 + $0x2f2] sm:$0x3] }
 0x206   :  { %v3294_v33 = vld [vmem:[#allocation0 + $0xdc1] ss:$8 sm:$0xf]   ;;  %1311 = vst [vmem:[#allocation0 + $0x5c8] sm:$0x3] %v3652_v27 }
 0x207   :  { %v3298_v36 = vsel %vm2052_vm0, %v3296_v30, %v3294_v33  ;;  %1315 = vst [vmem:[#allocation0 + $0x5c0] sm:$0x3] %v3653_v28  ;;  %v2381_v27 = vld [vmem:[#allocation0 + $0x940] ss:$8 sm:$0xf]  }
 0x208   :  { %3299 = vrot.lane.b32.xlu1 %v3298_v36, %s3964_s15  ;;  %7 = vst [vmem:[#allocation0 + $0xff8] sm:$0x3] %v3326_v29  ;;  %v3461_v28 = vld [vmem:[%s6329_s0 + $0x2f0] sm:$0x3]  ;;  %v5926_v36 = vpop.permute.xlu1 %2969  }
 0x209   :  { %11 = vst [vmem:[#allocation0 + $0xff0] sm:$0x3] %v3327_v31  ;;  %v2383_v29 = vld [vmem:[#allocation0 + $0x940] ss:$8 sm:$0xf0]  }
 0x20a   :  { %15 = vst [vmem:[#allocation0 + $0xfe8] sm:$0x3] %v3328_v32  ;;  %v3208_v47 = vld [vmem:[#allocation0 + $0x5c1] ss:$8 sm:$0xf0]   ;;  %v2385_v32 = vsel %vm2052_vm0, %v2383_v29, %v2381_v27 }
 0x20b   :  { %19 = vst [vmem:[#allocation0 + $0xfe0] sm:$0x3] %v3329_v37  ;;  %v2417_v30 = vld [vmem:[#allocation0 + $0xa40] ss:$8 sm:$0xf]  }
 0x20c   :  { %23 = vst [vmem:[#allocation0 + $0xfd8] sm:$0x3] %v3330_v38  ;;  %v2419_v31 = vld [vmem:[#allocation0 + $0xa40] ss:$8 sm:$0xf0]   ;;  %v5929_v38 = vpop.permute.xlu0 %2991  }
 0x20d   :  { %27 = vst [vmem:[#allocation0 + $0xfd0] sm:$0x3] %v3331_v40  ;;  %v2453_v33 = vld [vmem:[#allocation0 + $0xb40] ss:$8 sm:$0xf]   ;;  %v2421_v37 = vsel %vm2052_vm0, %v2419_v31, %v2417_v30 }
 0x20e   :  { %v3206_v51 = vld [vmem:[#allocation0 + $0x5c1] ss:$8 sm:$0xf]   ;;  %31 = vst [vmem:[#allocation0 + $0xfc8] sm:$0x3] %v3332_v42 }
 0x20f   :  { %v3210_v52 = vsel %vm2052_vm0, %v3208_v47, %v3206_v51  ;;  %35 = vst [vmem:[#allocation0 + $0xfc0] sm:$0x3] %v3333_v44  ;;  %v3358_v40 = vld [vmem:[%s6329_s0 + $0x3be] sm:$0x3]  ;;  %v3361_v44 = vld [vmem:[%s6329_s0 + $0x3b8] sm:$0x3] }
 0x210   :  { %3211 = vrot.lane.b32.xlu2 %v3210_v52, %s3964_s15  ;;  %3849 = vst.msk [vmem:[%s6330_s1 + $0x68] sm:$0xff] %vm2054_vm1, %v2169_v49   ;;  %v3363_v47 = vld [vmem:[%s6329_s0 + $0x3b4] sm:$0x3]  ;;  %v5979_v50 = vpop.permute.xlu1 %3002   ;;  %v3364_v52 = vld [vmem:[%s6329_s0 + $0x3b2] sm:$0x3] }
 0x211   :  { %3918 = vst.msk [vmem:[%s6330_s1 + $0x68] sm:$0xff] %vm2631_vm2, %v5721_v13   ;;  %v2349_v13 = vsel %vm2052_vm0, %v2347_v11, %v2345_v10  ;;  %v2174_v10 = vld [vmem:[#allocation0 + $0x380] ss:$8 sm:$0xf]  }
 0x212   :  { %3853 = vst.msk [vmem:[%s6330_s1 + $0x88] sm:$0xff] %vm2054_vm1, %v2205_v53   ;;  %v3318_v57 = vld [vmem:[#allocation0 + $0xfc1] ss:$8 sm:$0xf0]  }
 0x213   :  { %3919 = vst.msk [vmem:[%s6330_s1 + $0x88] sm:$0xff] %vm2631_vm2, %v5723_v14   ;;  %v3454_v14 = vld [vmem:[%s6329_s0 + $0x2fe] sm:$0x3]  ;;  %v2491_v53 = vld [vmem:[#allocation0 + $0xc40] ss:$8 sm:$0xf0]  }
 0x214   :  { %3857 = vst.msk [vmem:[%s6330_s1 + $0xa8] sm:$0xff] %vm2054_vm1, %v2241_v54   ;;  %v5985_v54 = vpop.permute.xlu0 %3024   ;;  %v2318_v27 = vld [vmem:[#allocation0 + $0x780] ss:$8 sm:$0xf]  }
 0x215   :  { %3920 = vst.msk [vmem:[%s6330_s1 + $0xa8] sm:$0xff] %vm2631_vm2, %v5729_v17   ;;  %v3456_v17 = vld [vmem:[%s6329_s0 + $0x2fa] sm:$0x3]  ;;  %v2320_v29 = vld [vmem:[#allocation0 + $0x780] ss:$8 sm:$0xf0]  }
 0x216   :  { %v3316_v0 = vld [vmem:[#allocation0 + $0xfc1] ss:$8 sm:$0xf]   ;;  %903 = vst [vmem:[#allocation0 + $0x8f8] sm:$0x3] %v3550_v55 }
 0x217   :  { %v3320_v2 = vsel %vm2052_vm0, %v3318_v57, %v3316_v0  ;;  %907 = vst [vmem:[#allocation0 + $0x8f0] sm:$0x3] %v3551_v56  ;;  %v3365_v55 = vld [vmem:[%s6329_s0 + $0x3b0] sm:$0x3] }
 0x218   :  { %3321 = vrot.lane.b32.xlu0 %v3320_v2, %s3964_s15  ;;  %911 = vst [vmem:[#allocation0 + $0x8e8] sm:$0x3] %v3552_v58  ;;  %v2525_v56 = vld [vmem:[#allocation0 + $0xd40] ss:$8 sm:$0xf]   ;;  %v5997_v2 = vpop.permute.xlu1 %3035  }
 0x219   :  { %915 = vst [vmem:[#allocation0 + $0x8e0] sm:$0x3] %v3553_v61  ;;  %v2527_v57 = vld [vmem:[#allocation0 + $0xd40] ss:$8 sm:$0xf0]  }
 0x21a   :  { %919 = vst [vmem:[#allocation0 + $0x8d8] sm:$0x3] %v3554_v62  ;;  %v2561_v58 = vld [vmem:[#allocation0 + $0xe40] ss:$8 sm:$0xf]   ;;  %v2529_v62 = vsel %vm2052_vm0, %v2527_v57, %v2525_v56 }
 0x21b   :  { %923 = vst [vmem:[#allocation0 + $0x8d0] sm:$0x3] %v3555_v1  ;;  %v2066_v61 = vld [vmem:[#allocation0 + $0x80] ss:$8 sm:$0xf]  }
 0x21c   :  { %927 = vst [vmem:[#allocation0 + $0x8c8] sm:$0x3] %v3556_v3  ;;  %v2102_v0 = vld [vmem:[#allocation0 + $0x180] ss:$8 sm:$0xf]  }
 0x21d   :  { %931 = vst [vmem:[#allocation0 + $0x8c0] sm:$0x3] %v3557_v5  ;;  %v3058_v5 = vpop.permute.xlu0 %3057   ;;  %v2106_v11 = vsel %vm2052_vm0, %v2104_v4, %v2102_v0  ;;  %v2246_v30 = vld [vmem:[#allocation0 + $0x580] ss:$8 sm:$0xf]  }
 0x21e   :  { %3861 = vst.msk [vmem:[%s6330_s1 + $0xc8] sm:$0xff] %vm2054_vm1, %v2277_v9   ;;  %v2464_v56 = vld [vmem:[#allocation0 + $0xb80] ss:$8 sm:$0xf0]  }
 0x21f   :  { %3921 = vst.msk [vmem:[%s6330_s1 + $0xc8] sm:$0xff] %vm2631_vm2, %v5774_v34   ;;  %v2455_v34 = vld [vmem:[#allocation0 + $0xb40] ss:$8 sm:$0xf0]  }
 0x220   :  { %3865 = vst.msk [vmem:[%s6330_s1 + $0xe8] sm:$0xff] %vm2054_vm1, %v2313_v12   ;;  %v3241_v16 = vld [vmem:[#allocation0 + $0x8c1] ss:$8 sm:$0xf0]  }
 0x221   :  { %3922 = vst.msk [vmem:[%s6330_s1 + $0xe8] sm:$0xff] %vm2631_vm2, %v5776_v35   ;;  %v5924_v35 = vpop.permute.xlu2 %2980   ;;  %v2176_v12 = vld [vmem:[#allocation0 + $0x380] ss:$8 sm:$0xf0]  }
 0x222   :  { %3869 = vst.msk [vmem:[%s6330_s1 + $0x108] sm:$0xff] %vm2054_vm1, %v2349_v13   ;;  %v2075_v57 = vld [vmem:[#allocation0 + $0xc0] ss:$8 sm:$0xf]  }
 0x223   :  { %3923 = vst.msk [vmem:[%s6330_s1 + $0x108] sm:$0xff] %vm2631_vm2, %v5785_v39   ;;  %v2457_v39 = vsel %vm2052_vm0, %v2455_v34, %v2453_v33  ;;  %v2390_v33 = vld [vmem:[#allocation0 + $0x980] ss:$8 sm:$0xf]  }
 0x224   :  { %v3239_v23 = vld [vmem:[#allocation0 + $0x8c1] ss:$8 sm:$0xf]   ;;  %519 = vst [vmem:[#allocation0 + $0xbf8] sm:$0x3] %v3454_v14 }
 0x225   :  { %v3243_v25 = vsel %vm2052_vm0, %v3241_v16, %v3239_v23  ;;  %523 = vst [vmem:[#allocation0 + $0xbf0] sm:$0x3] %v3455_v15  ;;  %v2210_v14 = vld [vmem:[#allocation0 + $0x480] ss:$8 sm:$0xf]   ;;  %v2601_v16 = vsel %vm2052_vm0, %v2599_v8, %v2597_v6  ;;  %v3091_v23 = vpop.permute.xlu0 %3090  }
 0x226   :  { %3244 = vrot.lane.b32.xlu2 %v3243_v25, %s3964_s15  ;;  %527 = vst [vmem:[#allocation0 + $0xbe8] sm:$0x3] %v3456_v17  ;;  %v2212_v17 = vld [vmem:[#allocation0 + $0x480] ss:$8 sm:$0xf0]  }
 0x227   :  { %531 = vst [vmem:[#allocation0 + $0xbe0] sm:$0x3] %v3457_v20  ;;  %v3069_v20 = vpop.permute.xlu1 %3068   ;;  %v2214_v25 = vsel %vm2052_vm0, %v2212_v17, %v2210_v14  ;;  %v2111_v8 = vld [vmem:[#allocation0 + $0x1c0] ss:$8 sm:$0xf]  }
 0x228   :  { %535 = vst [vmem:[#allocation0 + $0xbd8] sm:$0x3] %v3458_v21  ;;  %v2178_v21 = vsel %vm2052_vm0, %v2176_v12, %v2174_v10  ;;  %v2113_v10 = vld [vmem:[#allocation0 + $0x1c0] ss:$8 sm:$0xf0]  }
 0x229   :  { %539 = vst [vmem:[#allocation0 + $0xbd0] sm:$0x3] %v3459_v24  ;;  %v5977_v49 = vpop.permute.xlu2 %3013   ;;  %v2282_v24 = vld [vmem:[#allocation0 + $0x680] ss:$8 sm:$0xf]  }
 0x22a   :  { %543 = vst [vmem:[#allocation0 + $0xbc8] sm:$0x3] %v3460_v26  ;;  %v2284_v26 = vld [vmem:[#allocation0 + $0x680] ss:$8 sm:$0xf0]  }
 0x22b   :  { %547 = vst [vmem:[#allocation0 + $0xbc0] sm:$0x3] %v3461_v28  ;;  %v2286_v31 = vsel %vm2052_vm0, %v2284_v26, %v2282_v24  ;;  %v2291_v14 = vld [vmem:[#allocation0 + $0x6c0] ss:$8 sm:$0xf]  }
 0x22c   :  { %3873 = vst.msk [vmem:[%s6330_s1 + $0x128] sm:$0xff] %vm2054_vm1, %v2385_v32   ;;  %v2248_v32 = vld [vmem:[#allocation0 + $0x580] ss:$8 sm:$0xf0]  }
 0x22d   :  { %3924 = vst.msk [vmem:[%s6330_s1 + $0x128] sm:$0xff] %vm2631_vm2, %v5833_v59   ;;  %v2493_v59 = vsel %vm2052_vm0, %v2491_v53, %v2489_v48  ;;  %v2534_v48 = vld [vmem:[#allocation0 + $0xd80] ss:$8 sm:$0xf]  }
 0x22e   :  { %3877 = vst.msk [vmem:[%s6330_s1 + $0x148] sm:$0xff] %vm2054_vm1, %v2421_v37   ;;  %v3274_v42 = vld [vmem:[#allocation0 + $0xbc1] ss:$8 sm:$0xf0]  }
 0x22f   :  { %3925 = vst.msk [vmem:[%s6330_s1 + $0x148] sm:$0xff] %vm2631_vm2, %v5835_v60   ;;  %v2563_v60 = vld [vmem:[#allocation0 + $0xe40] ss:$8 sm:$0xf0]  }
 0x230   :  { %3881 = vst.msk [vmem:[%s6330_s1 + $0x168] sm:$0xff] %vm2054_vm1, %v2457_v39   ;;  %v2565_v3 = vsel %vm2052_vm0, %v2563_v60, %v2561_v58  ;;  %v2392_v37 = vld [vmem:[#allocation0 + $0x980] ss:$8 sm:$0xf0]  }
 0x231   :  { %3926 = vst.msk [vmem:[%s6330_s1 + $0x168] sm:$0xff] %vm2631_vm2, %v5848_v63   ;;  %v2068_v63 = vld [vmem:[#allocation0 + $0x80] ss:$8 sm:$0xf0]   ;;  %v3047_v1 = vpop.permute.xlu2 %3046  }
 0x232   :  { %v3272_v46 = vld [vmem:[#allocation0 + $0xbc1] ss:$8 sm:$0xf]   ;;  %135 = vst [vmem:[#allocation0 + $0xef8] sm:$0x3] %v3358_v40  ;;  %v2070_v7 = vsel %vm2052_vm0, %v2068_v63, %v2066_v61  ;;  %v2250_v40 = vsel %vm2052_vm0, %v2248_v32, %v2246_v30 }
 0x233   :  { %v3276_v51 = vsel %vm2052_vm0, %v3274_v42, %v3272_v46  ;;  %139 = vst [vmem:[#allocation0 + $0xef0] sm:$0x3] %v3359_v41  ;;  %v2426_v39 = vld [vmem:[#allocation0 + $0xa80] ss:$8 sm:$0xf]  }
 0x234   :  { %3277 = vrot.lane.b32.xlu2 %v3276_v51, %s3964_s15  ;;  %143 = vst [vmem:[#allocation0 + $0xee8] sm:$0x3] %v3360_v43  ;;  %v2428_v41 = vld [vmem:[#allocation0 + $0xa80] ss:$8 sm:$0xf0]   ;;  %v2394_v43 = vsel %vm2052_vm0, %v2392_v37, %v2390_v33 }
 0x235   :  { %147 = vst [vmem:[#allocation0 + $0xee0] sm:$0x3] %v3361_v44  ;;  %v2354_v42 = vld [vmem:[#allocation0 + $0x880] ss:$8 sm:$0xf]   ;;  %v2430_v46 = vsel %vm2052_vm0, %v2428_v41, %v2426_v39 }
 0x236   :  { %151 = vst [vmem:[#allocation0 + $0xed8] sm:$0x3] %v3362_v45  ;;  %v2356_v44 = vld [vmem:[#allocation0 + $0x880] ss:$8 sm:$0xf0]  }
 0x237   :  { %155 = vst [vmem:[#allocation0 + $0xed0] sm:$0x3] %v3363_v47  ;;  %v2498_v45 = vld [vmem:[#allocation0 + $0xc80] ss:$8 sm:$0xf]   ;;  %v2358_v51 = vsel %vm2052_vm0, %v2356_v44, %v2354_v42 }
 0x238   :  { %159 = vst [vmem:[#allocation0 + $0xec8] sm:$0x3] %v3364_v52  ;;  %v2500_v47 = vld [vmem:[#allocation0 + $0xc80] ss:$8 sm:$0xf0]  }
 0x239   :  { %163 = vst [vmem:[#allocation0 + $0xec0] sm:$0x3] %v3365_v55  ;;  %v2536_v52 = vld [vmem:[#allocation0 + $0xd80] ss:$8 sm:$0xf0]   ;;  %v2502_v55 = vsel %vm2052_vm0, %v2500_v47, %v2498_v45 }
 0x23a   :  { %3885 = vst.msk [vmem:[%s6330_s1 + $0x188] sm:$0xff] %vm2054_vm1, %v2493_v59   ;;  %v2538_v58 = vsel %vm2052_vm0, %v2536_v52, %v2534_v48  ;;  %v2077_v59 = vld [vmem:[#allocation0 + $0xc0] ss:$8 sm:$0xf0]  }
 0x23b   :  { %3927 = vst.msk [vmem:[%s6330_s1 + $0x188] sm:$0xff] %vm2631_vm2, %v5895_v18   ;;  %v2138_v18 = vld [vmem:[#allocation0 + $0x280] ss:$8 sm:$0xf]  }
 0x23c   :  { %3889 = vst.msk [vmem:[%s6330_s1 + $0x1a8] sm:$0xff] %vm2054_vm1, %v2529_v62   ;;  %v3307_v9 = vld [vmem:[#allocation0 + $0xec1] ss:$8 sm:$0xf0]  }
 0x23d   :  { %3928 = vst.msk [vmem:[%s6330_s1 + $0x1a8] sm:$0xff] %vm2631_vm2, %v5897_v19   ;;  %v3080_v19 = vpop.permute.xlu2 %3079   ;;  %v2570_v60 = vld [vmem:[#allocation0 + $0xe80] ss:$8 sm:$0xf]  }
 0x23e   :  { %3893 = vst.msk [vmem:[%s6330_s1 + $0x1c8] sm:$0xff] %vm2054_vm1, %v2565_v3   ;;  %v2572_v62 = vld [vmem:[#allocation0 + $0xe80] ss:$8 sm:$0xf0]  }
 0x23f   :  { %3929 = vst.msk [vmem:[%s6330_s1 + $0x1c8] sm:$0xff] %vm2631_vm2, %v5910_v22   ;;  %v2140_v22 = vld [vmem:[#allocation0 + $0x280] ss:$8 sm:$0xf0]   ;;  %v2574_v6 = vsel %vm2052_vm0, %v2572_v62, %v2570_v60 }
 0x240   :  { %v3305_v13 = vld [vmem:[#allocation0 + $0xec1] ss:$8 sm:$0xf]   ;;  %3838 = vst.msk [vmem:[%s6330_s1 + $0x10] sm:$0xff] %vm2054_vm1, %v2070_v7   ;;  %v2142_v28 = vsel %vm2052_vm0, %v2140_v22, %v2138_v18 }
 0x241   :  { %v3309_v15 = vsel %vm2052_vm0, %v3307_v9, %v3305_v13  ;;  %3931 = vst.msk [vmem:[%s6330_s1 + $0x10] sm:$0xff] %vm2631_vm2, %v5924_v35   ;;  %v3102_v35 = vpop.permute.xlu1 %3101   ;;  %v2606_v63 = vld [vmem:[#allocation0 + $0xf80] ss:$8 sm:$0xf]  }
 0x242   :  { %3310 = vrot.lane.b32.xlu2 %v3309_v15, %s3964_s15  ;;  %3842 = vst.msk [vmem:[%s6330_s1 + $0x30] sm:$0xff] %vm2054_vm1, %v2106_v11   ;;  %v2608_v3 = vld [vmem:[#allocation0 + $0xf80] ss:$8 sm:$0xf0]  }
 0x243   :  { %3932 = vst.msk [vmem:[%s6330_s1 + $0x30] sm:$0xff] %vm2631_vm2, %v5929_v38   ;;  %v3124_v38 = vpop.permute.xlu0 %3123   ;;  %v2185_v7 = vld [vmem:[#allocation0 + $0x3c0] ss:$8 sm:$0xf0]   ;;  %v2610_v9 = vsel %vm2052_vm0, %v2608_v3, %v2606_v63 }
 0x244   :  { %3897 = vst.msk [vmem:[%s6330_s1 + $0x1e8] sm:$0xff] %vm2054_vm1, %v2601_v16   ;;  %v2147_v11 = vld [vmem:[#allocation0 + $0x2c0] ss:$8 sm:$0xf]   ;;  %v2115_v16 = vsel %vm2052_vm0, %v2113_v10, %v2111_v8 }
 0x245   :  { %3930 = vst.msk [vmem:[%s6330_s1 + $0x1e8] sm:$0xff] %vm2631_vm2, %v5926_v36   ;;  %v3113_v34 = vpop.permute.xlu2 %3112   ;;  %v2322_v36 = vsel %vm2052_vm0, %v2320_v29, %v2318_v27  ;;  %v2149_v13 = vld [vmem:[#allocation0 + $0x2c0] ss:$8 sm:$0xf0]  }
 0x246   :  { %3850 = vst.msk [vmem:[%s6330_s1 + $0x70] sm:$0xff] %vm2054_vm1, %v2178_v21   ;;  %v2293_v17 = vld [vmem:[#allocation0 + $0x6c0] ss:$8 sm:$0xf0]  }
 0x247   :  { %3934 = vst.msk [vmem:[%s6330_s1 + $0x70] sm:$0xff] %vm2631_vm2, %v5977_v49   ;;  %v2221_v21 = vld [vmem:[#allocation0 + $0x4c0] ss:$8 sm:$0xf0]  }
 0x248   :  { %3854 = vst.msk [vmem:[%s6330_s1 + $0x90] sm:$0xff] %vm2054_vm1, %v2214_v25   ;;  %v2255_v22 = vld [vmem:[#allocation0 + $0x5c0] ss:$8 sm:$0xf]  }
 0x249   :  { %3935 = vst.msk [vmem:[%s6330_s1 + $0x90] sm:$0xff] %vm2631_vm2, %v5985_v54   ;;  %v3135_v49 = vpop.permute.xlu1 %3134   ;;  %v2462_v54 = vld [vmem:[#allocation0 + $0xb80] ss:$8 sm:$0xf]  }
 0x24a   :  { %3846 = vst.msk [vmem:[%s6330_s1 + $0x50] sm:$0xff] %vm2054_vm1, %v2142_v28   ;;  %v2466_v61 = vsel %vm2052_vm0, %v2464_v56, %v2462_v54  ;;  %v2257_v24 = vld [vmem:[#allocation0 + $0x5c0] ss:$8 sm:$0xf0]  }
 0x24b   :  { %3933 = vst.msk [vmem:[%s6330_s1 + $0x50] sm:$0xff] %vm2631_vm2, %v5979_v50   ;;  %v3157_v53 = vpop.permute.xlu0 %3156   ;;  %v2399_v25 = vld [vmem:[#allocation0 + $0x9c0] ss:$8 sm:$0xf]  }
 0x24c   :  { %3862 = vst.msk [vmem:[%s6330_s1 + $0xd0] sm:$0xff] %vm2054_vm1, %v2286_v31   ;;  %v2401_v27 = vld [vmem:[#allocation0 + $0x9c0] ss:$8 sm:$0xf0]   ;;  %v2259_v31 = vsel %vm2052_vm0, %v2257_v24, %v2255_v22 }
 0x24d   :  { %3937 = vst.msk [vmem:[%s6330_s1 + $0xd0] sm:$0xff] %vm2631_vm2, %v3047_v1   ;;  %v3146_v50 = vpop.permute.xlu2 %3145   ;;  %v2327_v29 = vld [vmem:[#allocation0 + $0x7c0] ss:$8 sm:$0xf]  }
 0x24e   :  { %3866 = vst.msk [vmem:[%s6330_s1 + $0xf0] sm:$0xff] %vm2054_vm1, %v2322_v36   ;;  %v2329_v33 = vld [vmem:[#allocation0 + $0x7c0] ss:$8 sm:$0xf0]   ;;  %v2403_v36 = vsel %vm2052_vm0, %v2401_v27, %v2399_v25 }
 0x24f   :  { %3938 = vst.msk [vmem:[%s6330_s1 + $0xf0] sm:$0xff] %vm2631_vm2, %v3058_v5   ;;  %v2183_v5 = vld [vmem:[#allocation0 + $0x3c0] ss:$8 sm:$0xf]   ;;  %v2331_v39 = vsel %vm2052_vm0, %v2329_v33, %v2327_v29 }
 0x250   :  { %3858 = vst.msk [vmem:[%s6330_s1 + $0xb0] sm:$0xff] %vm2054_vm1, %v2250_v40   ;;  %v2187_v12 = vsel %vm2052_vm0, %v2185_v7, %v2183_v5  ;;  %v2507_v37 = vld [vmem:[#allocation0 + $0xcc0] ss:$8 sm:$0xf]  }
 0x251   :  { %3936 = vst.msk [vmem:[%s6330_s1 + $0xb0] sm:$0xff] %vm2631_vm2, %v5997_v2   ;;  %v3168_v0 = vpop.permute.xlu1 %3167   ;;  %v2079_v2 = vsel %vm2052_vm0, %v2077_v59, %v2075_v57  ;;  %v2435_v40 = vld [vmem:[#allocation0 + $0xac0] ss:$8 sm:$0xf]  }
 0x252   :  { %3874 = vst.msk [vmem:[%s6330_s1 + $0x130] sm:$0xff] %vm2054_vm1, %v2394_v43   ;;  %v2437_v41 = vld [vmem:[#allocation0 + $0xac0] ss:$8 sm:$0xf0]  }
 0x253   :  { %3940 = vst.msk [vmem:[%s6330_s1 + $0x130] sm:$0xff] %vm2631_vm2, %v3080_v19   ;;  %v3190_v4 = vpop.permute.xlu0 %3189   ;;  %v2219_v19 = vld [vmem:[#allocation0 + $0x4c0] ss:$8 sm:$0xf]  }
 0x254   :  { %3878 = vst.msk [vmem:[%s6330_s1 + $0x150] sm:$0xff] %vm2054_vm1, %v2430_v46   ;;  %v2223_v26 = vsel %vm2052_vm0, %v2221_v21, %v2219_v19  ;;  %v2471_v43 = vld [vmem:[#allocation0 + $0xbc0] ss:$8 sm:$0xf]  }
 0x255   :  { %3941 = vst.msk [vmem:[%s6330_s1 + $0x150] sm:$0xff] %vm2631_vm2, %v3091_v23   ;;  %v3179_v1 = vpop.permute.xlu2 %3178   ;;  %v2295_v23 = vsel %vm2052_vm0, %v2293_v17, %v2291_v14  ;;  %v2473_v46 = vld [vmem:[#allocation0 + $0xbc0] ss:$8 sm:$0xf0]  }
 0x256   :  { %3870 = vst.msk [vmem:[%s6330_s1 + $0x110] sm:$0xff] %vm2054_vm1, %v2358_v51   ;;  %v2543_v48 = vld [vmem:[#allocation0 + $0xdc0] ss:$8 sm:$0xf]   ;;  %v2475_v52 = vsel %vm2052_vm0, %v2473_v46, %v2471_v43 }
 0x257   :  { %3939 = vst.msk [vmem:[%s6330_s1 + $0x110] sm:$0xff] %vm2631_vm2, %v3069_v20   ;;  %v2151_v20 = vsel %vm2052_vm0, %v2149_v13, %v2147_v11  ;;  %v2579_v51 = vld [vmem:[#allocation0 + $0xec0] ss:$8 sm:$0xf]  }
 0x258   :  { %3886 = vst.msk [vmem:[%s6330_s1 + $0x190] sm:$0xff] %vm2054_vm1, %v2502_v55   ;;  %v2615_v57 = vld [vmem:[#allocation0 + $0xfc0] ss:$8 sm:$0xf]  }
 0x259   :  { %3943 = vst.msk [vmem:[%s6330_s1 + $0x190] sm:$0xff] %vm2631_vm2, %v3113_v34   ;;  %v3201_v15 = vpop.permute.xlu1 %3200   ;;  %v2363_v34 = vld [vmem:[#allocation0 + $0x8c0] ss:$8 sm:$0xf]  }
 0x25a   :  { %3890 = vst.msk [vmem:[%s6330_s1 + $0x1b0] sm:$0xff] %vm2054_vm1, %v2538_v58   ;;  %v2617_v58 = vld [vmem:[#allocation0 + $0xfc0] ss:$8 sm:$0xf0]  }
 0x25b   :  { %3944 = vst.msk [vmem:[%s6330_s1 + $0x1b0] sm:$0xff] %vm2631_vm2, %v3124_v38   ;;  %v3223_v18 = vpop.permute.xlu0 %3222   ;;  %v2509_v38 = vld [vmem:[#allocation0 + $0xcc0] ss:$8 sm:$0xf0]   ;;  %v2619_v59 = vsel %vm2052_vm0, %v2617_v58, %v2615_v57 }
 0x25c   :  { %3882 = vst.msk [vmem:[%s6330_s1 + $0x170] sm:$0xff] %vm2054_vm1, %v2466_v61   ;;  %v2511_v44 = vsel %vm2052_vm0, %v2509_v38, %v2507_v37 }
 0x25d   :  { %3942 = vst.msk [vmem:[%s6330_s1 + $0x170] sm:$0xff] %vm2631_vm2, %v3102_v35   ;;  %v2365_v35 = vld [vmem:[#allocation0 + $0x8c0] ss:$8 sm:$0xf0]  }
 0x25e   :  { %3839 = vst.msk [vmem:[%s6330_s1 + $0x18] sm:$0xff] %vm2054_vm1, %v2079_v2   ;;  %v2367_v42 = vsel %vm2052_vm0, %v2365_v35, %v2363_v34 }
 0x25f   :  { %3947 = vst.msk [vmem:[%s6330_s1 + $0x18] sm:$0xff] %vm2631_vm2, %v3157_v53   ;;  %v2581_v53 = vld [vmem:[#allocation0 + $0xec0] ss:$8 sm:$0xf0]  }
 0x260   :  { %3894 = vst.msk [vmem:[%s6330_s1 + $0x1d0] sm:$0xff] %vm2054_vm1, %v2574_v6   ;;  %v2583_v55 = vsel %vm2052_vm0, %v2581_v53, %v2579_v51 }
 0x261   :  { %3945 = vst.msk [vmem:[%s6330_s1 + $0x1d0] sm:$0xff] %vm2631_vm2, %v3135_v49   ;;  %v3234_v30 = vpop.permute.xlu1 %3233   ;;  %v2439_v49 = vsel %vm2052_vm0, %v2437_v41, %v2435_v40 }
 0x262   :  { %3898 = vst.msk [vmem:[%s6330_s1 + $0x1f0] sm:$0xff] %vm2054_vm1, %v2610_v9  }
 0x263   :  { %3946 = vst.msk [vmem:[%s6330_s1 + $0x1f0] sm:$0xff] %vm2631_vm2, %v3146_v50   ;;  %v3256_v32 = vpop.permute.xlu0 %3255   ;;  %v2545_v50 = vld [vmem:[#allocation0 + $0xdc0] ss:$8 sm:$0xf0]  }
 0x264   :  { %3851 = vst.msk [vmem:[%s6330_s1 + $0x78] sm:$0xff] %vm2054_vm1, %v2187_v12   ;;  %v2547_v54 = vsel %vm2052_vm0, %v2545_v50, %v2543_v48 }
 0x265   :  { %3950 = vst.msk [vmem:[%s6330_s1 + $0x78] sm:$0xff] %vm2631_vm2, %v3190_v4  }
 0x266   :  { %3843 = vst.msk [vmem:[%s6330_s1 + $0x38] sm:$0xff] %vm2054_vm1, %v2115_v16  }
 0x267   :  { %3948 = vst.msk [vmem:[%s6330_s1 + $0x38] sm:$0xff] %vm2631_vm2, %v3168_v0  }
 0x268   :  { %3847 = vst.msk [vmem:[%s6330_s1 + $0x58] sm:$0xff] %vm2054_vm1, %v2151_v20  }
 0x269   :  { %3949 = vst.msk [vmem:[%s6330_s1 + $0x58] sm:$0xff] %vm2631_vm2, %v3179_v1   ;;  %v3267_v45 = vpop.permute.xlu1 %3266  }
 0x26a   :  { %3863 = vst.msk [vmem:[%s6330_s1 + $0xd8] sm:$0xff] %vm2054_vm1, %v2295_v23   ;;  %v3212_v28 = vpop.permute.xlu2 %3211  }
 0x26b   :  { %3953 = vst.msk [vmem:[%s6330_s1 + $0xd8] sm:$0xff] %vm2631_vm2, %v3223_v18   ;;  %v3289_v47 = vpop.permute.xlu0 %3288  }
 0x26c   :  { %3855 = vst.msk [vmem:[%s6330_s1 + $0x98] sm:$0xff] %vm2054_vm1, %v2223_v26  }
 0x26d   :  { %3951 = vst.msk [vmem:[%s6330_s1 + $0x98] sm:$0xff] %vm2631_vm2, %v3201_v15  }
 0x26e   :  { %3859 = vst.msk [vmem:[%s6330_s1 + $0xb8] sm:$0xff] %vm2054_vm1, %v2259_v31  }
 0x26f   :  { %3952 = vst.msk [vmem:[%s6330_s1 + $0xb8] sm:$0xff] %vm2631_vm2, %v3212_v28  }
 0x270   :  { %3875 = vst.msk [vmem:[%s6330_s1 + $0x138] sm:$0xff] %vm2054_vm1, %v2403_v36  }
 0x271   :  { %3956 = vst.msk [vmem:[%s6330_s1 + $0x138] sm:$0xff] %vm2631_vm2, %v3256_v32  }
 0x272   :  { %3867 = vst.msk [vmem:[%s6330_s1 + $0xf8] sm:$0xff] %vm2054_vm1, %v2331_v39  }
 0x273   :  { %3954 = vst.msk [vmem:[%s6330_s1 + $0xf8] sm:$0xff] %vm2631_vm2, %v3234_v30  }
 0x274   :  { %3871 = vst.msk [vmem:[%s6330_s1 + $0x118] sm:$0xff] %vm2054_vm1, %v2367_v42  }
 0x275   :  { %3887 = vst.msk [vmem:[%s6330_s1 + $0x198] sm:$0xff] %vm2054_vm1, %v2511_v44  }
 0x276   :  { %3959 = vst.msk [vmem:[%s6330_s1 + $0x198] sm:$0xff] %vm2631_vm2, %v3289_v47  }
 0x277   :  { %3879 = vst.msk [vmem:[%s6330_s1 + $0x158] sm:$0xff] %vm2054_vm1, %v2439_v49  }
 0x278   :  { %3957 = vst.msk [vmem:[%s6330_s1 + $0x158] sm:$0xff] %vm2631_vm2, %v3267_v45  }
 0x279   :  { %3883 = vst.msk [vmem:[%s6330_s1 + $0x178] sm:$0xff] %vm2054_vm1, %v2475_v52  }
 0x27a   :  { %3891 = vst.msk [vmem:[%s6330_s1 + $0x1b8] sm:$0xff] %vm2054_vm1, %v2547_v54   ;;  %v3300_v56 = vpop.permute.xlu1 %3299  }
 0x27b   :  { %3960 = vst.msk [vmem:[%s6330_s1 + $0x1b8] sm:$0xff] %vm2631_vm2, %v3300_v56  }
 0x27c   :  { %3895 = vst.msk [vmem:[%s6330_s1 + $0x1d8] sm:$0xff] %vm2054_vm1, %v2583_v55  }
 0x27d   :  { %3899 = vst.msk [vmem:[%s6330_s1 + $0x1f8] sm:$0xff] %vm2054_vm1, %v2619_v59  }
 0x280   :  { %v3245_v60 = vpop.permute.xlu2 %3244  }
 0x281   :  { %3955 = vst.msk [vmem:[%s6330_s1 + $0x118] sm:$0xff] %vm2631_vm2, %v3245_v60  }
 0x28a   :  { %v3322_v61 = vpop.permute.xlu0 %3321  }
 0x28b   :  { %3962 = vst.msk [vmem:[%s6330_s1 + $0x1f8] sm:$0xff] %vm2631_vm2, %v3322_v61  }
 0x28e   :  { %v3278_v62 = vpop.permute.xlu2 %3277  }
 0x28f   :  { %3958 = vst.msk [vmem:[%s6330_s1 + $0x178] sm:$0xff] %vm2631_vm2, %v3278_v62  }
 0x29c   :  { %v3311_v63 = vpop.permute.xlu2 %3310  }
 0x29d   :  { %3961 = vst.msk [vmem:[%s6330_s1 + $0x1d8] sm:$0xff] %vm2631_vm2, %v3311_v63  }

// kernel: discriminator_forward.3
= control target key start
LH: loop header
LB: loop body
LE: loop exit
PB: predicated region body
PF: predicated region fallthrough
CT: control target
= control target key end

     0   :  { %s2061_s0 = inlined_call_operand.vmem [shape: bf16[640,128], index: 0, kind: input, shape index: {}]   ;;  %s2062_s1 = inlined_call_operand.vmem [shape: bf16[16,640], index: 1, kind: input, shape index: {}]   ;;  %s2063_s2 = inlined_call_operand.vmem [shape: f32[16,1], index: 2, kind: input, shape index: {}]   ;;  %s2064_s3 = inlined_call_operand.vmem [shape: f32[16,1], index: 3, kind: input, shape index: {}]   ;;  %s2065_s4 = inlined_call_operand.vmem [shape: f32[16,1], index: 4, kind: input, shape index: {}]   ;;  %s2066_s5 = inlined_call_operand.vmem [shape: f32[16,32,128], index: 5, kind: input, shape index: {}]   ;;  %s2067_s6 = inlined_call_operand.vmem [shape: f32[32,1], index: 6, kind: input, shape index: {}]   ;;  %s2068_s7 = inlined_call_operand.vmem [shape: f32[32,1], index: 7, kind: input, shape index: {}]   ;;  %s2069_s8 = inlined_call_operand.vmem [shape: f32[32,1], index: 8, kind: input, shape index: {}]   ;;  %s2070_s9 = inlined_call_operand.vmem [shape: f32[32,1], index: 9, kind: input, shape index: {}]   ;;  %s2071_s10 = inlined_call_operand.<no memory space> [shape: f32[1,1], index: 10, kind: input, shape index: {}]   ;;  %s2072_s11 = inlined_call_operand.hbm [shape: f32[1,2], index: 11, kind: output, shape index: {}]  }
   0x1   :  { %v16_v0 = vstv %s2071_s10 }
   0x2   :  { %17 = vst [vmem:[#allocation2] sm:$0x1] %v16_v0 }
   0x3   :  { %v1356_v1 = vld [vmem:[%s2061_s0 + $0x38] sm:$0xff]  ;;  %v1440_v5 = vmov 0   ;;  %v1355_v6 = vld [vmem:[%s2061_s0 + $0x30] sm:$0xff]  ;;  %v1354_v10 = vld [vmem:[%s2061_s0 + $0x28] sm:$0xff] }
   0x4   :  { %v1372_v2 = vld [vmem:[%s2061_s0 + $0xb8] sm:$0xff]  ;;  %1393 = vset.pattern.permute.xlu0 %v1440_v5  ;;  %1394 = vset.pattern.permute.xlu1 %v1440_v5  ;;  %v1371_v7 = vld [vmem:[%s2061_s0 + $0xb0] sm:$0xff]  ;;  %v1370_v11 = vld [vmem:[%s2061_s0 + $0xa8] sm:$0xff] }
   0x5   :  { %v1380_v3 = vld [vmem:[%s2061_s0 + $0xf8] sm:$0xff]  ;;  %405 = vmatpush.bf16.msra.mxu0 %v1356_v1  ;;  %433 = vmatpush.bf16.msra.mxu2 %v1372_v2  ;;  %v1379_v8 = vld [vmem:[%s2061_s0 + $0xf0] sm:$0xff]  ;;  %v127_v12 = vld [vmem:[%s2063_s2] sm:$0xff] }
   0x6   :  { %v1364_v4 = vld [vmem:[%s2061_s0 + $0x78] sm:$0xff]  ;;  %447 = vmatpush.bf16.msra.mxu3 %v1380_v3  ;;  %v1363_v9 = vld [vmem:[%s2061_s0 + $0x70] sm:$0xff]  ;;  %1395 = vset.pattern.permute.xlu2 %v1440_v5  ;;  %v1378_v13 = vld [vmem:[%s2061_s0 + $0xe8] sm:$0xff] }
   0x7   :  { %419 = vmatpush.bf16.msra.mxu1 %v1364_v4  ;;  %v1362_v14 = vld [vmem:[%s2061_s0 + $0x68] sm:$0xff]  ;;  %131 = vperm.xlu0 %1393, %v127_v12   ;;  %v1353_v15 = vld [vmem:[%s2061_s0 + $0x20] sm:$0xff]  ;;  %v1352_v20 = vld [vmem:[%s2061_s0 + $0x18] sm:$0xff] }
   0x8   :  { %v1369_v16 = vld [vmem:[%s2061_s0 + $0xa0] sm:$0xff]  ;;  %v128_v19 = vld [vmem:[%s2063_s2 + $0x8] sm:$0xff]  ;;  %v1368_v21 = vld [vmem:[%s2061_s0 + $0x98] sm:$0xff] }
   0x9   :  { %406 = vmatpush.bf16.msra.mxu0 %v1355_v6  ;;  %434 = vmatpush.bf16.msra.mxu2 %v1371_v7  ;;  %v1377_v17 = vld [vmem:[%s2061_s0 + $0xe0] sm:$0xff]  ;;  %v1376_v22 = vld [vmem:[%s2061_s0 + $0xd8] sm:$0xff] }
   0xa   :  { %448 = vmatpush.bf16.msra.mxu3 %v1379_v8  ;;  %v1361_v18 = vld [vmem:[%s2061_s0 + $0x60] sm:$0xff]  ;;  %v1360_v23 = vld [vmem:[%s2061_s0 + $0x58] sm:$0xff] }
   0xb   :  { %420 = vmatpush.bf16.msra.mxu1 %v1363_v9 }
   0xd   :  { %407 = vmatpush.bf16.msra.mxu0 %v1354_v10  ;;  %435 = vmatpush.bf16.msra.mxu2 %v1370_v11 }
   0xe   :  { %449 = vmatpush.bf16.msra.mxu3 %v1378_v13 }
   0xf   :  { %421 = vmatpush.bf16.msra.mxu1 %v1362_v14  ;;  %136 = vperm.xlu0 %1393, %v128_v19  }
  0x11   :  { %408 = vmatpush.bf16.msra.mxu0 %v1353_v15  ;;  %436 = vmatpush.bf16.msra.mxu2 %v1369_v16 }
  0x12   :  { %450 = vmatpush.bf16.msra.mxu3 %v1377_v17 }
  0x13   :  { %422 = vmatpush.bf16.msra.mxu1 %v1361_v18 }
  0x14   :  { %18 = vsyncpa [#allocation4], 0  ;;  %v1351_v24 = vld [vmem:[%s2061_s0 + $0x10] sm:$0xff]  ;;  %v500_v28 = vld [vmem:[%s2064_s3] sm:$0xff]  ;;  %v475_v2 = vlaneseq  ;;  %v1441_v12 = vmov 0.0   ;;  %vm814_vm12 = vcmask 7168  }
  0x15   :  { %409 = vmatpush.bf16.msra.mxu0 %v1352_v20  ;;  %437 = vmatpush.bf16.msra.mxu2 %v1368_v21  ;;  %v1367_v25 = vld [vmem:[%s2061_s0 + $0x90] sm:$0xff]  ;;  %v1350_v29 = vld [vmem:[%s2061_s0 + $0x8] sm:$0xff]  ;;  %v1349_v33 = vld [vmem:[%s2061_s0] sm:$0xff]  ;;  %vm847_vm13 = vcmask 15360   ;;  %s1092_s26 = sshll.u32 %s2072_s11, 4  ;;  %s1093_s26 = int_to_ptr.hbm [resolvable:$true] %s1092_s26 }
  0x16   :  { %451 = vmatpush.bf16.msra.mxu3 %v1376_v22  ;;  %v1375_v26 = vld [vmem:[%s2061_s0 + $0xd0] sm:$0xff]  ;;  %v1366_v30 = vld [vmem:[%s2061_s0 + $0x88] sm:$0xff]  ;;  %v1388_v34 = vld [vmem:[%s2061_s0 + $0x138] sm:$0xff]  ;;  %v1675_v6 = vand.u32 127, %v475_v2 }
  0x17   :  { %423 = vmatpush.bf16.msra.mxu1 %v1360_v23  ;;  %v1359_v27 = vld [vmem:[%s2061_s0 + $0x50] sm:$0xff]  ;;  %v1374_v31 = vld [vmem:[%s2061_s0 + $0xc8] sm:$0xff]  ;;  %504 = vperm.xlu0 %1393, %v500_v28   ;;  %v1365_v35 = vld [vmem:[%s2061_s0 + $0x80] sm:$0xff] }
  0x18   :  { %v1358_v32 = vld [vmem:[%s2061_s0 + $0x48] sm:$0xff]  ;;  %v1347_v37 = vld [vmem:[%s2062_s1 + $0x18] sm:$0xf0]  ;;  %v1103_v38 = vld [vmem:[%s2062_s1] sm:$0xf]  ;;  %vm477_vm0 = vcmp.lt.s32.totalorder %v1675_v6, 110 }
  0x19   :  { %410 = vmatpush.bf16.msra.mxu0 %v1351_v24  ;;  %438 = vmatpush.bf16.msra.mxu2 %v1367_v25  ;;  %v1111_v36 = vld [vmem:[%s2062_s1 + $0x8] sm:$0xf]  ;;  %v1346_v39 = vld [vmem:[%s2062_s1 + $0x10] sm:$0xf0]  ;;  %v1373_v40 = vld [vmem:[%s2061_s0 + $0xc0] sm:$0xff]  ;;  %v1281_v13 = vsel %vm477_vm0, 1.0, %v1441_v12 }
  0x1a   :  { %452 = vmatpush.bf16.msra.mxu3 %v1375_v26  ;;  %v1345_v41 = vld [vmem:[%s2062_s1 + $0xc] sm:$0xf]  ;;  %v1113_v42 = vld [vmem:[%s2062_s1 + $0x1c] sm:$0xf0]  ;;  %v1344_v44 = vld [vmem:[%s2062_s1 + $0x4] sm:$0xf]  ;;  %v1112_v46 = vor.u32 %v1347_v37, %v1111_v36  ;;  %v1104_v47 = vor.u32 %v1346_v39, %v1103_v38 }
  0x1b   :  { %424 = vmatpush.bf16.msra.mxu1 %v1359_v27  ;;  %v1357_v43 = vld [vmem:[%s2061_s0 + $0x40] sm:$0xff]  ;;  %v1105_v45 = vld [vmem:[%s2062_s1 + $0x14] sm:$0xf0]  ;;  %v539_v48 = vld [vmem:[%s2065_s4 + $0x8] sm:$0xff]  ;;  %v1116_v49 = vor.u32 %v1345_v41, %v1113_v42  ;;  %vm782_vm9 = vcmp.lt.s32.totalorder %v1675_v6, 55  ;;  %vm798_vm10 = vcmp.ge.s32.totalorder %v1675_v6, 55 }
  0x1c   :  { %v1387_v50 = vld [vmem:[%s2061_s0 + $0x130] sm:$0xff]  ;;  %v1108_v51 = vor.u32 %v1344_v44, %v1105_v45  ;;  %v1386_v52 = vld [vmem:[%s2061_s0 + $0x128] sm:$0xff]  ;;  %v1385_v54 = vld [vmem:[%s2061_s0 + $0x120] sm:$0xff] }
  0x1d   :  { %411 = vmatpush.bf16.msra.mxu0 %v1350_v29  ;;  %439 = vmatpush.bf16.msra.mxu2 %v1366_v30  ;;  %v821_v53 = vld [vmem:[%s2067_s6 + $0x10] sm:$0xff]  ;;  %v1384_v55 = vld [vmem:[%s2061_s0 + $0x118] sm:$0xff]  ;;  %v1382_v58 = vld [vmem:[%s2061_s0 + $0x108] sm:$0xff] }
  0x1e   :  { %453 = vmatpush.bf16.msra.mxu3 %v1374_v31  ;;  %v897_v56 = vld [vmem:[%s2068_s7 + $0x10] sm:$0xff]  ;;  %v1381_v59 = vld [vmem:[%s2061_s0 + $0x100] sm:$0xff]  ;;  %v822_v29 = vld [vmem:[%s2067_s6 + $0x18] sm:$0xff] }
  0x1f   :  { %425 = vmatpush.bf16.msra.mxu1 %v1358_v32  ;;  %547 = vperm.xlu0 %1393, %v539_v48   ;;  %v1383_v57 = vld [vmem:[%s2061_s0 + $0x110] sm:$0xff]  ;;  %v1348_v61 = vld [vmem:[%s2062_s1 + $0x20] sm:$0xf0]  ;;  %v896_v30 = vld [vmem:[%s2068_s7 + $0x8] sm:$0xff] }
  0x20   :  { %v1119_v60 = vld [vmem:[%s2062_s1 + $0x10] sm:$0xf]  ;;  %v538_v16 = vld [vmem:[%s2065_s4] sm:$0xff]  ;;  %v501_v42 = vld [vmem:[%s2064_s3 + $0x8] sm:$0xff] }
  0x21   :  { %412 = vmatpush.bf16.msra.mxu0 %v1349_v33  ;;  %440 = vmatpush.bf16.msra.mxu2 %v1365_v35  ;;  %v1120_v62 = vor.u32 %v1348_v61, %v1119_v60  ;;  %v819_v28 = vld [vmem:[%s2067_s6] sm:$0xff]  ;;  %v898_v45 = vld [vmem:[%s2068_s7 + $0x18] sm:$0xff]  ;;  %v559_v2 = vld [vmem:[%s2066_s5 + $0x8] sm:$0xff] }
  0x22   :  { %454 = vmatpush.bf16.msra.mxu3 %v1373_v40  ;;  %v895_v44 = vld [vmem:[%s2068_s7] sm:$0xff]  ;;  %vm1936_vm11 = vmand %vm798_vm10, %vm477_vm0 }
  0x23   :  { %426 = vmatpush.bf16.msra.mxu1 %v1357_v43  ;;  %v820_v43 = vld [vmem:[%s2067_s6 + $0x8] sm:$0xff] }
  0x24   :  { %441 = vmatmul.bf16.vlgmr.msra.gmra.mxu2 %v1112_v46  ;;  %413 = vmatmul.bf16.vlgmr.msra.gmra.mxu0 %v1104_v47 }
  0x25   :  { %461 = vmatpush.bf16.msrb.mxu0 %v1388_v34  ;;  %455 = vmatmul.bf16.vlgmr.msra.gmra.mxu3 %v1116_v49 }
  0x26   :  { %427 = vmatmul.bf16.vlgmr.msra.gmra.mxu1 %v1108_v51 }
  0x27   :  { %835 = vperm.xlu0 %1393, %v821_v53  }
  0x29   :  { %462 = vmatpush.bf16.msrb.mxu0 %v1387_v50 }
  0x2d   :  { %463 = vmatpush.bf16.msrb.mxu0 %v1386_v52 }
  0x2f   :  { %911 = vperm.xlu0 %1393, %v897_v56  }
  0x31   :  { %464 = vmatpush.bf16.msrb.mxu0 %v1385_v54 }
  0x35   :  { %465 = vmatpush.bf16.msrb.mxu0 %v1384_v55 }
  0x39   :  { %466 = vmatpush.bf16.msrb.mxu0 %v1383_v57 }
  0x3d   :  { %467 = vmatpush.bf16.msrb.mxu0 %v1382_v58 }
  0x41   :  { %468 = vmatpush.bf16.msrb.mxu0 %v1381_v59 }
  0x44   :  { %469 = vmatmul.bf16.vlgmr.msrb.gmra.mxu0 %v1120_v62 }
  0x79   :  { %v132_v0 = vpop.permute.xlu0 %131 }
  0x81   :  { %v137_v17 = vpop.permute.xlu0 %136 }
  0x89   :  { %v505_v55 = vpop.permute.xlu0 %504 }
  0xa1   :  { %v414_v63 = vpop.f32.mrf.mxu0 }
  0xa2   :  { %v415_v1 = vadd.f32 %v414_v63, %v132_v0 }
  0xa3   :  { %v428_v3 = vpop.f32.mrf.mxu1 }
  0xa4   :  { %v429_v4 = vadd.f32 %v428_v3, %v415_v1  ;;  %v1283_v3 = vld [vmem:[%s2066_s5 + $0x28] sm:$0xff] }
  0xa7   :  { %v442_v7 = vpop.f32.mrf.mxu2 }
  0xa8   :  { %v443_v8 = vadd.f32 %v442_v7, %v429_v4  ;;  %v456_v9 = vpop.f32.mrf.mxu3  ;;  %v558_v4 = vld [vmem:[%s2066_s5] sm:$0xff] }
  0xa9   :  { %v416_v5 = vpop.f32.mrf.mxu0 }
  0xaa   :  { %v457_v10 = vadd.f32 %v456_v9, %v443_v8  ;;  %v417_v18 = vadd.f32 %v416_v5, %v137_v17  ;;  %v1282_v5 = vld [vmem:[%s2066_s5 + $0x20] sm:$0xff]  ;;  %v560_v8 = vld [vmem:[%s2066_s5 + $0x10] sm:$0xff] }
  0xab   :  { %v430_v19 = vpop.f32.mrf.mxu1  ;;  %v1284_v9 = vld [vmem:[%s2066_s5 + $0x30] sm:$0xff] }
  0xac   :  { %v431_v20 = vadd.f32 %v430_v19, %v417_v18 }
  0xaf   :  { %v444_v21 = vpop.f32.mrf.mxu2 }
  0xb0   :  { %v445_v22 = vadd.f32 %v444_v21, %v431_v20  ;;  %v458_v23 = vpop.f32.mrf.mxu3  ;;  %v1287_v20 = vld [vmem:[%s2066_s5 + $0x48] sm:$0xff] }
  0xb2   :  { %v459_v25 = vadd.f32 %v458_v23, %v445_v22 }
  0xc1   :  { %v470_v11 = vpop.f32.mrf.mxu0 }
  0xc2   :  { %v471_v14 = vadd.f32 %v470_v11, %v457_v10 }
  0xc4   :  { %v480_v15 = vmul.f32 %v1281_v13, %v471_v14 }
  0xc6   :  { %482 = vadd.xlane.f32.xlu1 %v480_v15 }
  0xc9   :  { %v472_v24 = vpop.f32.mrf.mxu0 }
  0xca   :  { %v473_v26 = vadd.f32 %v472_v24, %v459_v25  ;;  %v1286_v24 = vld [vmem:[%s2066_s5 + $0x40] sm:$0xff] }
  0xcc   :  { %v481_v27 = vmul.f32 %v1281_v13, %v473_v26 }
  0xdf   :  { %542 = vperm.xlu1 %1394, %v538_v16  }
 0x109   :  { %484 = vadd.xlane.f32.xlu1 %v481_v27 }
 0x122   :  { %825 = vperm.xlu1 %1394, %v819_v28  }
 0x12a   :  { %840 = vperm.xlu1 %1394, %v822_v29  }
 0x132   :  { %906 = vperm.xlu1 %1394, %v896_v30   ;;  %v1289_v30 = vld [vmem:[%s2066_s5 + $0x58] sm:$0xff] }
 0x139   :  { %v483_v31 = vpop.xlane.xlu1 %482 }
 0x13a   :  { %v486_v32 = vmul.f32 0.009090909, %v483_v31 }
 0x13c   :  { %v488_v33 = vsub.f32 %v471_v14, %v486_v32  ;;  %v1285_v14 = vld [vmem:[%s2066_s5 + $0x38] sm:$0xff]  ;;  %v1291_v32 = vld [vmem:[%s2066_s5 + $0x68] sm:$0xff] }
 0x13e   :  { %v490_v34 = vmul.f32 %v1281_v13, %v488_v33  ;;  %v512_v57 = vmul.f32 %v505_v55, %v488_v33 }
 0x140   :  { %v492_v35 = vmul.f32 %v490_v34, %v490_v34 }
 0x142   :  { %494 = vadd.xlane.f32.xlu2 %v492_v35 }
 0x151   :  { %v543_v36 = vpop.permute.xlu1 %542 }
 0x17c   :  { %v485_v37 = vpop.xlane.xlu1 %484 }
 0x17d   :  { %v487_v38 = vmul.f32 0.009090909, %v485_v37  ;;  %v1290_v37 = vld [vmem:[%s2066_s5 + $0x60] sm:$0xff] }
 0x17f   :  { %v1693_v39 = vsub.f32 %v473_v26, %v487_v38  ;;  %v1288_v26 = vld [vmem:[%s2066_s5 + $0x50] sm:$0xff] }
 0x181   :  { %v491_v40 = vmul.f32 %v1281_v13, %v1693_v39  ;;  %v561_v13 = vld [vmem:[%s2066_s5 + $0x18] sm:$0xff] }
 0x183   :  { %v493_v41 = vmul.f32 %v491_v40, %v491_v40 }
 0x185   :  { %496 = vadd.xlane.f32.xlu2 %v493_v41  ;;  %v1292_v41 = vld [vmem:[%s2066_s5 + $0x70] sm:$0xff] }
 0x19d   :  { %509 = vperm.xlu2 %1395, %v501_v42  }
 0x1a5   :  { %830 = vperm.xlu2 %1395, %v820_v43  }
 0x1ad   :  { %901 = vperm.xlu2 %1395, %v895_v44  }
 0x1b5   :  { %916 = vperm.xlu2 %1395, %v898_v45   ;;  %v495_v46 = vpop.xlane.xlu2 %494 }
 0x1b6   :  { %v498_v47 = vmul.f32 0.009090909, %v495_v46 }
 0x1b8   :  { %v514_v48 = vadd.f32 1e-05, %v498_v47  ;;  %v1293_v47 = vld [vmem:[%s2066_s5 + $0x78] sm:$0xff] }
 0x1ba   :  { %1396 = vrsqrt.f32 %v514_v48  ;;  %vm522_vm2 = vweird.f32 %v514_v48 }
 0x1c0   :  { %v1397_v49 = vpop.eup %1396 }
 0x1c1   :  { %v517_v50 = vmul.f32 %v1397_v49, %v514_v48  ;;  %vm523_vm1 = vweird.f32 %v1397_v49  ;;  %v1295_v48 = vld [vmem:[%s2066_s5 + $0x88] sm:$0xff] }
 0x1c2   :  { %vm524_vm3 = vmor %vm522_vm2, %vm523_vm1 }
 0x1c3   :  { %v518_v51 = vmul.f32 %v1397_v49, %v517_v50 }
 0x1c5   :  { %v519_v52 = vmul.f32 0.5, %v518_v51 }
 0x1c7   :  { %v520_v53 = vsub.f32 1.5, %v519_v52 }
 0x1c9   :  { %v521_v54 = vmul.f32 %v1397_v49, %v520_v53  ;;  %v1294_v53 = vld [vmem:[%s2066_s5 + $0x80] sm:$0xff] }
 0x1cb   :  { %v525_v56 = vsel %vm524_vm3, %v1397_v49, %v521_v54 }
 0x1cc   :  { %v536_v58 = vmul.f32 %v525_v56, %v512_v57  ;;  %v1296_v57 = vld [vmem:[%s2066_s5 + $0x90] sm:$0xff] }
 0x1ce   :  { %v550_v59 = vadd.f32 %v543_v36, %v536_v58 }
 0x1d0   :  { %v554_v60 = vmul.f32 0.2, %v550_v59  ;;  %vm552_vm4 = vcmp.gt.f32.partialorder %v550_v59, 0.0 }
 0x1d2   :  { %v1708_v61 = vsel %vm552_vm4, %v550_v59, %v554_v60 }
 0x1d3   :  { %v562_v62 = vperm.slane %v1708_v61, 0  ;;  %v576_v63 = vperm.slane %v1708_v61, 1  ;;  %v590_v17 = vperm.slane %v1708_v61, 2  ;;  %v604_v27 = vperm.slane %v1708_v61, 3 }
 0x1d4   :  { %v618_v43 = vperm.slane %v1708_v61, 4  ;;  %v632_v55 = vperm.slane %v1708_v61, 5 }
 0x1d5   :  { %v564_v10 = vmul.f32 %v562_v62, %v559_v2  ;;  %v578_v11 = vmul.f32 %v1283_v3, %v576_v63  ;;  %v563_v15 = vmul.f32 %v562_v62, %v558_v4  ;;  %v577_v16 = vmul.f32 %v1282_v5, %v576_v63 }
 0x1d6   :  { %v565_v18 = vmul.f32 %v562_v62, %v560_v8  ;;  %v579_v19 = vmul.f32 %v1284_v9, %v576_v63  ;;  %v566_v21 = vmul.f32 %v562_v62, %v561_v13  ;;  %v580_v22 = vmul.f32 %v1285_v14, %v576_v63  ;;  %v1298_v8 = vld [vmem:[%s2066_s5 + $0xa0] sm:$0xff]  ;;  %v1300_v13 = vld [vmem:[%s2066_s5 + $0xb0] sm:$0xff] }
 0x1d7   :  { %v582_v23 = vadd.f32 %v578_v11, %v564_v10  ;;  %v581_v25 = vadd.f32 %v577_v16, %v563_v15  ;;  %v592_v28 = vmul.f32 %v1287_v20, %v590_v17  ;;  %v591_v33 = vmul.f32 %v1286_v24, %v590_v17  ;;  %v1302_v24 = vld [vmem:[%s2066_s5 + $0xc0] sm:$0xff] }
 0x1d8   :  { %v583_v29 = vadd.f32 %v579_v19, %v565_v18  ;;  %v584_v34 = vadd.f32 %v580_v22, %v566_v21  ;;  %v593_v38 = vmul.f32 %v1288_v26, %v590_v17  ;;  %v594_v42 = vmul.f32 %v1289_v30, %v590_v17  ;;  %v1301_v18 = vld [vmem:[%s2066_s5 + $0xb8] sm:$0xff]  ;;  %v548_v22 = vpop.permute.xlu0 %547 }
 0x1d9   :  { %v596_v36 = vadd.f32 %v592_v28, %v582_v23  ;;  %v595_v40 = vadd.f32 %v591_v33, %v581_v25  ;;  %v606_v45 = vmul.f32 %v1291_v32, %v604_v27  ;;  %v605_v49 = vmul.f32 %v1290_v37, %v604_v27  ;;  %v1304_v28 = vld [vmem:[%s2066_s5 + $0xd0] sm:$0xff]  ;;  %v1305_v33 = vld [vmem:[%s2066_s5 + $0xd8] sm:$0xff] }
 0x1da   :  { %v597_v46 = vadd.f32 %v593_v38, %v583_v29  ;;  %v598_v50 = vadd.f32 %v594_v42, %v584_v34  ;;  %v607_v54 = vmul.f32 %v1292_v41, %v604_v27  ;;  %v608_v58 = vmul.f32 %v1293_v47, %v604_v27  ;;  %v1311_v42 = vld [vmem:[%s2066_s5 + $0x108] sm:$0xff] }
 0x1db   :  { %v610_v52 = vadd.f32 %v606_v45, %v596_v36  ;;  %v609_v56 = vadd.f32 %v605_v49, %v595_v40  ;;  %v620_v62 = vmul.f32 %v1295_v48, %v618_v43  ;;  %v619_v2 = vmul.f32 %v1294_v53, %v618_v43  ;;  %v1306_v40 = vld [vmem:[%s2066_s5 + $0xe0] sm:$0xff] }
 0x1dc   :  { %v611_v63 = vadd.f32 %v607_v54, %v597_v46  ;;  %v612_v3 = vadd.f32 %v608_v58, %v598_v50  ;;  %v621_v9 = vmul.f32 %v1296_v57, %v618_v43  ;;  %v633_v20 = vmul.f32 %v1298_v8, %v632_v55  ;;  %v1309_v50 = vld [vmem:[%s2066_s5 + $0xf8] sm:$0xff]  ;;  %v1310_v54 = vld [vmem:[%s2066_s5 + $0x100] sm:$0xff]  ;;  %v1319_v58 = vld [vmem:[%s2066_s5 + $0x148] sm:$0xff] }
 0x1dd   :  { %v624_v5 = vadd.f32 %v620_v62, %v610_v52  ;;  %v623_v11 = vadd.f32 %v619_v2, %v609_v56  ;;  %v635_v25 = vmul.f32 %v1300_v13, %v632_v55  ;;  %v636_v29 = vmul.f32 %v1301_v18, %v632_v55  ;;  %v1318_v8 = vld [vmem:[%s2066_s5 + $0x140] sm:$0xff] }
 0x1de   :  { %v625_v17 = vadd.f32 %v621_v9, %v611_v63  ;;  %v1314_v63 = vld [vmem:[%s2066_s5 + $0x120] sm:$0xff]  ;;  %v1859_v13 = vsel %vm782_vm9, 1.0, %v1441_v12 }
 0x1df   :  { %v637_v27 = vadd.f32 %v633_v20, %v623_v11  ;;  %v1313_v20 = vld [vmem:[%s2066_s5 + $0x118] sm:$0xff] }
 0x1e0   :  { %v639_v32 = vadd.f32 %v635_v25, %v625_v17  ;;  %v1320_v25 = vld [vmem:[%s2066_s5 + $0x150] sm:$0xff] }
 0x1f8   :  { %v497_v0 = vpop.xlane.xlu2 %496 }
 0x1f9   :  { %v499_v1 = vmul.f32 0.009090909, %v497_v0  ;;  %v1297_v0 = vld [vmem:[%s2066_s5 + $0x98] sm:$0xff] }
 0x1fa   :  { %v622_v14 = vmul.f32 %v1297_v0, %v618_v43  ;;  %v1312_v0 = vld [vmem:[%s2066_s5 + $0x110] sm:$0xff] }
 0x1fb   :  { %v1724_v7 = vadd.f32 1e-05, %v499_v1  ;;  %v1299_v1 = vld [vmem:[%s2066_s5 + $0xa8] sm:$0xff] }
 0x1fc   :  { %v634_v16 = vmul.f32 %v1299_v1, %v632_v55  ;;  %v626_v21 = vadd.f32 %v622_v14, %v612_v3  ;;  %v1316_v14 = vld [vmem:[%s2066_s5 + $0x130] sm:$0xff] }
 0x1fd   :  { %1398 = vrsqrt.f32 %v1724_v7  ;;  %vm532_vm6 = vweird.f32 %v1724_v7 }
 0x1fe   :  { %v638_v23 = vadd.f32 %v634_v16, %v624_v5  ;;  %v640_v37 = vadd.f32 %v636_v29, %v626_v21  ;;  %v1326_v29 = vld [vmem:[%s2066_s5 + $0x180] sm:$0xff] }
 0x200   :  { %v510_v60 = vpop.permute.xlu2 %509 }
 0x201   :  { %v513_v10 = vmul.f32 %v510_v60, %v1693_v39  ;;  %v1303_v39 = vld [vmem:[%s2066_s5 + $0xc8] sm:$0xff] }
 0x203   :  { %v1399_v31 = vpop.eup %1398 }
 0x204   :  { %v527_v35 = vmul.f32 %v1399_v31, %v1724_v7  ;;  %vm533_vm5 = vweird.f32 %v1399_v31  ;;  %v646_v7 = vperm.slane %v1708_v61, 6 }
 0x205   :  { %vm534_vm7 = vmor %vm532_vm6, %vm533_vm5 }
 0x206   :  { %v528_v44 = vmul.f32 %v1399_v31, %v527_v35  ;;  %v648_v30 = vmul.f32 %v1303_v39, %v646_v7  ;;  %v1307_v35 = vld [vmem:[%s2066_s5 + $0xe8] sm:$0xff]  ;;  %v647_v36 = vmul.f32 %v1302_v24, %v646_v7  ;;  %v649_v41 = vmul.f32 %v1304_v28, %v646_v7 }
 0x207   :  { %v650_v45 = vmul.f32 %v1305_v33, %v646_v7  ;;  %v1327_v7 = vld [vmem:[%s2066_s5 + $0x188] sm:$0xff] }
 0x208   :  { %v529_v51 = vmul.f32 0.5, %v528_v44  ;;  %v652_v38 = vadd.f32 %v648_v30, %v638_v23  ;;  %v651_v43 = vadd.f32 %v647_v36, %v637_v27  ;;  %v1308_v44 = vld [vmem:[%s2066_s5 + $0xf0] sm:$0xff]  ;;  %v653_v49 = vadd.f32 %v649_v41, %v639_v32  ;;  %v1331_v27 = vld [vmem:[%s2066_s5 + $0x1a8] sm:$0xff]  ;;  %v1317_v32 = vld [vmem:[%s2066_s5 + $0x138] sm:$0xff] }
 0x209   :  { %v654_v55 = vadd.f32 %v650_v45, %v640_v37  ;;  %v1324_v36 = vld [vmem:[%s2066_s5 + $0x170] sm:$0xff] }
 0x20a   :  { %v530_v59 = vsub.f32 1.5, %v529_v51  ;;  %v1315_v51 = vld [vmem:[%s2066_s5 + $0x128] sm:$0xff] }
 0x20c   :  { %v531_v4 = vmul.f32 %v1399_v31, %v530_v59 }
 0x20e   :  { %v535_v15 = vsel %vm534_vm7, %v1399_v31, %v531_v4  ;;  %v660_v31 = vperm.slane %v1708_v61, 7  ;;  %v1323_v4 = vld [vmem:[%s2066_s5 + $0x168] sm:$0xff] }
 0x20f   :  { %v537_v19 = vmul.f32 %v535_v15, %v513_v10 }
 0x210   :  { %v662_v48 = vmul.f32 %v1307_v35, %v660_v31  ;;  %v661_v53 = vmul.f32 %v1306_v40, %v660_v31  ;;  %v663_v59 = vmul.f32 %v1308_v44, %v660_v31  ;;  %v664_v1 = vmul.f32 %v1309_v50, %v660_v31  ;;  %v1335_v40 = vld [vmem:[%s2066_s5 + $0x1c8] sm:$0xff]  ;;  %v1321_v44 = vld [vmem:[%s2066_s5 + $0x158] sm:$0xff] }
 0x211   :  { %v551_v26 = vadd.f32 %v548_v22, %v537_v19  ;;  %v1322_v19 = vld [vmem:[%s2066_s5 + $0x160] sm:$0xff] }
 0x212   :  { %v666_v56 = vadd.f32 %v662_v48, %v652_v38  ;;  %v665_v62 = vadd.f32 %v661_v53, %v651_v43  ;;  %v667_v9 = vadd.f32 %v663_v59, %v653_v49  ;;  %v668_v15 = vadd.f32 %v664_v1, %v654_v55  ;;  %v1328_v48 = vld [vmem:[%s2066_s5 + $0x190] sm:$0xff]  ;;  %v1339_v53 = vld [vmem:[%s2066_s5 + $0x1e8] sm:$0xff]  ;;  %v1334_v55 = vld [vmem:[%s2066_s5 + $0x1c0] sm:$0xff] }
 0x213   :  { %vm553_vm8 = vcmp.gt.f32.partialorder %v551_v26, 0.0  ;;  %v555_v34 = vmul.f32 0.2, %v551_v26 }
 0x215   :  { %v557_v61 = vsel %vm553_vm8, %v551_v26, %v555_v34 }
 0x216   :  { %v674_v46 = vperm.slane %v557_v61, 0  ;;  %v1820_v47 = vperm.slane %v557_v61, 1  ;;  %v1828_v52 = vperm.slane %v557_v61, 2  ;;  %v1838_v60 = vperm.slane %v557_v61, 3 }
 0x217   :  { %v1854_v11 = vperm.slane %v557_v61, 4  ;;  %v1875_v22 = vperm.slane %v557_v61, 5  ;;  %v1877_v23 = vperm.slane %v557_v61, 6  ;;  %v1894_v34 = vperm.slane %v557_v61, 7 }
 0x218   :  { %v676_v57 = vmul.f32 %v1311_v42, %v674_v46  ;;  %v690_v3 = vmul.f32 %v1315_v51, %v1820_v47  ;;  %v675_v5 = vmul.f32 %v1310_v54, %v674_v46  ;;  %v704_v10 = vmul.f32 %v1319_v58, %v1828_v52  ;;  %v1330_v42 = vld [vmem:[%s2066_s5 + $0x1a0] sm:$0xff]  ;;  %v1325_v58 = vld [vmem:[%s2066_s5 + $0x178] sm:$0xff] }
 0x219   :  { %v689_v18 = vmul.f32 %v1314_v63, %v1820_v47  ;;  %v677_v39 = vmul.f32 %v1312_v0, %v674_v46  ;;  %v718_v21 = vmul.f32 %v1323_v4, %v1838_v60  ;;  %v703_v24 = vmul.f32 %v1318_v8, %v1828_v52  ;;  %v1338_v4 = vld [vmem:[%s2066_s5 + $0x1e0] sm:$0xff] }
 0x21a   :  { %v680_v2 = vadd.f32 %v676_v57, %v666_v56  ;;  %v679_v17 = vadd.f32 %v675_v5, %v665_v62  ;;  %v691_v31 = vmul.f32 %v1316_v14, %v1820_v47  ;;  %v732_v33 = vmul.f32 %v1327_v7, %v1854_v11  ;;  %v1332_v62 = vld [vmem:[%s2066_s5 + $0x1b0] sm:$0xff] }
 0x21b   :  { %v681_v30 = vadd.f32 %v677_v39, %v667_v9  ;;  %v717_v35 = vmul.f32 %v1322_v19, %v1838_v60  ;;  %v678_v37 = vmul.f32 %v1313_v20, %v674_v46  ;;  %v705_v61 = vmul.f32 %v1320_v25, %v1828_v52  ;;  %v1340_v19 = vld [vmem:[%s2066_s5 + $0x1f0] sm:$0xff]  ;;  %v1333_v39 = vld [vmem:[%s2066_s5 + $0x1b8] sm:$0xff] }
 0x21c   :  { %v694_v16 = vadd.f32 %v690_v3, %v680_v2  ;;  %v693_v28 = vadd.f32 %v689_v18, %v679_v17  ;;  %v746_v45 = vmul.f32 %v1331_v27, %v1875_v22  ;;  %v731_v46 = vmul.f32 %v1326_v29, %v1854_v11  ;;  %v1337_v29 = vld [vmem:[%s2066_s5 + $0x1d8] sm:$0xff] }
 0x21d   :  { %v695_v43 = vadd.f32 %v691_v31, %v681_v30  ;;  %v682_v49 = vadd.f32 %v678_v37, %v668_v15  ;;  %v692_v50 = vmul.f32 %v1317_v32, %v1820_v47  ;;  %v719_v57 = vmul.f32 %v1324_v36, %v1838_v60 }
 0x21e   :  { %v708_v26 = vadd.f32 %v704_v10, %v694_v16  ;;  %v707_v41 = vadd.f32 %v703_v24, %v693_v28  ;;  %v760_v59 = vmul.f32 %v1335_v40, %v1877_v23  ;;  %v745_v47 = vmul.f32 %v1330_v42, %v1875_v22  ;;  %v1336_v10 = vld [vmem:[%s2066_s5 + $0x1d0] sm:$0xff] }
 0x21f   :  { %v709_v56 = vadd.f32 %v705_v61, %v695_v43  ;;  %v696_v63 = vadd.f32 %v692_v50, %v682_v49  ;;  %v706_v0 = vmul.f32 %v1321_v44, %v1828_v52  ;;  %v733_v8 = vmul.f32 %v1328_v48, %v1854_v11  ;;  %v1329_v52 = vld [vmem:[%s2066_s5 + $0x198] sm:$0xff]  ;;  %v972_v48 = vld [vmem:[%s2069_s8 + $0x8] sm:$0xff]  ;;  %v826_v49 = vpop.permute.xlu1 %825  ;;  %v831_v50 = vpop.permute.xlu2 %830 }
 0x220   :  { %v722_v38 = vadd.f32 %v718_v21, %v708_v26  ;;  %v721_v54 = vadd.f32 %v717_v35, %v707_v41  ;;  %v774_v9 = vmul.f32 %v1339_v53, %v1894_v34  ;;  %v759_v6 = vmul.f32 %v1334_v55, %v1877_v23 }
 0x221   :  { %v723_v5 = vadd.f32 %v719_v57, %v709_v56  ;;  %v710_v14 = vadd.f32 %v706_v0, %v696_v63  ;;  %v720_v15 = vmul.f32 %v1325_v58, %v1838_v60  ;;  %v747_v18 = vmul.f32 %v1332_v62, %v1875_v22 }
 0x222   :  { %v736_v51 = vadd.f32 %v732_v33, %v722_v38  ;;  %v735_v3 = vadd.f32 %v731_v46, %v721_v54  ;;  %v773_v20 = vmul.f32 %v1338_v4, %v1894_v34  ;;  %v1343_v21 = vsel %vm1936_vm11, 1.0, %v1441_v12 }
 0x223   :  { %v737_v17 = vadd.f32 %v733_v8, %v723_v5  ;;  %v724_v60 = vadd.f32 %v720_v15, %v710_v14  ;;  %v734_v24 = vmul.f32 %v1329_v52, %v1854_v11  ;;  %v761_v28 = vmul.f32 %v1336_v10, %v1877_v23  ;;  %v1341_v11 = vld [vmem:[%s2066_s5 + $0x1f8] sm:$0xff] }
 0x224   :  { %v750_v2 = vadd.f32 %v746_v45, %v736_v51  ;;  %v749_v7 = vadd.f32 %v745_v47, %v735_v3  ;;  %v775_v30 = vmul.f32 %v1340_v19, %v1894_v34  ;;  %v748_v32 = vmul.f32 %v1333_v39, %v1875_v22  ;;  %v836_v51 = vpop.permute.xlu0 %835 }
 0x225   :  { %v751_v27 = vadd.f32 %v747_v18, %v737_v17  ;;  %v738_v31 = vadd.f32 %v734_v24, %v724_v60  ;;  %v762_v38 = vmul.f32 %v1337_v29, %v1877_v23  ;;  %v776_v22 = vmul.f32 %v1341_v11, %v1894_v34  ;;  %v971_v34 = vld [vmem:[%s2069_s8] sm:$0xff]  ;;  %v974_v17 = vld [vmem:[%s2069_s8 + $0x18] sm:$0xff]  ;;  %v973_v18 = vld [vmem:[%s2069_s8 + $0x10] sm:$0xff] }
 0x226   :  { %v764_v16 = vadd.f32 %v760_v59, %v750_v2  ;;  %v763_v26 = vadd.f32 %v759_v6, %v749_v7  ;;  %v1442_v19 = vmov 2.0  }
 0x227   :  { %v765_v35 = vadd.f32 %v761_v28, %v751_v27  ;;  %v752_v37 = vadd.f32 %v748_v32, %v738_v31  ;;  %v841_v53 = vpop.permute.xlu1 %840  ;;  %v1986_v54 = vpop.permute.xlu2 %901  ;;  %1400 = vrcp.f32 %v1442_v19 }
 0x228   :  { %v778_v25 = vadd.f32 %v774_v9, %v764_v16  ;;  %v777_v12 = vadd.f32 %v773_v20, %v763_v26  ;;  %v1011_v16 = vld [vmem:[%s2070_s9] sm:$0xff] }
 0x229   :  { %v779_v42 = vadd.f32 %v775_v30, %v765_v35  ;;  %v766_v43 = vadd.f32 %v762_v38, %v752_v37 }
 0x22a   :  { %v787_v33 = vmul.f32 %v1859_v13, %v778_v25  ;;  %v803_v36 = vmul.f32 %v1343_v21, %v778_v25  ;;  %v802_v40 = vmul.f32 %v1343_v21, %v777_v12  ;;  %v786_v41 = vmul.f32 %v1859_v13, %v777_v12 }
 0x22b   :  { %v804_v61 = vmul.f32 %v1343_v21, %v779_v42  ;;  %v780_v44 = vadd.f32 %v776_v22, %v766_v43  ;;  %v788_v46 = vmul.f32 %v1859_v13, %v779_v42 }
 0x22c   :  { %792 = vadd.xlane.f32.xlu2 %v787_v33  ;;  %806 = vadd.xlane.f32.xlu1 %v802_v40  ;;  %v1988_v55 = vpop.permute.xlu0 %911 }
 0x22d   :  { %790 = vadd.xlane.f32.xlu0 %v786_v41  ;;  %v805_v45 = vmul.f32 %v1343_v21, %v780_v44  ;;  %v789_v23 = vmul.f32 %v1859_v13, %v780_v44  ;;  %v1401_v39 = vpop.eup %1400 }
 0x22e   :  { %v861_v20 = vmul.f32 2.0, %v1401_v39  ;;  %vm865_vm14 = vweird.f32 %v1401_v39 }
 0x22f   :  { %v1990_v13 = vpop.permute.xlu1 %906  ;;  %v1992_v56 = vpop.permute.xlu2 %916 }
 0x230   :  { %v862_v21 = vsub.f32 1.0, %v861_v20 }
 0x232   :  { %v863_v60 = vmul.f32 %v1401_v39, %v862_v21 }
 0x234   :  { %794 = vadd.xlane.f32.xlu2 %v788_v46  ;;  %v864_v24 = vadd.f32 %v1401_v39, %v863_v60 }
 0x235   :  { %808 = vadd.xlane.f32.xlu0 %v803_v36 }
 0x236   :  { %v2011_v25 = vsel %vm865_vm14, %v1401_v39, %v864_v24 }
 0x23d   :  { %810 = vadd.xlane.f32.xlu0 %v804_v61 }
 0x245   :  { %796 = vadd.xlane.f32.xlu0 %v789_v23  ;;  %982 = vperm.xlu1 %1394, %v972_v48   ;;  %v1052_v23 = vld [vmem:[#allocation2] sm:$0x1]  ;;  %v1014_v48 = vld [vmem:[%s2070_s9 + $0x18] sm:$0xff] }
 0x24d   :  { %812 = vadd.xlane.f32.xlu0 %v805_v45  ;;  %v1012_v45 = vld [vmem:[%s2070_s9 + $0x8] sm:$0xff] }
 0x261   :  { %977 = vperm.xlu0 %1393, %v971_v34   ;;  %v1013_v34 = vld [vmem:[%s2070_s9 + $0x10] sm:$0xff]  ;;  %s1443_s9 = smov [#allocation3]  }
 0x262   :  { %s1090_s23 = sshll.u32 %s1443_s9, 4  ;;  %s1091_s23 = int_to_ptr.vmem [resolvable:$true] %s1090_s23 }
 0x29f   :  { %v807_v58 = vpop.xlane.xlu1 %806  ;;  %v793_v63 = vpop.xlane.xlu2 %792 }
 0x2a0   :  { %v791_v57 = vpop.xlane.xlu0 %790 }
 0x2a1   :  { %v815_v59 = vsel %vm814_vm12, %v791_v57, %v807_v58 }
 0x2a2   :  { %v843_v47 = vadd.f32 %v826_v49, %v815_v59 }
 0x2a4   :  { %v848_v62 = vsel %vm847_vm13, %v843_v47, 0.0 }
 0x2a5   :  { %849 = vadd.xlane.f32.xlu2 %v848_v62 }
 0x2a7   :  { %v795_v4 = vpop.xlane.xlu2 %794 }
 0x2a8   :  { %v809_v0 = vpop.xlane.xlu0 %808 }
 0x2a9   :  { %v816_v1 = vsel %vm814_vm12, %v793_v63, %v809_v0 }
 0x2aa   :  { %v844_v2 = vadd.f32 %v831_v50, %v816_v1 }
 0x2ac   :  { %v851_v3 = vsel %vm847_vm13, %v844_v2, 0.0 }
 0x2ad   :  { %852 = vadd.xlane.f32.xlu1 %v851_v3 }
 0x2b0   :  { %v811_v5 = vpop.xlane.xlu0 %810 }
 0x2b1   :  { %v817_v8 = vsel %vm814_vm12, %v795_v4, %v811_v5 }
 0x2b2   :  { %v845_v52 = vadd.f32 %v836_v51, %v817_v8 }
 0x2b4   :  { %v854_v9 = vsel %vm847_vm13, %v845_v52, 0.0 }
 0x2b5   :  { %855 = vadd.xlane.f32.xlu0 %v854_v9 }
 0x2b7   :  { %v2013_v26 = vpop.permute.xlu1 %982 }
 0x2b8   :  { %v797_v6 = vpop.xlane.xlu0 %796 }
 0x2c0   :  { %v813_v10 = vpop.xlane.xlu0 %812 }
 0x2c1   :  { %v818_v14 = vsel %vm814_vm12, %v797_v6, %v813_v10 }
 0x2c2   :  { %v846_v15 = vadd.f32 %v841_v53, %v818_v14 }
 0x2c4   :  { %v857_v7 = vsel %vm847_vm13, %v846_v15, 0.0 }
 0x2c5   :  { %858 = vadd.xlane.f32.xlu2 %v857_v7 }
 0x2c6   :  { %1017 = vperm.xlu1 %1394, %v1011_v16  }
 0x2c9   :  { %992 = vperm.xlu0 %1393, %v974_v17  }
 0x2d3   :  { %v978_v32 = vpop.permute.xlu0 %977 }
 0x2dd   :  { %987 = vperm.xlu2 %1395, %v973_v18  }
 0x318   :  { %v850_v27 = vpop.xlane.xlu2 %849 }
 0x319   :  { %v867_v28 = vmul.f32 %v2011_v25, %v850_v27 }
 0x31b   :  { %v871_v29 = vsub.f32 %v843_v47, %v867_v28 }
 0x31d   :  { %v875_v30 = vmul.f32 %v871_v29, %v871_v29  ;;  %v919_v6 = vmul.f32 %v1986_v54, %v871_v29 }
 0x31f   :  { %v879_v31 = vsel %vm847_vm13, %v875_v30, 0.0 }
 0x320   :  { %880 = vadd.xlane.f32.xlu1 %v879_v31  ;;  %v853_v33 = vpop.xlane.xlu1 %852 }
 0x321   :  { %v868_v12 = vmul.f32 %v2011_v25, %v853_v33 }
 0x323   :  { %v872_v35 = vsub.f32 %v844_v2, %v868_v12 }
 0x325   :  { %v876_v36 = vmul.f32 %v872_v35, %v872_v35  ;;  %v920_v21 = vmul.f32 %v1990_v13, %v872_v35 }
 0x327   :  { %v882_v11 = vsel %vm847_vm13, %v876_v36, 0.0 }
 0x328   :  { %v856_v37 = vpop.xlane.xlu0 %855  ;;  %883 = vadd.xlane.f32.xlu2 %v882_v11 }
 0x329   :  { %v869_v38 = vmul.f32 %v2011_v25, %v856_v37 }
 0x32b   :  { %v2020_v40 = vsub.f32 %v845_v52, %v869_v38 }
 0x32d   :  { %v877_v41 = vmul.f32 %v2020_v40, %v2020_v40  ;;  %v921_v35 = vmul.f32 %v1988_v55, %v2020_v40 }
 0x32f   :  { %v885_v42 = vsel %vm847_vm13, %v877_v41, 0.0 }
 0x330   :  { %886 = vadd.xlane.f32.xlu1 %v885_v42 }
 0x338   :  { %v859_v43 = vpop.xlane.xlu2 %858  ;;  %v1018_v49 = vpop.permute.xlu1 %1017 }
 0x339   :  { %v870_v22 = vmul.f32 %v2011_v25, %v859_v43 }
 0x33b   :  { %v2026_v61 = vsub.f32 %v846_v15, %v870_v22  ;;  %v993_v16 = vpop.permute.xlu0 %992 }
 0x33d   :  { %v878_v44 = vmul.f32 %v2026_v61, %v2026_v61 }
 0x33f   :  { %v888_v46 = vsel %vm847_vm13, %v878_v44, 0.0 }
 0x340   :  { %889 = vadd.xlane.f32.xlu0 %v888_v46  ;;  %1022 = vperm.xlu2 %1395, %v1012_v45   ;;  %v2040_v50 = vpop.permute.xlu2 %987 }
 0x348   :  { %1055 = vperm.xlu2 %1395, %v1052_v23  }
 0x349   :  { %1032 = vperm.xlu1 %1394, %v1014_v48  }
 0x354   :  { %1027 = vperm.xlu0 %1393, %v1013_v34  }
 0x393   :  { %v881_v51 = vpop.xlane.xlu1 %880 }
 0x394   :  { %v891_v53 = vmul.f32 %v881_v51, %v2011_v25 }
 0x396   :  { %v923_v57 = vadd.f32 1e-05, %v891_v53 }
 0x398   :  { %1402 = vrsqrt.f32 %v923_v57  ;;  %vm933_vm0 = vweird.f32 %v923_v57 }
 0x39b   :  { %v884_v58 = vpop.xlane.xlu2 %883 }
 0x39c   :  { %v892_v59 = vmul.f32 %v884_v58, %v2011_v25 }
 0x39e   :  { %v1403_v47 = vpop.eup %1402  ;;  %v924_v62 = vadd.f32 1e-05, %v892_v59 }
 0x39f   :  { %v928_v63 = vmul.f32 %v1403_v47, %v923_v57  ;;  %vm934_vm15 = vweird.f32 %v1403_v47  ;;  %v922_v57 = vmul.f32 %v1992_v56, %v2026_v61 }
 0x3a0   :  { %1404 = vrsqrt.f32 %v924_v62  ;;  %vm935_vm1 = vmor %vm933_vm0, %vm934_vm15  ;;  %vm943_vm3 = vweird.f32 %v924_v62 }
 0x3a1   :  { %v929_v0 = vmul.f32 %v1403_v47, %v928_v63 }
 0x3a3   :  { %v930_v1 = vmul.f32 0.5, %v929_v0  ;;  %v887_v2 = vpop.xlane.xlu1 %886  ;;  %v1023_v38 = vpop.permute.xlu2 %1022 }
 0x3a4   :  { %v893_v3 = vmul.f32 %v887_v2, %v2011_v25 }
 0x3a5   :  { %v931_v4 = vsub.f32 1.5, %v930_v1 }
 0x3a6   :  { %v1405_v5 = vpop.eup %1404  ;;  %v925_v8 = vadd.f32 1e-05, %v893_v3 }
 0x3a7   :  { %v932_v52 = vmul.f32 %v1403_v47, %v931_v4  ;;  %v938_v9 = vmul.f32 %v1405_v5, %v924_v62  ;;  %vm944_vm2 = vweird.f32 %v1405_v5 }
 0x3a8   :  { %1406 = vrsqrt.f32 %v925_v8  ;;  %vm945_vm4 = vmor %vm943_vm3, %vm944_vm2  ;;  %vm953_vm8 = vweird.f32 %v925_v8  ;;  %vm1083_vm3 = vcmask 8192  }
 0x3a9   :  { %v936_v10 = vsel %vm935_vm1, %v1403_v47, %v932_v52  ;;  %v939_v14 = vmul.f32 %v1405_v5, %v938_v9 }
 0x3aa   :  { %v967_v15 = vmul.f32 %v936_v10, %v919_v6 }
 0x3ab   :  { %v940_v7 = vmul.f32 0.5, %v939_v14  ;;  %v1056_v56 = vpop.permute.xlu2 %1055 }
 0x3ac   :  { %v995_v17 = vadd.f32 %v978_v32, %v967_v15  ;;  %v1058_v6 = vperm.slane %v1056_v56, 0 }
 0x3ad   :  { %v941_v18 = vsub.f32 1.5, %v940_v7 }
 0x3ae   :  { %v1407_v19 = vpop.eup %1406  ;;  %v1003_v60 = vmul.f32 0.2, %v995_v17  ;;  %vm999_vm5 = vcmp.gt.f32.partialorder %v995_v17, 0.0 }
 0x3af   :  { %v942_v39 = vmul.f32 %v1405_v5, %v941_v18  ;;  %v948_v20 = vmul.f32 %v1407_v19, %v925_v8  ;;  %vm954_vm6 = vweird.f32 %v1407_v19 }
 0x3b0   :  { %v1007_v31 = vsel %vm999_vm5, %v995_v17, %v1003_v60  ;;  %vm955_vm9 = vmor %vm953_vm8, %vm954_vm6 }
 0x3b1   :  { %v946_v24 = vsel %vm945_vm4, %v1405_v5, %v942_v39  ;;  %v949_v54 = vmul.f32 %v1407_v19, %v948_v20  ;;  %v1035_v11 = vmul.f32 %v1018_v49, %v1007_v31 }
 0x3b2   :  { %v968_v27 = vmul.f32 %v946_v24, %v920_v21 }
 0x3b3   :  { %v950_v28 = vmul.f32 0.5, %v949_v54  ;;  %v890_v29 = vpop.xlane.xlu0 %889 }
 0x3b4   :  { %v996_v30 = vadd.f32 %v2013_v26, %v968_v27  ;;  %v894_v32 = vmul.f32 %v890_v29, %v2011_v25  ;;  %v1039_v25 = vsel %vm847_vm13, %v1035_v11, 0.0 }
 0x3b5   :  { %v951_v33 = vsub.f32 1.5, %v950_v28 }
 0x3b6   :  { %vm1000_vm7 = vcmp.gt.f32.partialorder %v996_v30, 0.0  ;;  %v1004_v12 = vmul.f32 0.2, %v996_v30  ;;  %v926_v36 = vadd.f32 1e-05, %v894_v32 }
 0x3b7   :  { %v952_v13 = vmul.f32 %v1407_v19, %v951_v33 }
 0x3b8   :  { %v1008_v37 = vsel %vm1000_vm7, %v996_v30, %v1004_v12  ;;  %1408 = vrsqrt.f32 %v926_v36  ;;  %vm963_vm12 = vweird.f32 %v926_v36 }
 0x3b9   :  { %v1036_v41 = vmul.f32 %v1023_v38, %v1008_v37  ;;  %v956_v26 = vsel %vm955_vm9, %v1407_v19, %v952_v13 }
 0x3ba   :  { %v969_v42 = vmul.f32 %v956_v26, %v921_v35 }
 0x3bb   :  { %v1040_v43 = vsel %vm847_vm13, %v1036_v41, 0.0  ;;  %v1033_v1 = vpop.permute.xlu1 %1032 }
 0x3bc   :  { %v1041_v22 = vadd.f32 %v1040_v43, %v1039_v25  ;;  %v997_v45 = vadd.f32 %v2040_v50, %v969_v42 }
 0x3be   :  { %v1409_v44 = vpop.eup %1408  ;;  %v1005_v48 = vmul.f32 0.2, %v997_v45  ;;  %vm1001_vm10 = vcmp.gt.f32.partialorder %v997_v45, 0.0 }
 0x3bf   :  { %v958_v46 = vmul.f32 %v1409_v44, %v926_v36  ;;  %vm964_vm11 = vweird.f32 %v1409_v44 }
 0x3c0   :  { %v1009_v49 = vsel %vm1001_vm10, %v997_v45, %v1005_v48  ;;  %vm965_vm14 = vmor %vm963_vm12, %vm964_vm11 }
 0x3c1   :  { %v959_v23 = vmul.f32 %v1409_v44, %v958_v46 }
 0x3c3   :  { %v960_v34 = vmul.f32 0.5, %v959_v23 }
 0x3c5   :  { %v961_v55 = vsub.f32 1.5, %v960_v34 }
 0x3c6   :  { %v1028_v40 = vpop.permute.xlu0 %1027 }
 0x3c7   :  { %v962_v51 = vmul.f32 %v1409_v44, %v961_v55  ;;  %v1037_v53 = vmul.f32 %v1028_v40, %v1009_v49 }
 0x3c9   :  { %v966_v58 = vsel %vm965_vm14, %v1409_v44, %v962_v51  ;;  %v1042_v59 = vsel %vm847_vm13, %v1037_v53, 0.0 }
 0x3ca   :  { %v970_v50 = vmul.f32 %v966_v58, %v922_v57  ;;  %v1043_v47 = vadd.f32 %v1042_v59, %v1041_v22 }
 0x3cc   :  { %v998_v62 = vadd.f32 %v993_v16, %v970_v50 }
 0x3ce   :  { %vm1002_vm15 = vcmp.gt.f32.partialorder %v998_v62, 0.0  ;;  %v1006_v63 = vmul.f32 0.2, %v998_v62 }
 0x3d0   :  { %v1010_v0 = vsel %vm1002_vm15, %v998_v62, %v1006_v63 }
 0x3d1   :  { %v1038_v2 = vmul.f32 %v1033_v1, %v1010_v0 }
 0x3d3   :  { %v1044_v3 = vsel %vm847_vm13, %v1038_v2, 0.0 }
 0x3d4   :  { %v1045_v4 = vadd.f32 %v1044_v3, %v1043_v47 }
 0x3d6   :  { %v1046_v5 = vrot.slane %v1045_v4, 4 }
 0x3d8   :  { %v1047_v8 = vadd.f32 %v1046_v5, %v1045_v4 }
 0x3da   :  { %v1048_v52 = vrot.slane %v1047_v8, 2 }
 0x3dc   :  { %v1049_v9 = vadd.f32 %v1048_v52, %v1047_v8 }
 0x3de   :  { %v1050_v61 = vrot.slane %v1049_v9, 1 }
 0x3e0   :  { %v1051_v10 = vadd.f32 %v1050_v61, %v1049_v9 }
 0x3e2   :  { %v1059_v14 = vadd.f32 %v1058_v6, %v1051_v10 }
 0x3e4   :  { %v1060_v15 = vand.u32 2147483647, %v1059_v14  ;;  %vm1064_vm4 = vcmp.ge.f32.partialorder %v1059_v14, 0.0 }
 0x3e6   :  { %v1061_v7 = vsub.f32 0.0, %v1060_v15 }
 0x3e8   :  { %v1062_v16 = vmul.f32 1.442695, %v1061_v7 }
 0x3ea   :  { %1410 = vpow2.f32 %v1062_v16 }
 0x3f0   :  { %v1411_v17 = vpop.eup %1410 }
 0x3f1   :  { %v1065_v18 = vadd.f32 1.0, %v1411_v17 }
 0x3f3   :  { %1412 = vrcp.f32 %v1065_v18  ;;  %v1077_v21 = vand.u32 2147483648, %v1065_v18  ;;  %v1075_v24 = vand.u32 2147483647, %v1065_v18  ;;  %vm1071_vm0 = vweird.f32 %v1065_v18 }
 0x3f5   :  { %v1078_v27 = vor.u32 1.1754944e-38, %v1077_v21  ;;  %vm1076_vm2 = vcmp.eq.f32.partialorder %v1075_v24, 8.507059e+37 }
 0x3f9   :  { %v1413_v19 = vpop.eup %1412 }
 0x3fa   :  { %v1067_v39 = vmul.f32 %v1413_v19, %v1065_v18  ;;  %vm1072_vm13 = vweird.f32 %v1413_v19 }
 0x3fb   :  { %vm1073_vm1 = vmor %vm1071_vm0, %vm1072_vm13 }
 0x3fc   :  { %v1068_v20 = vsub.f32 1.0, %v1067_v39 }
 0x3fe   :  { %v1069_v60 = vmul.f32 %v1413_v19, %v1068_v20 }
 0x400   :  { %v1070_v54 = vadd.f32 %v1413_v19, %v1069_v60 }
 0x402   :  { %v1074_v28 = vsel %vm1073_vm1, %v1413_v19, %v1070_v54 }
 0x403   :  { %v1079_v29 = vsel %vm1076_vm2, %v1078_v27, %v1074_v28 }
 0x404   :  { %v1081_v30 = vmul.f32 %v1411_v17, %v1079_v29 }
 0x406   :  { %v1082_v31 = vsel %vm1064_vm4, %v1079_v29, %v1081_v30 }
 0x407   :  { %1084 = vst.msk [vmem:[#allocation3] sm:$0x1] %vm1083_vm3, %v1082_v31 }
 0x408   :  { %1095 = dma.vmem_to_hbm [thread:$0]  %s1091_s23, 16, %s1093_s26, [#allocation4]  }
 0x409   :  { %1438 = dma.done.wait [#allocation4], 16  }
 0x40a   :  { %1439 = vsyncadd [#allocation4], 4294967280 }
 0x40b   :  { %1100 = vsyncpa [#allocation4], 1 }

</bundles_post_ra>
